<compile_context>
chip_gen: v5e
topology: v5e:2x2
jax: 0.10.0
libtpu: 0.0.40
codegen_flags: <defaults>
</compile_context>

<pallas_src>
import functools

import jax
import jax.numpy as jnp
from jax.experimental import pallas as pl
from jax.experimental.pallas import tpu as pltpu

D_MODEL = 32
NHEAD = 4
HEAD_DIM = D_MODEL // NHEAD
DIM_FF = 64
NUM_LAYERS = 2
LN_EPS = 1e-5
NEG_INF = -1e30

SLAB_W = max(2 * D_MODEL, DIM_FF, D_MODEL)   # lane width of both parameter slabs

# ---- row offsets inside the per-layer block of the WEIGHT slab (width SLAB_W) ----
W_SA_QK = 0                        # (D, 2D)    [sa_wq | sa_wk]
W_SA_VO = W_SA_QK + D_MODEL        # (D, 2D)    [sa_wv | sa_wo]
W_CA_QK = W_SA_VO + D_MODEL        # (D, 2D)    [ca_wq | ca_wk]
W_CA_VO = W_CA_QK + D_MODEL        # (D, 2D)    [ca_wv | ca_wo]
W_FF1 = W_CA_VO + D_MODEL          # (D, DIM_FF)
W_FF2 = W_FF1 + D_MODEL            # (DIM_FF, D) in cols [0:D]
W_ROWS_PER_LAYER = W_FF2 + DIM_FF  # 224

# ---- row index inside the per-layer block of the BIAS/LN slab (one vector/row) ----
(B_SA_QK, B_SA_V, B_SA_O, B_CA_Q, B_CA_K, B_CA_V, B_CA_O,
 B_FF1, B_FF2, B_LN1_G, B_LN1_B, B_LN2_G, B_LN2_B, B_LN3_G, B_LN3_B) = range(15)
B_ROWS_PER_LAYER = 16              # padded so each layer's block is sublane-aligned

_CONTRACT_LAST = (((1,), (1,)), ((), ()))   # contract last dims, no batch dims


# ---------------------------- in-kernel helpers ----------------------------

def _wblk(w_ref, r0, rows, c0, cols):
    """Use-site load of a weight block from the weight slab ref."""
    return w_ref[pl.ds(r0, rows), pl.ds(c0, cols)]


def _brow(b_ref, row, cols):
    """Use-site load of one bias/LN vector as a (1, cols) row."""
    return b_ref[pl.ds(row, 1), pl.ds(0, cols)]


def _layernorm(y, g, b):
    mean = jnp.mean(y, axis=-1, keepdims=True)
    cen = y - mean
    var = jnp.mean(cen * cen, axis=-1, keepdims=True)
    return cen * jax.lax.rsqrt(var + LN_EPS) * g + b


def _block_diag_bias(rows_per_b, cols_per_b, batch):
    """(batch*rows_per_b, batch*cols_per_b) additive bias: 0 on the per-batch
    diagonal blocks, -1e30 elsewhere.  Lets one score GEMM per head cover all
    batches at once; off-batch entries exp() to exactly 0 after softmax."""
    nr, nc = batch * rows_per_b, batch * cols_per_b
    r = jax.lax.broadcasted_iota(jnp.int32, (nr, nc), 0)
    c = jax.lax.broadcasted_iota(jnp.int32, (nr, nc), 1)
    valid = None
    for bi in range(batch):
        blk = ((r >= bi * rows_per_b) & (r < (bi + 1) * rows_per_b) &
               (c >= bi * cols_per_b) & (c < (bi + 1) * cols_per_b))
        valid = blk if valid is None else (valid | blk)
    return jnp.where(valid, 0.0, NEG_INF).astype(jnp.float32)


def _mha(q, k, v, wo, bo, attn_bias):
    """Multi-head attention over ALL batches at once.

    q: (Rq, D) already scaled by 1/sqrt(Dh); k, v: (Rk, D) batch-major rows.
    attn_bias: (Rq, Rk) block-diagonal 0 / -1e30 bias.
    wo: (D, D) output projection (loaded at use site), bo: (1, D).
    Per head: one score GEMM + one p@v GEMM; heads are lane-concatenated once
    and hit a single output-projection GEMM (9 MXU ops per attention total).
    """
    head_outs = []
    for h in range(NHEAD):
        lo = h * HEAD_DIM
        hi = lo + HEAD_DIM
        s = jax.lax.dot_general(q[:, lo:hi], k[:, lo:hi], _CONTRACT_LAST,
                                preferred_element_type=jnp.float32) + attn_bias
        s = s - jnp.max(s, axis=-1, keepdims=True)
        p = jnp.exp(s)
        p = p / jnp.sum(p, axis=-1, keepdims=True)      # exact softmax divide
        head_outs.append(jnp.dot(p, v[:, lo:hi],
                                 preferred_element_type=jnp.float32))
    o = jnp.concatenate(head_outs, axis=-1)             # (Rq, D) lane concat
    return jnp.dot(o, wo, preferred_element_type=jnp.float32) + bo


def _decoder_layer(x, tokpos, mem_ref, mempos_ref, mrow, mrows,
                   w_ref, b_ref, wl, bl, self_bias, cross_bias):
    """One DETR post-norm decoder layer.  All params come from slab refs and are
    loaded at their use site (minimal live ranges)."""
    scale = HEAD_DIM ** -0.5

    # -------- self-attention: q = k = x + token_pos, v = x (fused QK GEMM) --------
    qk_in = x + tokpos
    qk = jnp.dot(qk_in, _wblk(w_ref, wl + W_SA_QK, D_MODEL, 0, 2 * D_MODEL),
                 preferred_element_type=jnp.float32) + _brow(b_ref, bl + B_SA_QK,
                                                             2 * D_MODEL)
    q = qk[:, :D_MODEL] * scale              # fold 1/sqrt(Dh) into q once
    k = qk[:, D_MODEL:]
    v = jnp.dot(x, _wblk(w_ref, wl + W_SA_VO, D_MODEL, 0, D_MODEL),
                preferred_element_type=jnp.float32) + _brow(b_ref, bl + B_SA_V, D_MODEL)
    sa = _mha(q, k, v,
              _wblk(w_ref, wl + W_SA_VO, D_MODEL, D_MODEL, D_MODEL),
              _brow(b_ref, bl + B_SA_O, D_MODEL), self_bias)
    x = _layernorm(x + sa, _brow(b_ref, bl + B_LN1_G, D_MODEL),
                   _brow(b_ref, bl + B_LN1_B, D_MODEL))

    # -------- cross-attention: q = x + token_pos, k = mem + left_pos, v = mem --------
    mem = mem_ref[pl.ds(mrow, mrows), :]     # loaded here (use site), not at layer top
    mpos = mempos_ref[pl.ds(mrow, mrows), :]
    q = (jnp.dot(x + tokpos, _wblk(w_ref, wl + W_CA_QK, D_MODEL, 0, D_MODEL),
                 preferred_element_type=jnp.float32)
         + _brow(b_ref, bl + B_CA_Q, D_MODEL)) * scale
    k = jnp.dot(mem + mpos, _wblk(w_ref, wl + W_CA_QK, D_MODEL, D_MODEL, D_MODEL),
                preferred_element_type=jnp.float32) + _brow(b_ref, bl + B_CA_K, D_MODEL)
    v = jnp.dot(mem, _wblk(w_ref, wl + W_CA_VO, D_MODEL, 0, D_MODEL),
                preferred_element_type=jnp.float32) + _brow(b_ref, bl + B_CA_V, D_MODEL)
    ca = _mha(q, k, v,
              _wblk(w_ref, wl + W_CA_VO, D_MODEL, D_MODEL, D_MODEL),
              _brow(b_ref, bl + B_CA_O, D_MODEL), cross_bias)
    x = _layernorm(x + ca, _brow(b_ref, bl + B_LN2_G, D_MODEL),
                   _brow(b_ref, bl + B_LN2_B, D_MODEL))

    # -------- feed-forward --------
    h = jnp.dot(x, _wblk(w_ref, wl + W_FF1, D_MODEL, 0, DIM_FF),
                preferred_element_type=jnp.float32) + _brow(b_ref, bl + B_FF1, DIM_FF)
    h = jnp.maximum(h, 0.0)
    f = jnp.dot(h, _wblk(w_ref, wl + W_FF2, DIM_FF, 0, D_MODEL),
                preferred_element_type=jnp.float32) + _brow(b_ref, bl + B_FF2, D_MODEL)
    x = _layernorm(x + f, _brow(b_ref, bl + B_LN3_G, D_MODEL),
                   _brow(b_ref, bl + B_LN3_B, D_MODEL))
    return x


# ---------------------- the single fused whole-decoder kernel ----------------------

def _decoder_kernel(tgt_ref, tokpos_ref, mem_ref, mempos_ref, w_ref, b_ref, out_ref,
                    *, num_layers, num_levels, B, T, S):
    x = tgt_ref[...]            # (B*T, D) tgt, batch-major rows
    tokpos = tokpos_ref[...]    # (B*T, D)
    self_bias = _block_diag_bias(T, T, B)    # (B*T, B*T), computed once
    cross_bias = _block_diag_bias(T, S, B)   # (B*T, B*S), computed once
    for i in range(num_layers):
        lvl = i % num_levels
        x = _decoder_layer(x, tokpos, mem_ref, mempos_ref, lvl * B * S, B * S,
                           w_ref, b_ref, i * W_ROWS_PER_LAYER, i * B_ROWS_PER_LAYER,
                           self_bias, cross_bias)
    out_ref[...] = x


# ---------------------------- host-side wiring ----------------------------

def pack_decoder_params(layer_params):
    """Called ONCE at init (outside the per-call jitted path): pack all per-layer
    weights into one (L*224, SLAB_W) slab and all biases/LN params into one
    (L*16, SLAB_W) slab.  Layout must match the W_* / B_* offsets above."""
    def pad_cols(a):
        a = jnp.asarray(a, jnp.float32)
        return jnp.pad(a, ((0, 0), (0, SLAB_W - a.shape[1])))

    def vec_row(*vs):
        v = jnp.concatenate([jnp.asarray(x, jnp.float32).reshape(-1) for x in vs])
        return jnp.pad(v, (0, SLAB_W - v.shape[0])).reshape(1, SLAB_W)

    w_blocks, b_rows = [], []
    for p in layer_params:
        w_blocks += [
            pad_cols(jnp.concatenate([p["sa_wq"], p["sa_wk"]], axis=1)),   # W_SA_QK
            pad_cols(jnp.concatenate([p["sa_wv"], p["sa_wo"]], axis=1)),   # W_SA_VO
            pad_cols(jnp.concatenate([p["ca_wq"], p["ca_wk"]], axis=1)),   # W_CA_QK
            pad_cols(jnp.concatenate([p["ca_wv"], p["ca_wo"]], axis=1)),   # W_CA_VO
            pad_cols(p["ff_w1"]),                                          # W_FF1
            pad_cols(p["ff_w2"]),                                          # W_FF2
        ]
        b_rows += [
            vec_row(p["sa_bq"], p["sa_bk"]),                               # B_SA_QK
            vec_row(p["sa_bv"]), vec_row(p["sa_bo"]),
            vec_row(p["ca_bq"]), vec_row(p["ca_bk"]),
            vec_row(p["ca_bv"]), vec_row(p["ca_bo"]),
            vec_row(p["ff_b1"]), vec_row(p["ff_b2"]),
            vec_row(p["ln1_g"]), vec_row(p["ln1_b"]),
            vec_row(p["ln2_g"]), vec_row(p["ln2_b"]),
            vec_row(p["ln3_g"]), vec_row(p["ln3_b"]),
            jnp.zeros((1, SLAB_W), jnp.float32),        # pad to 16 rows / layer
        ]
    w_slab = jnp.concatenate(w_blocks, axis=0)
    b_slab = jnp.concatenate(b_rows, axis=0)
    return w_slab, b_slab


@jax.jit
def transformer_decoder_forward(w_slab, b_slab, tgt, left_memory_list,
                                left_pos_list, token_pos):
    """Matches TransformerDecoder.forward (norm=None, return_intermediate=False).
    tgt/token_pos: (T, B, D); left_memory_list/left_pos_list: lists of (S, B, D).
    w_slab/b_slab come from pack_decoder_params (built once at init)."""
    # TODO(synk): memory_mask / memory_key_padding_mask / dropout not applied
    # (all None / eval path in the reference usage).
    T, B, D = tgt.shape
    S = left_memory_list[0].shape[0]
    num_levels = len(left_memory_list)
    num_layers = w_slab.shape[0] // W_ROWS_PER_LAYER

    def flat_bm(a):   # (L, B, D) seq-major -> (B*L, D) batch-major rows
        return a.transpose(1, 0, 2).reshape(-1, D)

    mem_all = jnp.concatenate([flat_bm(m) for m in left_memory_list], axis=0)
    pos_all = jnp.concatenate([flat_bm(p) for p in left_pos_list], axis=0)

    vmem = pltpu.MemorySpace.VMEM
    out = pl.pallas_call(
        functools.partial(_decoder_kernel, num_layers=num_layers,
                          num_levels=num_levels, B=B, T=T, S=S),
        out_shape=jax.ShapeDtypeStruct((B * T, D), jnp.float32),
        in_specs=[pl.BlockSpec(memory_space=vmem)] * 6,
        out_specs=pl.BlockSpec(memory_space=vmem),
    )(flat_bm(tgt), flat_bm(token_pos), mem_all, pos_all, w_slab, b_slab)
    return out.reshape(B, T, D).transpose(1, 0, 2)   # back to (T, B, D)


# ---------------------------- deterministic parameter init ----------------------------

def init_layer_params(key):
    keys = jax.random.split(key, 16)
    p = {}
    idx = 0

    def w(shape):
        nonlocal idx
        arr = jax.random.normal(keys[idx], shape, jnp.float32) * 0.02
        idx += 1
        return arr

    for prefix in ("sa", "ca"):
        for name in ("wq", "wk", "wv", "wo"):
            p[f"{prefix}_{name}"] = w((D_MODEL, D_MODEL))
            p[f"{prefix}_{name.replace('w', 'b')}"] = jnp.zeros((D_MODEL,), jnp.float32)
    p["ff_w1"] = w((D_MODEL, DIM_FF))
    p["ff_b1"] = jnp.zeros((DIM_FF,), jnp.float32)
    p["ff_w2"] = w((DIM_FF, D_MODEL))
    p["ff_b2"] = jnp.zeros((D_MODEL,), jnp.float32)
    for n in ("ln1", "ln2", "ln3"):
        p[f"{n}_g"] = jnp.ones((D_MODEL,), jnp.float32)
        p[f"{n}_b"] = jnp.zeros((D_MODEL,), jnp.float32)
    return p


if __name__ == "__main__":
    key = jax.random.PRNGKey(0)
    kt, km0, km1, kp0, kp1, ktp, kparams = jax.random.split(key, 7)

    T, B, S = 8, 2, 16   # queries, batch, memory length
    tgt = jax.random.normal(kt, (T, B, D_MODEL), jnp.float32)
    left_memory_list = [
        jax.random.normal(km0, (S, B, D_MODEL), jnp.float32),
        jax.random.normal(km1, (S, B, D_MODEL), jnp.float32),
    ]
    left_pos = [
        jax.random.normal(kp0, (S, B, D_MODEL), jnp.float32),
        jax.random.normal(kp1, (S, B, D_MODEL), jnp.float32),
    ]
    token_pos = jax.random.normal(ktp, (T, B, D_MODEL), jnp.float32)

    layer_keys = jax.random.split(kparams, NUM_LAYERS)
    layer_params = [init_layer_params(k) for k in layer_keys]

    # Pack parameters into slabs ONCE, outside the per-call jitted path.
    w_slab, b_slab = pack_decoder_params(layer_params)

    out = transformer_decoder_forward(w_slab, b_slab, tgt, left_memory_list,
                                      left_pos, token_pos)
    out = jax.block_until_ready(out)
    assert out.shape == (T, B, D_MODEL) and out.dtype == jnp.float32
    print("KERNEL_OK")
</pallas_src>

<mosaic_0001>
module attributes {stable_mosaic.version = 11 : i64} {
  func.func @_decoder_kernel(%arg0: memref<16x32xf32, #tpu.memory_space<vmem>>, %arg1: memref<16x32xf32, #tpu.memory_space<vmem>>, %arg2: memref<64x32xf32, #tpu.memory_space<vmem>>, %arg3: memref<64x32xf32, #tpu.memory_space<vmem>>, %arg4: memref<448x64xf32, #tpu.memory_space<vmem>>, %arg5: memref<32x64xf32, #tpu.memory_space<vmem>>, %arg6: memref<16x32xf32, #tpu.memory_space<vmem>>) attributes {dimension_semantics = [], scalar_prefetch = 0 : i64, scratch_operands = 0 : i64, tpu.core_type = #tpu.core_type<tc>} {
    %c0 = arith.constant 0 : index
    %c0_0 = arith.constant 0 : index
    %0 = vector.load %arg0[%c0, %c0_0] : memref<16x32xf32, #tpu.memory_space<vmem>>, vector<16x32xf32>
    %c0_1 = arith.constant 0 : index
    %c0_2 = arith.constant 0 : index
    %1 = vector.load %arg1[%c0_1, %c0_2] : memref<16x32xf32, #tpu.memory_space<vmem>>, vector<16x32xf32>
    %2 = tpu.iota {dimensions = array<i32: 0>} : vector<16x16xi32>
    %3 = tpu.iota {dimensions = array<i32: 1>} : vector<16x16xi32>
    %c0_i32 = arith.constant 0 : i32
    %4 = vector.broadcast %c0_i32 : i32 to vector<16x16xi32>
    %5 = arith.cmpi sge, %2, %4 : vector<16x16xi32>
    %c8_i32 = arith.constant 8 : i32
    %6 = vector.broadcast %c8_i32 : i32 to vector<16x16xi32>
    %7 = arith.cmpi slt, %2, %6 : vector<16x16xi32>
    %8 = arith.andi %5, %7 : vector<16x16xi1>
    %c0_i32_3 = arith.constant 0 : i32
    %9 = vector.broadcast %c0_i32_3 : i32 to vector<16x16xi32>
    %10 = arith.cmpi sge, %3, %9 : vector<16x16xi32>
    %11 = arith.andi %8, %10 : vector<16x16xi1>
    %c8_i32_4 = arith.constant 8 : i32
    %12 = vector.broadcast %c8_i32_4 : i32 to vector<16x16xi32>
    %13 = arith.cmpi slt, %3, %12 : vector<16x16xi32>
    %14 = arith.andi %11, %13 : vector<16x16xi1>
    %c8_i32_5 = arith.constant 8 : i32
    %15 = vector.broadcast %c8_i32_5 : i32 to vector<16x16xi32>
    %16 = arith.cmpi sge, %2, %15 : vector<16x16xi32>
    %c16_i32 = arith.constant 16 : i32
    %17 = vector.broadcast %c16_i32 : i32 to vector<16x16xi32>
    %18 = arith.cmpi slt, %2, %17 : vector<16x16xi32>
    %19 = arith.andi %16, %18 : vector<16x16xi1>
    %c8_i32_6 = arith.constant 8 : i32
    %20 = vector.broadcast %c8_i32_6 : i32 to vector<16x16xi32>
    %21 = arith.cmpi sge, %3, %20 : vector<16x16xi32>
    %22 = arith.andi %19, %21 : vector<16x16xi1>
    %c16_i32_7 = arith.constant 16 : i32
    %23 = vector.broadcast %c16_i32_7 : i32 to vector<16x16xi32>
    %24 = arith.cmpi slt, %3, %23 : vector<16x16xi32>
    %25 = arith.andi %22, %24 : vector<16x16xi1>
    %26 = arith.ori %14, %25 : vector<16x16xi1>
    %cst = arith.constant 0.000000e+00 : f32
    %cst_8 = arith.constant -1.000000e+30 : f32
    %27 = vector.broadcast %cst : f32 to vector<16x16xf32>
    %28 = vector.broadcast %cst_8 : f32 to vector<16x16xf32>
    %29 = arith.select %26, %27, %28 : vector<16x16xi1>, vector<16x16xf32>
    %30 = tpu.iota {dimensions = array<i32: 0>} : vector<16x32xi32>
    %31 = tpu.iota {dimensions = array<i32: 1>} : vector<16x32xi32>
    %c0_i32_9 = arith.constant 0 : i32
    %32 = vector.broadcast %c0_i32_9 : i32 to vector<16x32xi32>
    %33 = arith.cmpi sge, %30, %32 : vector<16x32xi32>
    %c8_i32_10 = arith.constant 8 : i32
    %34 = vector.broadcast %c8_i32_10 : i32 to vector<16x32xi32>
    %35 = arith.cmpi slt, %30, %34 : vector<16x32xi32>
    %36 = arith.andi %33, %35 : vector<16x32xi1>
    %c0_i32_11 = arith.constant 0 : i32
    %37 = vector.broadcast %c0_i32_11 : i32 to vector<16x32xi32>
    %38 = arith.cmpi sge, %31, %37 : vector<16x32xi32>
    %39 = arith.andi %36, %38 : vector<16x32xi1>
    %c16_i32_12 = arith.constant 16 : i32
    %40 = vector.broadcast %c16_i32_12 : i32 to vector<16x32xi32>
    %41 = arith.cmpi slt, %31, %40 : vector<16x32xi32>
    %42 = arith.andi %39, %41 : vector<16x32xi1>
    %c8_i32_13 = arith.constant 8 : i32
    %43 = vector.broadcast %c8_i32_13 : i32 to vector<16x32xi32>
    %44 = arith.cmpi sge, %30, %43 : vector<16x32xi32>
    %c16_i32_14 = arith.constant 16 : i32
    %45 = vector.broadcast %c16_i32_14 : i32 to vector<16x32xi32>
    %46 = arith.cmpi slt, %30, %45 : vector<16x32xi32>
    %47 = arith.andi %44, %46 : vector<16x32xi1>
    %c16_i32_15 = arith.constant 16 : i32
    %48 = vector.broadcast %c16_i32_15 : i32 to vector<16x32xi32>
    %49 = arith.cmpi sge, %31, %48 : vector<16x32xi32>
    %50 = arith.andi %47, %49 : vector<16x32xi1>
    %c32_i32 = arith.constant 32 : i32
    %51 = vector.broadcast %c32_i32 : i32 to vector<16x32xi32>
    %52 = arith.cmpi slt, %31, %51 : vector<16x32xi32>
    %53 = arith.andi %50, %52 : vector<16x32xi1>
    %54 = arith.ori %42, %53 : vector<16x32xi1>
    %cst_16 = arith.constant 0.000000e+00 : f32
    %cst_17 = arith.constant -1.000000e+30 : f32
    %55 = vector.broadcast %cst_16 : f32 to vector<16x32xf32>
    %56 = vector.broadcast %cst_17 : f32 to vector<16x32xf32>
    %57 = arith.select %54, %55, %56 : vector<16x32xi1>, vector<16x32xf32>
    %58 = arith.addf %0, %1 : vector<16x32xf32>
    %c0_18 = arith.constant 0 : index
    %c0_19 = arith.constant 0 : index
    %59 = vector.load %arg4[%c0_18, %c0_19] : memref<448x64xf32, #tpu.memory_space<vmem>>, vector<32x64xf32>
    %cst_20 = arith.constant dense<0.000000e+00> : vector<16x64xf32>
    %60 = tpu.matmul %58, %59, %cst_20 {dimension_numbers = #tpu.dot_dimension_numbers<[1], [0], [0], [1], [0, 0, 1, 1], [], []>} : vector<16x32xf32>, vector<32x64xf32>, vector<16x64xf32> -> vector<16x64xf32>
    %c0_21 = arith.constant 0 : index
    %c0_22 = arith.constant 0 : index
    %61 = vector.load %arg5[%c0_21, %c0_22] : memref<32x64xf32, #tpu.memory_space<vmem>>, vector<1x64xf32>
    %62 = vector.broadcast %61 : vector<1x64xf32> to vector<16x64xf32>
    %63 = arith.addf %60, %62 : vector<16x64xf32>
    %64 = vector.extract_strided_slice %63 {offsets = [0, 0], sizes = [16, 32], strides = [1, 1]} : vector<16x64xf32> to vector<16x32xf32>
    %cst_23 = arith.constant 0.353553385 : f32
    %65 = vector.broadcast %cst_23 : f32 to vector<16x32xf32>
    %66 = arith.mulf %64, %65 : vector<16x32xf32>
    %67 = vector.extract_strided_slice %63 {offsets = [0, 32], sizes = [16, 32], strides = [1, 1]} : vector<16x64xf32> to vector<16x32xf32>
    %c32 = arith.constant 32 : index
    %c0_24 = arith.constant 0 : index
    %68 = vector.load %arg4[%c32, %c0_24] : memref<448x64xf32, #tpu.memory_space<vmem>>, vector<32x32xf32>
    %cst_25 = arith.constant dense<0.000000e+00> : vector<16x32xf32>
    %69 = tpu.matmul %0, %68, %cst_25 {dimension_numbers = #tpu.dot_dimension_numbers<[1], [0], [0], [1], [0, 0, 1, 1], [], []>} : vector<16x32xf32>, vector<32x32xf32>, vector<16x32xf32> -> vector<16x32xf32>
    %c1 = arith.constant 1 : index
    %c0_26 = arith.constant 0 : index
    %70 = vector.load %arg5[%c1, %c0_26] : memref<32x64xf32, #tpu.memory_space<vmem>>, vector<1x32xf32>
    %71 = vector.broadcast %70 : vector<1x32xf32> to vector<16x32xf32>
    %72 = arith.addf %69, %71 : vector<16x32xf32>
    %c32_27 = arith.constant 32 : index
    %c32_28 = arith.constant 32 : index
    %73 = vector.load %arg4[%c32_27, %c32_28] : memref<448x64xf32, #tpu.memory_space<vmem>>, vector<32x32xf32>
    %c2 = arith.constant 2 : index
    %c0_29 = arith.constant 0 : index
    %74 = vector.load %arg5[%c2, %c0_29] : memref<32x64xf32, #tpu.memory_space<vmem>>, vector<1x32xf32>
    %75 = vector.extract_strided_slice %66 {offsets = [0, 0], sizes = [16, 8], strides = [1, 1]} : vector<16x32xf32> to vector<16x8xf32>
    %76 = vector.extract_strided_slice %67 {offsets = [0, 0], sizes = [16, 8], strides = [1, 1]} : vector<16x32xf32> to vector<16x8xf32>
    %cst_30 = arith.constant dense<0.000000e+00> : vector<16x16xf32>
    %77 = tpu.matmul %75, %76, %cst_30 {dimension_numbers = #tpu.dot_dimension_numbers<[1], [1], [0], [0], [0, 0, 1, 0], [], []>} : vector<16x8xf32>, vector<16x8xf32>, vector<16x16xf32> -> vector<16x16xf32>
    %78 = arith.addf %77, %29 : vector<16x16xf32>
    %cst_31 = arith.constant dense<0xFF800000> : vector<16xf32>
    %79 = vector.multi_reduction <maximumf>, %78, %cst_31 [1] : vector<16x16xf32> to vector<16xf32>
    %80 = vector.shape_cast %79 : vector<16xf32> to vector<16x1xf32>
    %81 = vector.broadcast %80 : vector<16x1xf32> to vector<16x16xf32>
    %82 = arith.subf %78, %81 : vector<16x16xf32>
    %83 = math.exp %82 : vector<16x16xf32>
    %cst_32 = arith.constant dense<0.000000e+00> : vector<16xf32>
    %84 = vector.multi_reduction <add>, %83, %cst_32 [1] : vector<16x16xf32> to vector<16xf32>
    %85 = vector.shape_cast %84 : vector<16xf32> to vector<16x1xf32>
    %86 = vector.broadcast %85 : vector<16x1xf32> to vector<16x16xf32>
    %87 = arith.divf %83, %86 : vector<16x16xf32>
    %88 = vector.extract_strided_slice %72 {offsets = [0, 0], sizes = [16, 8], strides = [1, 1]} : vector<16x32xf32> to vector<16x8xf32>
    %cst_33 = arith.constant dense<0.000000e+00> : vector<16x8xf32>
    %89 = tpu.matmul %87, %88, %cst_33 {dimension_numbers = #tpu.dot_dimension_numbers<[1], [0], [0], [1], [0, 0, 1, 1], [], []>} : vector<16x16xf32>, vector<16x8xf32>, vector<16x8xf32> -> vector<16x8xf32>
    %90 = vector.extract_strided_slice %66 {offsets = [0, 8], sizes = [16, 8], strides = [1, 1]} : vector<16x32xf32> to vector<16x8xf32>
    %91 = vector.extract_strided_slice %67 {offsets = [0, 8], sizes = [16, 8], strides = [1, 1]} : vector<16x32xf32> to vector<16x8xf32>
    %cst_34 = arith.constant dense<0.000000e+00> : vector<16x16xf32>
    %92 = tpu.matmul %90, %91, %cst_34 {dimension_numbers = #tpu.dot_dimension_numbers<[1], [1], [0], [0], [0, 0, 1, 0], [], []>} : vector<16x8xf32>, vector<16x8xf32>, vector<16x16xf32> -> vector<16x16xf32>
    %93 = arith.addf %92, %29 : vector<16x16xf32>
    %cst_35 = arith.constant dense<0xFF800000> : vector<16xf32>
    %94 = vector.multi_reduction <maximumf>, %93, %cst_35 [1] : vector<16x16xf32> to vector<16xf32>
    %95 = vector.shape_cast %94 : vector<16xf32> to vector<16x1xf32>
    %96 = vector.broadcast %95 : vector<16x1xf32> to vector<16x16xf32>
    %97 = arith.subf %93, %96 : vector<16x16xf32>
    %98 = math.exp %97 : vector<16x16xf32>
    %cst_36 = arith.constant dense<0.000000e+00> : vector<16xf32>
    %99 = vector.multi_reduction <add>, %98, %cst_36 [1] : vector<16x16xf32> to vector<16xf32>
    %100 = vector.shape_cast %99 : vector<16xf32> to vector<16x1xf32>
    %101 = vector.broadcast %100 : vector<16x1xf32> to vector<16x16xf32>
    %102 = arith.divf %98, %101 : vector<16x16xf32>
    %103 = vector.extract_strided_slice %72 {offsets = [0, 8], sizes = [16, 8], strides = [1, 1]} : vector<16x32xf32> to vector<16x8xf32>
    %cst_37 = arith.constant dense<0.000000e+00> : vector<16x8xf32>
    %104 = tpu.matmul %102, %103, %cst_37 {dimension_numbers = #tpu.dot_dimension_numbers<[1], [0], [0], [1], [0, 0, 1, 1], [], []>} : vector<16x16xf32>, vector<16x8xf32>, vector<16x8xf32> -> vector<16x8xf32>
    %105 = vector.extract_strided_slice %66 {offsets = [0, 16], sizes = [16, 8], strides = [1, 1]} : vector<16x32xf32> to vector<16x8xf32>
    %106 = vector.extract_strided_slice %67 {offsets = [0, 16], sizes = [16, 8], strides = [1, 1]} : vector<16x32xf32> to vector<16x8xf32>
    %cst_38 = arith.constant dense<0.000000e+00> : vector<16x16xf32>
    %107 = tpu.matmul %105, %106, %cst_38 {dimension_numbers = #tpu.dot_dimension_numbers<[1], [1], [0], [0], [0, 0, 1, 0], [], []>} : vector<16x8xf32>, vector<16x8xf32>, vector<16x16xf32> -> vector<16x16xf32>
    %108 = arith.addf %107, %29 : vector<16x16xf32>
    %cst_39 = arith.constant dense<0xFF800000> : vector<16xf32>
    %109 = vector.multi_reduction <maximumf>, %108, %cst_39 [1] : vector<16x16xf32> to vector<16xf32>
    %110 = vector.shape_cast %109 : vector<16xf32> to vector<16x1xf32>
    %111 = vector.broadcast %110 : vector<16x1xf32> to vector<16x16xf32>
    %112 = arith.subf %108, %111 : vector<16x16xf32>
    %113 = math.exp %112 : vector<16x16xf32>
    %cst_40 = arith.constant dense<0.000000e+00> : vector<16xf32>
    %114 = vector.multi_reduction <add>, %113, %cst_40 [1] : vector<16x16xf32> to vector<16xf32>
    %115 = vector.shape_cast %114 : vector<16xf32> to vector<16x1xf32>
    %116 = vector.broadcast %115 : vector<16x1xf32> to vector<16x16xf32>
    %117 = arith.divf %113, %116 : vector<16x16xf32>
    %118 = vector.extract_strided_slice %72 {offsets = [0, 16], sizes = [16, 8], strides = [1, 1]} : vector<16x32xf32> to vector<16x8xf32>
    %cst_41 = arith.constant dense<0.000000e+00> : vector<16x8xf32>
    %119 = tpu.matmul %117, %118, %cst_41 {dimension_numbers = #tpu.dot_dimension_numbers<[1], [0], [0], [1], [0, 0, 1, 1], [], []>} : vector<16x16xf32>, vector<16x8xf32>, vector<16x8xf32> -> vector<16x8xf32>
    %120 = vector.extract_strided_slice %66 {offsets = [0, 24], sizes = [16, 8], strides = [1, 1]} : vector<16x32xf32> to vector<16x8xf32>
    %121 = vector.extract_strided_slice %67 {offsets = [0, 24], sizes = [16, 8], strides = [1, 1]} : vector<16x32xf32> to vector<16x8xf32>
    %cst_42 = arith.constant dense<0.000000e+00> : vector<16x16xf32>
    %122 = tpu.matmul %120, %121, %cst_42 {dimension_numbers = #tpu.dot_dimension_numbers<[1], [1], [0], [0], [0, 0, 1, 0], [], []>} : vector<16x8xf32>, vector<16x8xf32>, vector<16x16xf32> -> vector<16x16xf32>
    %123 = arith.addf %122, %29 : vector<16x16xf32>
    %cst_43 = arith.constant dense<0xFF800000> : vector<16xf32>
    %124 = vector.multi_reduction <maximumf>, %123, %cst_43 [1] : vector<16x16xf32> to vector<16xf32>
    %125 = vector.shape_cast %124 : vector<16xf32> to vector<16x1xf32>
    %126 = vector.broadcast %125 : vector<16x1xf32> to vector<16x16xf32>
    %127 = arith.subf %123, %126 : vector<16x16xf32>
    %128 = math.exp %127 : vector<16x16xf32>
    %cst_44 = arith.constant dense<0.000000e+00> : vector<16xf32>
    %129 = vector.multi_reduction <add>, %128, %cst_44 [1] : vector<16x16xf32> to vector<16xf32>
    %130 = vector.shape_cast %129 : vector<16xf32> to vector<16x1xf32>
    %131 = vector.broadcast %130 : vector<16x1xf32> to vector<16x16xf32>
    %132 = arith.divf %128, %131 : vector<16x16xf32>
    %133 = vector.extract_strided_slice %72 {offsets = [0, 24], sizes = [16, 8], strides = [1, 1]} : vector<16x32xf32> to vector<16x8xf32>
    %cst_45 = arith.constant dense<0.000000e+00> : vector<16x8xf32>
    %134 = tpu.matmul %132, %133, %cst_45 {dimension_numbers = #tpu.dot_dimension_numbers<[1], [0], [0], [1], [0, 0, 1, 1], [], []>} : vector<16x16xf32>, vector<16x8xf32>, vector<16x8xf32> -> vector<16x8xf32>
    %135 = tpu.concatenate %89, %104, %119, %134 in 1 : vector<16x8xf32>, vector<16x8xf32>, vector<16x8xf32>, vector<16x8xf32> -> vector<16x32xf32>
    %cst_46 = arith.constant dense<0.000000e+00> : vector<16x32xf32>
    %136 = tpu.matmul %135, %73, %cst_46 {dimension_numbers = #tpu.dot_dimension_numbers<[1], [0], [0], [1], [0, 0, 1, 1], [], []>} : vector<16x32xf32>, vector<32x32xf32>, vector<16x32xf32> -> vector<16x32xf32>
    %137 = vector.broadcast %74 : vector<1x32xf32> to vector<16x32xf32>
    %138 = arith.addf %136, %137 : vector<16x32xf32>
    %139 = arith.addf %0, %138 : vector<16x32xf32>
    %c9 = arith.constant 9 : index
    %c0_47 = arith.constant 0 : index
    %140 = vector.load %arg5[%c9, %c0_47] : memref<32x64xf32, #tpu.memory_space<vmem>>, vector<1x32xf32>
    %c10 = arith.constant 10 : index
    %c0_48 = arith.constant 0 : index
    %141 = vector.load %arg5[%c10, %c0_48] : memref<32x64xf32, #tpu.memory_space<vmem>>, vector<1x32xf32>
    %cst_49 = arith.constant dense<0.000000e+00> : vector<16xf32>
    %142 = vector.multi_reduction <add>, %139, %cst_49 [1] : vector<16x32xf32> to vector<16xf32>
    %143 = vector.shape_cast %142 : vector<16xf32> to vector<16x1xf32>
    %cst_50 = arith.constant 3.200000e+01 : f32
    %144 = vector.broadcast %cst_50 : f32 to vector<16x1xf32>
    %145 = arith.divf %143, %144 : vector<16x1xf32>
    %146 = vector.broadcast %145 : vector<16x1xf32> to vector<16x32xf32>
    %147 = arith.subf %139, %146 : vector<16x32xf32>
    %148 = arith.mulf %147, %147 : vector<16x32xf32>
    %cst_51 = arith.constant dense<0.000000e+00> : vector<16xf32>
    %149 = vector.multi_reduction <add>, %148, %cst_51 [1] : vector<16x32xf32> to vector<16xf32>
    %150 = vector.shape_cast %149 : vector<16xf32> to vector<16x1xf32>
    %cst_52 = arith.constant 3.200000e+01 : f32
    %151 = vector.broadcast %cst_52 : f32 to vector<16x1xf32>
    %152 = arith.divf %150, %151 : vector<16x1xf32>
    %cst_53 = arith.constant 9.99999974E-6 : f32
    %153 = vector.broadcast %cst_53 : f32 to vector<16x1xf32>
    %154 = arith.addf %152, %153 : vector<16x1xf32>
    %155 = math.rsqrt %154 : vector<16x1xf32>
    %156 = vector.broadcast %155 : vector<16x1xf32> to vector<16x32xf32>
    %157 = arith.mulf %147, %156 : vector<16x32xf32>
    %158 = vector.broadcast %140 : vector<1x32xf32> to vector<16x32xf32>
    %159 = arith.mulf %157, %158 : vector<16x32xf32>
    %160 = vector.broadcast %141 : vector<1x32xf32> to vector<16x32xf32>
    %161 = arith.addf %159, %160 : vector<16x32xf32>
    %c0_54 = arith.constant 0 : index
    %c0_55 = arith.constant 0 : index
    %162 = vector.load %arg2[%c0_54, %c0_55] : memref<64x32xf32, #tpu.memory_space<vmem>>, vector<32x32xf32>
    %c0_56 = arith.constant 0 : index
    %c0_57 = arith.constant 0 : index
    %163 = vector.load %arg3[%c0_56, %c0_57] : memref<64x32xf32, #tpu.memory_space<vmem>>, vector<32x32xf32>
    %164 = arith.addf %161, %1 : vector<16x32xf32>
    %c64 = arith.constant 64 : index
    %c0_58 = arith.constant 0 : index
    %165 = vector.load %arg4[%c64, %c0_58] : memref<448x64xf32, #tpu.memory_space<vmem>>, vector<32x32xf32>
    %cst_59 = arith.constant dense<0.000000e+00> : vector<16x32xf32>
    %166 = tpu.matmul %164, %165, %cst_59 {dimension_numbers = #tpu.dot_dimension_numbers<[1], [0], [0], [1], [0, 0, 1, 1], [], []>} : vector<16x32xf32>, vector<32x32xf32>, vector<16x32xf32> -> vector<16x32xf32>
    %c3 = arith.constant 3 : index
    %c0_60 = arith.constant 0 : index
    %167 = vector.load %arg5[%c3, %c0_60] : memref<32x64xf32, #tpu.memory_space<vmem>>, vector<1x32xf32>
    %168 = vector.broadcast %167 : vector<1x32xf32> to vector<16x32xf32>
    %169 = arith.addf %166, %168 : vector<16x32xf32>
    %cst_61 = arith.constant 0.353553385 : f32
    %170 = vector.broadcast %cst_61 : f32 to vector<16x32xf32>
    %171 = arith.mulf %169, %170 : vector<16x32xf32>
    %172 = arith.addf %162, %163 : vector<32x32xf32>
    %c64_62 = arith.constant 64 : index
    %c32_63 = arith.constant 32 : index
    %173 = vector.load %arg4[%c64_62, %c32_63] : memref<448x64xf32, #tpu.memory_space<vmem>>, vector<32x32xf32>
    %cst_64 = arith.constant dense<0.000000e+00> : vector<32x32xf32>
    %174 = tpu.matmul %172, %173, %cst_64 {dimension_numbers = #tpu.dot_dimension_numbers<[1], [0], [0], [1], [0, 0, 1, 1], [], []>} : vector<32x32xf32>, vector<32x32xf32>, vector<32x32xf32> -> vector<32x32xf32>
    %c4 = arith.constant 4 : index
    %c0_65 = arith.constant 0 : index
    %175 = vector.load %arg5[%c4, %c0_65] : memref<32x64xf32, #tpu.memory_space<vmem>>, vector<1x32xf32>
    %176 = vector.broadcast %175 : vector<1x32xf32> to vector<32x32xf32>
    %177 = arith.addf %174, %176 : vector<32x32xf32>
    %c96 = arith.constant 96 : index
    %c0_66 = arith.constant 0 : index
    %178 = vector.load %arg4[%c96, %c0_66] : memref<448x64xf32, #tpu.memory_space<vmem>>, vector<32x32xf32>
    %cst_67 = arith.constant dense<0.000000e+00> : vector<32x32xf32>
    %179 = tpu.matmul %162, %178, %cst_67 {dimension_numbers = #tpu.dot_dimension_numbers<[1], [0], [0], [1], [0, 0, 1, 1], [], []>} : vector<32x32xf32>, vector<32x32xf32>, vector<32x32xf32> -> vector<32x32xf32>
    %c5 = arith.constant 5 : index
    %c0_68 = arith.constant 0 : index
    %180 = vector.load %arg5[%c5, %c0_68] : memref<32x64xf32, #tpu.memory_space<vmem>>, vector<1x32xf32>
    %181 = vector.broadcast %180 : vector<1x32xf32> to vector<32x32xf32>
    %182 = arith.addf %179, %181 : vector<32x32xf32>
    %c96_69 = arith.constant 96 : index
    %c32_70 = arith.constant 32 : index
    %183 = vector.load %arg4[%c96_69, %c32_70] : memref<448x64xf32, #tpu.memory_space<vmem>>, vector<32x32xf32>
    %c6 = arith.constant 6 : index
    %c0_71 = arith.constant 0 : index
    %184 = vector.load %arg5[%c6, %c0_71] : memref<32x64xf32, #tpu.memory_space<vmem>>, vector<1x32xf32>
    %185 = vector.extract_strided_slice %171 {offsets = [0, 0], sizes = [16, 8], strides = [1, 1]} : vector<16x32xf32> to vector<16x8xf32>
    %186 = vector.extract_strided_slice %177 {offsets = [0, 0], sizes = [32, 8], strides = [1, 1]} : vector<32x32xf32> to vector<32x8xf32>
    %cst_72 = arith.constant dense<0.000000e+00> : vector<16x32xf32>
    %187 = tpu.matmul %185, %186, %cst_72 {dimension_numbers = #tpu.dot_dimension_numbers<[1], [1], [0], [0], [0, 0, 1, 0], [], []>} : vector<16x8xf32>, vector<32x8xf32>, vector<16x32xf32> -> vector<16x32xf32>
    %188 = arith.addf %187, %57 : vector<16x32xf32>
    %cst_73 = arith.constant dense<0xFF800000> : vector<16xf32>
    %189 = vector.multi_reduction <maximumf>, %188, %cst_73 [1] : vector<16x32xf32> to vector<16xf32>
    %190 = vector.shape_cast %189 : vector<16xf32> to vector<16x1xf32>
    %191 = vector.broadcast %190 : vector<16x1xf32> to vector<16x32xf32>
    %192 = arith.subf %188, %191 : vector<16x32xf32>
    %193 = math.exp %192 : vector<16x32xf32>
    %cst_74 = arith.constant dense<0.000000e+00> : vector<16xf32>
    %194 = vector.multi_reduction <add>, %193, %cst_74 [1] : vector<16x32xf32> to vector<16xf32>
    %195 = vector.shape_cast %194 : vector<16xf32> to vector<16x1xf32>
    %196 = vector.broadcast %195 : vector<16x1xf32> to vector<16x32xf32>
    %197 = arith.divf %193, %196 : vector<16x32xf32>
    %198 = vector.extract_strided_slice %182 {offsets = [0, 0], sizes = [32, 8], strides = [1, 1]} : vector<32x32xf32> to vector<32x8xf32>
    %cst_75 = arith.constant dense<0.000000e+00> : vector<16x8xf32>
    %199 = tpu.matmul %197, %198, %cst_75 {dimension_numbers = #tpu.dot_dimension_numbers<[1], [0], [0], [1], [0, 0, 1, 1], [], []>} : vector<16x32xf32>, vector<32x8xf32>, vector<16x8xf32> -> vector<16x8xf32>
    %200 = vector.extract_strided_slice %171 {offsets = [0, 8], sizes = [16, 8], strides = [1, 1]} : vector<16x32xf32> to vector<16x8xf32>
    %201 = vector.extract_strided_slice %177 {offsets = [0, 8], sizes = [32, 8], strides = [1, 1]} : vector<32x32xf32> to vector<32x8xf32>
    %cst_76 = arith.constant dense<0.000000e+00> : vector<16x32xf32>
    %202 = tpu.matmul %200, %201, %cst_76 {dimension_numbers = #tpu.dot_dimension_numbers<[1], [1], [0], [0], [0, 0, 1, 0], [], []>} : vector<16x8xf32>, vector<32x8xf32>, vector<16x32xf32> -> vector<16x32xf32>
    %203 = arith.addf %202, %57 : vector<16x32xf32>
    %cst_77 = arith.constant dense<0xFF800000> : vector<16xf32>
    %204 = vector.multi_reduction <maximumf>, %203, %cst_77 [1] : vector<16x32xf32> to vector<16xf32>
    %205 = vector.shape_cast %204 : vector<16xf32> to vector<16x1xf32>
    %206 = vector.broadcast %205 : vector<16x1xf32> to vector<16x32xf32>
    %207 = arith.subf %203, %206 : vector<16x32xf32>
    %208 = math.exp %207 : vector<16x32xf32>
    %cst_78 = arith.constant dense<0.000000e+00> : vector<16xf32>
    %209 = vector.multi_reduction <add>, %208, %cst_78 [1] : vector<16x32xf32> to vector<16xf32>
    %210 = vector.shape_cast %209 : vector<16xf32> to vector<16x1xf32>
    %211 = vector.broadcast %210 : vector<16x1xf32> to vector<16x32xf32>
    %212 = arith.divf %208, %211 : vector<16x32xf32>
    %213 = vector.extract_strided_slice %182 {offsets = [0, 8], sizes = [32, 8], strides = [1, 1]} : vector<32x32xf32> to vector<32x8xf32>
    %cst_79 = arith.constant dense<0.000000e+00> : vector<16x8xf32>
    %214 = tpu.matmul %212, %213, %cst_79 {dimension_numbers = #tpu.dot_dimension_numbers<[1], [0], [0], [1], [0, 0, 1, 1], [], []>} : vector<16x32xf32>, vector<32x8xf32>, vector<16x8xf32> -> vector<16x8xf32>
    %215 = vector.extract_strided_slice %171 {offsets = [0, 16], sizes = [16, 8], strides = [1, 1]} : vector<16x32xf32> to vector<16x8xf32>
    %216 = vector.extract_strided_slice %177 {offsets = [0, 16], sizes = [32, 8], strides = [1, 1]} : vector<32x32xf32> to vector<32x8xf32>
    %cst_80 = arith.constant dense<0.000000e+00> : vector<16x32xf32>
    %217 = tpu.matmul %215, %216, %cst_80 {dimension_numbers = #tpu.dot_dimension_numbers<[1], [1], [0], [0], [0, 0, 1, 0], [], []>} : vector<16x8xf32>, vector<32x8xf32>, vector<16x32xf32> -> vector<16x32xf32>
    %218 = arith.addf %217, %57 : vector<16x32xf32>
    %cst_81 = arith.constant dense<0xFF800000> : vector<16xf32>
    %219 = vector.multi_reduction <maximumf>, %218, %cst_81 [1] : vector<16x32xf32> to vector<16xf32>
    %220 = vector.shape_cast %219 : vector<16xf32> to vector<16x1xf32>
    %221 = vector.broadcast %220 : vector<16x1xf32> to vector<16x32xf32>
    %222 = arith.subf %218, %221 : vector<16x32xf32>
    %223 = math.exp %222 : vector<16x32xf32>
    %cst_82 = arith.constant dense<0.000000e+00> : vector<16xf32>
    %224 = vector.multi_reduction <add>, %223, %cst_82 [1] : vector<16x32xf32> to vector<16xf32>
    %225 = vector.shape_cast %224 : vector<16xf32> to vector<16x1xf32>
    %226 = vector.broadcast %225 : vector<16x1xf32> to vector<16x32xf32>
    %227 = arith.divf %223, %226 : vector<16x32xf32>
    %228 = vector.extract_strided_slice %182 {offsets = [0, 16], sizes = [32, 8], strides = [1, 1]} : vector<32x32xf32> to vector<32x8xf32>
    %cst_83 = arith.constant dense<0.000000e+00> : vector<16x8xf32>
    %229 = tpu.matmul %227, %228, %cst_83 {dimension_numbers = #tpu.dot_dimension_numbers<[1], [0], [0], [1], [0, 0, 1, 1], [], []>} : vector<16x32xf32>, vector<32x8xf32>, vector<16x8xf32> -> vector<16x8xf32>
    %230 = vector.extract_strided_slice %171 {offsets = [0, 24], sizes = [16, 8], strides = [1, 1]} : vector<16x32xf32> to vector<16x8xf32>
    %231 = vector.extract_strided_slice %177 {offsets = [0, 24], sizes = [32, 8], strides = [1, 1]} : vector<32x32xf32> to vector<32x8xf32>
    %cst_84 = arith.constant dense<0.000000e+00> : vector<16x32xf32>
    %232 = tpu.matmul %230, %231, %cst_84 {dimension_numbers = #tpu.dot_dimension_numbers<[1], [1], [0], [0], [0, 0, 1, 0], [], []>} : vector<16x8xf32>, vector<32x8xf32>, vector<16x32xf32> -> vector<16x32xf32>
    %233 = arith.addf %232, %57 : vector<16x32xf32>
    %cst_85 = arith.constant dense<0xFF800000> : vector<16xf32>
    %234 = vector.multi_reduction <maximumf>, %233, %cst_85 [1] : vector<16x32xf32> to vector<16xf32>
    %235 = vector.shape_cast %234 : vector<16xf32> to vector<16x1xf32>
    %236 = vector.broadcast %235 : vector<16x1xf32> to vector<16x32xf32>
    %237 = arith.subf %233, %236 : vector<16x32xf32>
    %238 = math.exp %237 : vector<16x32xf32>
    %cst_86 = arith.constant dense<0.000000e+00> : vector<16xf32>
    %239 = vector.multi_reduction <add>, %238, %cst_86 [1] : vector<16x32xf32> to vector<16xf32>
    %240 = vector.shape_cast %239 : vector<16xf32> to vector<16x1xf32>
    %241 = vector.broadcast %240 : vector<16x1xf32> to vector<16x32xf32>
    %242 = arith.divf %238, %241 : vector<16x32xf32>
    %243 = vector.extract_strided_slice %182 {offsets = [0, 24], sizes = [32, 8], strides = [1, 1]} : vector<32x32xf32> to vector<32x8xf32>
    %cst_87 = arith.constant dense<0.000000e+00> : vector<16x8xf32>
    %244 = tpu.matmul %242, %243, %cst_87 {dimension_numbers = #tpu.dot_dimension_numbers<[1], [0], [0], [1], [0, 0, 1, 1], [], []>} : vector<16x32xf32>, vector<32x8xf32>, vector<16x8xf32> -> vector<16x8xf32>
    %245 = tpu.concatenate %199, %214, %229, %244 in 1 : vector<16x8xf32>, vector<16x8xf32>, vector<16x8xf32>, vector<16x8xf32> -> vector<16x32xf32>
    %cst_88 = arith.constant dense<0.000000e+00> : vector<16x32xf32>
    %246 = tpu.matmul %245, %183, %cst_88 {dimension_numbers = #tpu.dot_dimension_numbers<[1], [0], [0], [1], [0, 0, 1, 1], [], []>} : vector<16x32xf32>, vector<32x32xf32>, vector<16x32xf32> -> vector<16x32xf32>
    %247 = vector.broadcast %184 : vector<1x32xf32> to vector<16x32xf32>
    %248 = arith.addf %246, %247 : vector<16x32xf32>
    %249 = arith.addf %161, %248 : vector<16x32xf32>
    %c11 = arith.constant 11 : index
    %c0_89 = arith.constant 0 : index
    %250 = vector.load %arg5[%c11, %c0_89] : memref<32x64xf32, #tpu.memory_space<vmem>>, vector<1x32xf32>
    %c12 = arith.constant 12 : index
    %c0_90 = arith.constant 0 : index
    %251 = vector.load %arg5[%c12, %c0_90] : memref<32x64xf32, #tpu.memory_space<vmem>>, vector<1x32xf32>
    %cst_91 = arith.constant dense<0.000000e+00> : vector<16xf32>
    %252 = vector.multi_reduction <add>, %249, %cst_91 [1] : vector<16x32xf32> to vector<16xf32>
    %253 = vector.shape_cast %252 : vector<16xf32> to vector<16x1xf32>
    %cst_92 = arith.constant 3.200000e+01 : f32
    %254 = vector.broadcast %cst_92 : f32 to vector<16x1xf32>
    %255 = arith.divf %253, %254 : vector<16x1xf32>
    %256 = vector.broadcast %255 : vector<16x1xf32> to vector<16x32xf32>
    %257 = arith.subf %249, %256 : vector<16x32xf32>
    %258 = arith.mulf %257, %257 : vector<16x32xf32>
    %cst_93 = arith.constant dense<0.000000e+00> : vector<16xf32>
    %259 = vector.multi_reduction <add>, %258, %cst_93 [1] : vector<16x32xf32> to vector<16xf32>
    %260 = vector.shape_cast %259 : vector<16xf32> to vector<16x1xf32>
    %cst_94 = arith.constant 3.200000e+01 : f32
    %261 = vector.broadcast %cst_94 : f32 to vector<16x1xf32>
    %262 = arith.divf %260, %261 : vector<16x1xf32>
    %cst_95 = arith.constant 9.99999974E-6 : f32
    %263 = vector.broadcast %cst_95 : f32 to vector<16x1xf32>
    %264 = arith.addf %262, %263 : vector<16x1xf32>
    %265 = math.rsqrt %264 : vector<16x1xf32>
    %266 = vector.broadcast %265 : vector<16x1xf32> to vector<16x32xf32>
    %267 = arith.mulf %257, %266 : vector<16x32xf32>
    %268 = vector.broadcast %250 : vector<1x32xf32> to vector<16x32xf32>
    %269 = arith.mulf %267, %268 : vector<16x32xf32>
    %270 = vector.broadcast %251 : vector<1x32xf32> to vector<16x32xf32>
    %271 = arith.addf %269, %270 : vector<16x32xf32>
    %c128 = arith.constant 128 : index
    %c0_96 = arith.constant 0 : index
    %272 = vector.load %arg4[%c128, %c0_96] : memref<448x64xf32, #tpu.memory_space<vmem>>, vector<32x64xf32>
    %cst_97 = arith.constant dense<0.000000e+00> : vector<16x64xf32>
    %273 = tpu.matmul %271, %272, %cst_97 {dimension_numbers = #tpu.dot_dimension_numbers<[1], [0], [0], [1], [0, 0, 1, 1], [], []>} : vector<16x32xf32>, vector<32x64xf32>, vector<16x64xf32> -> vector<16x64xf32>
    %c7 = arith.constant 7 : index
    %c0_98 = arith.constant 0 : index
    %274 = vector.load %arg5[%c7, %c0_98] : memref<32x64xf32, #tpu.memory_space<vmem>>, vector<1x64xf32>
    %275 = vector.broadcast %274 : vector<1x64xf32> to vector<16x64xf32>
    %276 = arith.addf %273, %275 : vector<16x64xf32>
    %cst_99 = arith.constant 0.000000e+00 : f32
    %277 = vector.broadcast %cst_99 : f32 to vector<16x64xf32>
    %278 = arith.maximumf %276, %277 : vector<16x64xf32>
    %c160 = arith.constant 160 : index
    %c0_100 = arith.constant 0 : index
    %279 = vector.load %arg4[%c160, %c0_100] : memref<448x64xf32, #tpu.memory_space<vmem>>, vector<64x32xf32>
    %cst_101 = arith.constant dense<0.000000e+00> : vector<16x32xf32>
    %280 = tpu.matmul %278, %279, %cst_101 {dimension_numbers = #tpu.dot_dimension_numbers<[1], [0], [0], [1], [0, 0, 1, 1], [], []>} : vector<16x64xf32>, vector<64x32xf32>, vector<16x32xf32> -> vector<16x32xf32>
    %c8 = arith.constant 8 : index
    %c0_102 = arith.constant 0 : index
    %281 = vector.load %arg5[%c8, %c0_102] : memref<32x64xf32, #tpu.memory_space<vmem>>, vector<1x32xf32>
    %282 = vector.broadcast %281 : vector<1x32xf32> to vector<16x32xf32>
    %283 = arith.addf %280, %282 : vector<16x32xf32>
    %284 = arith.addf %271, %283 : vector<16x32xf32>
    %c13 = arith.constant 13 : index
    %c0_103 = arith.constant 0 : index
    %285 = vector.load %arg5[%c13, %c0_103] : memref<32x64xf32, #tpu.memory_space<vmem>>, vector<1x32xf32>
    %c14 = arith.constant 14 : index
    %c0_104 = arith.constant 0 : index
    %286 = vector.load %arg5[%c14, %c0_104] : memref<32x64xf32, #tpu.memory_space<vmem>>, vector<1x32xf32>
    %cst_105 = arith.constant dense<0.000000e+00> : vector<16xf32>
    %287 = vector.multi_reduction <add>, %284, %cst_105 [1] : vector<16x32xf32> to vector<16xf32>
    %288 = vector.shape_cast %287 : vector<16xf32> to vector<16x1xf32>
    %cst_106 = arith.constant 3.200000e+01 : f32
    %289 = vector.broadcast %cst_106 : f32 to vector<16x1xf32>
    %290 = arith.divf %288, %289 : vector<16x1xf32>
    %291 = vector.broadcast %290 : vector<16x1xf32> to vector<16x32xf32>
    %292 = arith.subf %284, %291 : vector<16x32xf32>
    %293 = arith.mulf %292, %292 : vector<16x32xf32>
    %cst_107 = arith.constant dense<0.000000e+00> : vector<16xf32>
    %294 = vector.multi_reduction <add>, %293, %cst_107 [1] : vector<16x32xf32> to vector<16xf32>
    %295 = vector.shape_cast %294 : vector<16xf32> to vector<16x1xf32>
    %cst_108 = arith.constant 3.200000e+01 : f32
    %296 = vector.broadcast %cst_108 : f32 to vector<16x1xf32>
    %297 = arith.divf %295, %296 : vector<16x1xf32>
    %cst_109 = arith.constant 9.99999974E-6 : f32
    %298 = vector.broadcast %cst_109 : f32 to vector<16x1xf32>
    %299 = arith.addf %297, %298 : vector<16x1xf32>
    %300 = math.rsqrt %299 : vector<16x1xf32>
    %301 = vector.broadcast %300 : vector<16x1xf32> to vector<16x32xf32>
    %302 = arith.mulf %292, %301 : vector<16x32xf32>
    %303 = vector.broadcast %285 : vector<1x32xf32> to vector<16x32xf32>
    %304 = arith.mulf %302, %303 : vector<16x32xf32>
    %305 = vector.broadcast %286 : vector<1x32xf32> to vector<16x32xf32>
    %306 = arith.addf %304, %305 : vector<16x32xf32>
    %307 = arith.addf %306, %1 : vector<16x32xf32>
    %c224 = arith.constant 224 : index
    %c0_110 = arith.constant 0 : index
    %308 = vector.load %arg4[%c224, %c0_110] : memref<448x64xf32, #tpu.memory_space<vmem>>, vector<32x64xf32>
    %cst_111 = arith.constant dense<0.000000e+00> : vector<16x64xf32>
    %309 = tpu.matmul %307, %308, %cst_111 {dimension_numbers = #tpu.dot_dimension_numbers<[1], [0], [0], [1], [0, 0, 1, 1], [], []>} : vector<16x32xf32>, vector<32x64xf32>, vector<16x64xf32> -> vector<16x64xf32>
    %c16 = arith.constant 16 : index
    %c0_112 = arith.constant 0 : index
    %310 = vector.load %arg5[%c16, %c0_112] : memref<32x64xf32, #tpu.memory_space<vmem>>, vector<1x64xf32>
    %311 = vector.broadcast %310 : vector<1x64xf32> to vector<16x64xf32>
    %312 = arith.addf %309, %311 : vector<16x64xf32>
    %313 = vector.extract_strided_slice %312 {offsets = [0, 0], sizes = [16, 32], strides = [1, 1]} : vector<16x64xf32> to vector<16x32xf32>
    %cst_113 = arith.constant 0.353553385 : f32
    %314 = vector.broadcast %cst_113 : f32 to vector<16x32xf32>
    %315 = arith.mulf %313, %314 : vector<16x32xf32>
    %316 = vector.extract_strided_slice %312 {offsets = [0, 32], sizes = [16, 32], strides = [1, 1]} : vector<16x64xf32> to vector<16x32xf32>
    %c256 = arith.constant 256 : index
    %c0_114 = arith.constant 0 : index
    %317 = vector.load %arg4[%c256, %c0_114] : memref<448x64xf32, #tpu.memory_space<vmem>>, vector<32x32xf32>
    %cst_115 = arith.constant dense<0.000000e+00> : vector<16x32xf32>
    %318 = tpu.matmul %306, %317, %cst_115 {dimension_numbers = #tpu.dot_dimension_numbers<[1], [0], [0], [1], [0, 0, 1, 1], [], []>} : vector<16x32xf32>, vector<32x32xf32>, vector<16x32xf32> -> vector<16x32xf32>
    %c17 = arith.constant 17 : index
    %c0_116 = arith.constant 0 : index
    %319 = vector.load %arg5[%c17, %c0_116] : memref<32x64xf32, #tpu.memory_space<vmem>>, vector<1x32xf32>
    %320 = vector.broadcast %319 : vector<1x32xf32> to vector<16x32xf32>
    %321 = arith.addf %318, %320 : vector<16x32xf32>
    %c256_117 = arith.constant 256 : index
    %c32_118 = arith.constant 32 : index
    %322 = vector.load %arg4[%c256_117, %c32_118] : memref<448x64xf32, #tpu.memory_space<vmem>>, vector<32x32xf32>
    %c18 = arith.constant 18 : index
    %c0_119 = arith.constant 0 : index
    %323 = vector.load %arg5[%c18, %c0_119] : memref<32x64xf32, #tpu.memory_space<vmem>>, vector<1x32xf32>
    %324 = vector.extract_strided_slice %315 {offsets = [0, 0], sizes = [16, 8], strides = [1, 1]} : vector<16x32xf32> to vector<16x8xf32>
    %325 = vector.extract_strided_slice %316 {offsets = [0, 0], sizes = [16, 8], strides = [1, 1]} : vector<16x32xf32> to vector<16x8xf32>
    %cst_120 = arith.constant dense<0.000000e+00> : vector<16x16xf32>
    %326 = tpu.matmul %324, %325, %cst_120 {dimension_numbers = #tpu.dot_dimension_numbers<[1], [1], [0], [0], [0, 0, 1, 0], [], []>} : vector<16x8xf32>, vector<16x8xf32>, vector<16x16xf32> -> vector<16x16xf32>
    %327 = arith.addf %326, %29 : vector<16x16xf32>
    %cst_121 = arith.constant dense<0xFF800000> : vector<16xf32>
    %328 = vector.multi_reduction <maximumf>, %327, %cst_121 [1] : vector<16x16xf32> to vector<16xf32>
    %329 = vector.shape_cast %328 : vector<16xf32> to vector<16x1xf32>
    %330 = vector.broadcast %329 : vector<16x1xf32> to vector<16x16xf32>
    %331 = arith.subf %327, %330 : vector<16x16xf32>
    %332 = math.exp %331 : vector<16x16xf32>
    %cst_122 = arith.constant dense<0.000000e+00> : vector<16xf32>
    %333 = vector.multi_reduction <add>, %332, %cst_122 [1] : vector<16x16xf32> to vector<16xf32>
    %334 = vector.shape_cast %333 : vector<16xf32> to vector<16x1xf32>
    %335 = vector.broadcast %334 : vector<16x1xf32> to vector<16x16xf32>
    %336 = arith.divf %332, %335 : vector<16x16xf32>
    %337 = vector.extract_strided_slice %321 {offsets = [0, 0], sizes = [16, 8], strides = [1, 1]} : vector<16x32xf32> to vector<16x8xf32>
    %cst_123 = arith.constant dense<0.000000e+00> : vector<16x8xf32>
    %338 = tpu.matmul %336, %337, %cst_123 {dimension_numbers = #tpu.dot_dimension_numbers<[1], [0], [0], [1], [0, 0, 1, 1], [], []>} : vector<16x16xf32>, vector<16x8xf32>, vector<16x8xf32> -> vector<16x8xf32>
    %339 = vector.extract_strided_slice %315 {offsets = [0, 8], sizes = [16, 8], strides = [1, 1]} : vector<16x32xf32> to vector<16x8xf32>
    %340 = vector.extract_strided_slice %316 {offsets = [0, 8], sizes = [16, 8], strides = [1, 1]} : vector<16x32xf32> to vector<16x8xf32>
    %cst_124 = arith.constant dense<0.000000e+00> : vector<16x16xf32>
    %341 = tpu.matmul %339, %340, %cst_124 {dimension_numbers = #tpu.dot_dimension_numbers<[1], [1], [0], [0], [0, 0, 1, 0], [], []>} : vector<16x8xf32>, vector<16x8xf32>, vector<16x16xf32> -> vector<16x16xf32>
    %342 = arith.addf %341, %29 : vector<16x16xf32>
    %cst_125 = arith.constant dense<0xFF800000> : vector<16xf32>
    %343 = vector.multi_reduction <maximumf>, %342, %cst_125 [1] : vector<16x16xf32> to vector<16xf32>
    %344 = vector.shape_cast %343 : vector<16xf32> to vector<16x1xf32>
    %345 = vector.broadcast %344 : vector<16x1xf32> to vector<16x16xf32>
    %346 = arith.subf %342, %345 : vector<16x16xf32>
    %347 = math.exp %346 : vector<16x16xf32>
    %cst_126 = arith.constant dense<0.000000e+00> : vector<16xf32>
    %348 = vector.multi_reduction <add>, %347, %cst_126 [1] : vector<16x16xf32> to vector<16xf32>
    %349 = vector.shape_cast %348 : vector<16xf32> to vector<16x1xf32>
    %350 = vector.broadcast %349 : vector<16x1xf32> to vector<16x16xf32>
    %351 = arith.divf %347, %350 : vector<16x16xf32>
    %352 = vector.extract_strided_slice %321 {offsets = [0, 8], sizes = [16, 8], strides = [1, 1]} : vector<16x32xf32> to vector<16x8xf32>
    %cst_127 = arith.constant dense<0.000000e+00> : vector<16x8xf32>
    %353 = tpu.matmul %351, %352, %cst_127 {dimension_numbers = #tpu.dot_dimension_numbers<[1], [0], [0], [1], [0, 0, 1, 1], [], []>} : vector<16x16xf32>, vector<16x8xf32>, vector<16x8xf32> -> vector<16x8xf32>
    %354 = vector.extract_strided_slice %315 {offsets = [0, 16], sizes = [16, 8], strides = [1, 1]} : vector<16x32xf32> to vector<16x8xf32>
    %355 = vector.extract_strided_slice %316 {offsets = [0, 16], sizes = [16, 8], strides = [1, 1]} : vector<16x32xf32> to vector<16x8xf32>
    %cst_128 = arith.constant dense<0.000000e+00> : vector<16x16xf32>
    %356 = tpu.matmul %354, %355, %cst_128 {dimension_numbers = #tpu.dot_dimension_numbers<[1], [1], [0], [0], [0, 0, 1, 0], [], []>} : vector<16x8xf32>, vector<16x8xf32>, vector<16x16xf32> -> vector<16x16xf32>
    %357 = arith.addf %356, %29 : vector<16x16xf32>
    %cst_129 = arith.constant dense<0xFF800000> : vector<16xf32>
    %358 = vector.multi_reduction <maximumf>, %357, %cst_129 [1] : vector<16x16xf32> to vector<16xf32>
    %359 = vector.shape_cast %358 : vector<16xf32> to vector<16x1xf32>
    %360 = vector.broadcast %359 : vector<16x1xf32> to vector<16x16xf32>
    %361 = arith.subf %357, %360 : vector<16x16xf32>
    %362 = math.exp %361 : vector<16x16xf32>
    %cst_130 = arith.constant dense<0.000000e+00> : vector<16xf32>
    %363 = vector.multi_reduction <add>, %362, %cst_130 [1] : vector<16x16xf32> to vector<16xf32>
    %364 = vector.shape_cast %363 : vector<16xf32> to vector<16x1xf32>
    %365 = vector.broadcast %364 : vector<16x1xf32> to vector<16x16xf32>
    %366 = arith.divf %362, %365 : vector<16x16xf32>
    %367 = vector.extract_strided_slice %321 {offsets = [0, 16], sizes = [16, 8], strides = [1, 1]} : vector<16x32xf32> to vector<16x8xf32>
    %cst_131 = arith.constant dense<0.000000e+00> : vector<16x8xf32>
    %368 = tpu.matmul %366, %367, %cst_131 {dimension_numbers = #tpu.dot_dimension_numbers<[1], [0], [0], [1], [0, 0, 1, 1], [], []>} : vector<16x16xf32>, vector<16x8xf32>, vector<16x8xf32> -> vector<16x8xf32>
    %369 = vector.extract_strided_slice %315 {offsets = [0, 24], sizes = [16, 8], strides = [1, 1]} : vector<16x32xf32> to vector<16x8xf32>
    %370 = vector.extract_strided_slice %316 {offsets = [0, 24], sizes = [16, 8], strides = [1, 1]} : vector<16x32xf32> to vector<16x8xf32>
    %cst_132 = arith.constant dense<0.000000e+00> : vector<16x16xf32>
    %371 = tpu.matmul %369, %370, %cst_132 {dimension_numbers = #tpu.dot_dimension_numbers<[1], [1], [0], [0], [0, 0, 1, 0], [], []>} : vector<16x8xf32>, vector<16x8xf32>, vector<16x16xf32> -> vector<16x16xf32>
    %372 = arith.addf %371, %29 : vector<16x16xf32>
    %cst_133 = arith.constant dense<0xFF800000> : vector<16xf32>
    %373 = vector.multi_reduction <maximumf>, %372, %cst_133 [1] : vector<16x16xf32> to vector<16xf32>
    %374 = vector.shape_cast %373 : vector<16xf32> to vector<16x1xf32>
    %375 = vector.broadcast %374 : vector<16x1xf32> to vector<16x16xf32>
    %376 = arith.subf %372, %375 : vector<16x16xf32>
    %377 = math.exp %376 : vector<16x16xf32>
    %cst_134 = arith.constant dense<0.000000e+00> : vector<16xf32>
    %378 = vector.multi_reduction <add>, %377, %cst_134 [1] : vector<16x16xf32> to vector<16xf32>
    %379 = vector.shape_cast %378 : vector<16xf32> to vector<16x1xf32>
    %380 = vector.broadcast %379 : vector<16x1xf32> to vector<16x16xf32>
    %381 = arith.divf %377, %380 : vector<16x16xf32>
    %382 = vector.extract_strided_slice %321 {offsets = [0, 24], sizes = [16, 8], strides = [1, 1]} : vector<16x32xf32> to vector<16x8xf32>
    %cst_135 = arith.constant dense<0.000000e+00> : vector<16x8xf32>
    %383 = tpu.matmul %381, %382, %cst_135 {dimension_numbers = #tpu.dot_dimension_numbers<[1], [0], [0], [1], [0, 0, 1, 1], [], []>} : vector<16x16xf32>, vector<16x8xf32>, vector<16x8xf32> -> vector<16x8xf32>
    %384 = tpu.concatenate %338, %353, %368, %383 in 1 : vector<16x8xf32>, vector<16x8xf32>, vector<16x8xf32>, vector<16x8xf32> -> vector<16x32xf32>
    %cst_136 = arith.constant dense<0.000000e+00> : vector<16x32xf32>
    %385 = tpu.matmul %384, %322, %cst_136 {dimension_numbers = #tpu.dot_dimension_numbers<[1], [0], [0], [1], [0, 0, 1, 1], [], []>} : vector<16x32xf32>, vector<32x32xf32>, vector<16x32xf32> -> vector<16x32xf32>
    %386 = vector.broadcast %323 : vector<1x32xf32> to vector<16x32xf32>
    %387 = arith.addf %385, %386 : vector<16x32xf32>
    %388 = arith.addf %306, %387 : vector<16x32xf32>
    %c25 = arith.constant 25 : index
    %c0_137 = arith.constant 0 : index
    %389 = vector.load %arg5[%c25, %c0_137] : memref<32x64xf32, #tpu.memory_space<vmem>>, vector<1x32xf32>
    %c26 = arith.constant 26 : index
    %c0_138 = arith.constant 0 : index
    %390 = vector.load %arg5[%c26, %c0_138] : memref<32x64xf32, #tpu.memory_space<vmem>>, vector<1x32xf32>
    %cst_139 = arith.constant dense<0.000000e+00> : vector<16xf32>
    %391 = vector.multi_reduction <add>, %388, %cst_139 [1] : vector<16x32xf32> to vector<16xf32>
    %392 = vector.shape_cast %391 : vector<16xf32> to vector<16x1xf32>
    %cst_140 = arith.constant 3.200000e+01 : f32
    %393 = vector.broadcast %cst_140 : f32 to vector<16x1xf32>
    %394 = arith.divf %392, %393 : vector<16x1xf32>
    %395 = vector.broadcast %394 : vector<16x1xf32> to vector<16x32xf32>
    %396 = arith.subf %388, %395 : vector<16x32xf32>
    %397 = arith.mulf %396, %396 : vector<16x32xf32>
    %cst_141 = arith.constant dense<0.000000e+00> : vector<16xf32>
    %398 = vector.multi_reduction <add>, %397, %cst_141 [1] : vector<16x32xf32> to vector<16xf32>
    %399 = vector.shape_cast %398 : vector<16xf32> to vector<16x1xf32>
    %cst_142 = arith.constant 3.200000e+01 : f32
    %400 = vector.broadcast %cst_142 : f32 to vector<16x1xf32>
    %401 = arith.divf %399, %400 : vector<16x1xf32>
    %cst_143 = arith.constant 9.99999974E-6 : f32
    %402 = vector.broadcast %cst_143 : f32 to vector<16x1xf32>
    %403 = arith.addf %401, %402 : vector<16x1xf32>
    %404 = math.rsqrt %403 : vector<16x1xf32>
    %405 = vector.broadcast %404 : vector<16x1xf32> to vector<16x32xf32>
    %406 = arith.mulf %396, %405 : vector<16x32xf32>
    %407 = vector.broadcast %389 : vector<1x32xf32> to vector<16x32xf32>
    %408 = arith.mulf %406, %407 : vector<16x32xf32>
    %409 = vector.broadcast %390 : vector<1x32xf32> to vector<16x32xf32>
    %410 = arith.addf %408, %409 : vector<16x32xf32>
    %c32_144 = arith.constant 32 : index
    %c0_145 = arith.constant 0 : index
    %411 = vector.load %arg2[%c32_144, %c0_145] : memref<64x32xf32, #tpu.memory_space<vmem>>, vector<32x32xf32>
    %c32_146 = arith.constant 32 : index
    %c0_147 = arith.constant 0 : index
    %412 = vector.load %arg3[%c32_146, %c0_147] : memref<64x32xf32, #tpu.memory_space<vmem>>, vector<32x32xf32>
    %413 = arith.addf %410, %1 : vector<16x32xf32>
    %c288 = arith.constant 288 : index
    %c0_148 = arith.constant 0 : index
    %414 = vector.load %arg4[%c288, %c0_148] : memref<448x64xf32, #tpu.memory_space<vmem>>, vector<32x32xf32>
    %cst_149 = arith.constant dense<0.000000e+00> : vector<16x32xf32>
    %415 = tpu.matmul %413, %414, %cst_149 {dimension_numbers = #tpu.dot_dimension_numbers<[1], [0], [0], [1], [0, 0, 1, 1], [], []>} : vector<16x32xf32>, vector<32x32xf32>, vector<16x32xf32> -> vector<16x32xf32>
    %c19 = arith.constant 19 : index
    %c0_150 = arith.constant 0 : index
    %416 = vector.load %arg5[%c19, %c0_150] : memref<32x64xf32, #tpu.memory_space<vmem>>, vector<1x32xf32>
    %417 = vector.broadcast %416 : vector<1x32xf32> to vector<16x32xf32>
    %418 = arith.addf %415, %417 : vector<16x32xf32>
    %cst_151 = arith.constant 0.353553385 : f32
    %419 = vector.broadcast %cst_151 : f32 to vector<16x32xf32>
    %420 = arith.mulf %418, %419 : vector<16x32xf32>
    %421 = arith.addf %411, %412 : vector<32x32xf32>
    %c288_152 = arith.constant 288 : index
    %c32_153 = arith.constant 32 : index
    %422 = vector.load %arg4[%c288_152, %c32_153] : memref<448x64xf32, #tpu.memory_space<vmem>>, vector<32x32xf32>
    %cst_154 = arith.constant dense<0.000000e+00> : vector<32x32xf32>
    %423 = tpu.matmul %421, %422, %cst_154 {dimension_numbers = #tpu.dot_dimension_numbers<[1], [0], [0], [1], [0, 0, 1, 1], [], []>} : vector<32x32xf32>, vector<32x32xf32>, vector<32x32xf32> -> vector<32x32xf32>
    %c20 = arith.constant 20 : index
    %c0_155 = arith.constant 0 : index
    %424 = vector.load %arg5[%c20, %c0_155] : memref<32x64xf32, #tpu.memory_space<vmem>>, vector<1x32xf32>
    %425 = vector.broadcast %424 : vector<1x32xf32> to vector<32x32xf32>
    %426 = arith.addf %423, %425 : vector<32x32xf32>
    %c320 = arith.constant 320 : index
    %c0_156 = arith.constant 0 : index
    %427 = vector.load %arg4[%c320, %c0_156] : memref<448x64xf32, #tpu.memory_space<vmem>>, vector<32x32xf32>
    %cst_157 = arith.constant dense<0.000000e+00> : vector<32x32xf32>
    %428 = tpu.matmul %411, %427, %cst_157 {dimension_numbers = #tpu.dot_dimension_numbers<[1], [0], [0], [1], [0, 0, 1, 1], [], []>} : vector<32x32xf32>, vector<32x32xf32>, vector<32x32xf32> -> vector<32x32xf32>
    %c21 = arith.constant 21 : index
    %c0_158 = arith.constant 0 : index
    %429 = vector.load %arg5[%c21, %c0_158] : memref<32x64xf32, #tpu.memory_space<vmem>>, vector<1x32xf32>
    %430 = vector.broadcast %429 : vector<1x32xf32> to vector<32x32xf32>
    %431 = arith.addf %428, %430 : vector<32x32xf32>
    %c320_159 = arith.constant 320 : index
    %c32_160 = arith.constant 32 : index
    %432 = vector.load %arg4[%c320_159, %c32_160] : memref<448x64xf32, #tpu.memory_space<vmem>>, vector<32x32xf32>
    %c22 = arith.constant 22 : index
    %c0_161 = arith.constant 0 : index
    %433 = vector.load %arg5[%c22, %c0_161] : memref<32x64xf32, #tpu.memory_space<vmem>>, vector<1x32xf32>
    %434 = vector.extract_strided_slice %420 {offsets = [0, 0], sizes = [16, 8], strides = [1, 1]} : vector<16x32xf32> to vector<16x8xf32>
    %435 = vector.extract_strided_slice %426 {offsets = [0, 0], sizes = [32, 8], strides = [1, 1]} : vector<32x32xf32> to vector<32x8xf32>
    %cst_162 = arith.constant dense<0.000000e+00> : vector<16x32xf32>
    %436 = tpu.matmul %434, %435, %cst_162 {dimension_numbers = #tpu.dot_dimension_numbers<[1], [1], [0], [0], [0, 0, 1, 0], [], []>} : vector<16x8xf32>, vector<32x8xf32>, vector<16x32xf32> -> vector<16x32xf32>
    %437 = arith.addf %436, %57 : vector<16x32xf32>
    %cst_163 = arith.constant dense<0xFF800000> : vector<16xf32>
    %438 = vector.multi_reduction <maximumf>, %437, %cst_163 [1] : vector<16x32xf32> to vector<16xf32>
    %439 = vector.shape_cast %438 : vector<16xf32> to vector<16x1xf32>
    %440 = vector.broadcast %439 : vector<16x1xf32> to vector<16x32xf32>
    %441 = arith.subf %437, %440 : vector<16x32xf32>
    %442 = math.exp %441 : vector<16x32xf32>
    %cst_164 = arith.constant dense<0.000000e+00> : vector<16xf32>
    %443 = vector.multi_reduction <add>, %442, %cst_164 [1] : vector<16x32xf32> to vector<16xf32>
    %444 = vector.shape_cast %443 : vector<16xf32> to vector<16x1xf32>
    %445 = vector.broadcast %444 : vector<16x1xf32> to vector<16x32xf32>
    %446 = arith.divf %442, %445 : vector<16x32xf32>
    %447 = vector.extract_strided_slice %431 {offsets = [0, 0], sizes = [32, 8], strides = [1, 1]} : vector<32x32xf32> to vector<32x8xf32>
    %cst_165 = arith.constant dense<0.000000e+00> : vector<16x8xf32>
    %448 = tpu.matmul %446, %447, %cst_165 {dimension_numbers = #tpu.dot_dimension_numbers<[1], [0], [0], [1], [0, 0, 1, 1], [], []>} : vector<16x32xf32>, vector<32x8xf32>, vector<16x8xf32> -> vector<16x8xf32>
    %449 = vector.extract_strided_slice %420 {offsets = [0, 8], sizes = [16, 8], strides = [1, 1]} : vector<16x32xf32> to vector<16x8xf32>
    %450 = vector.extract_strided_slice %426 {offsets = [0, 8], sizes = [32, 8], strides = [1, 1]} : vector<32x32xf32> to vector<32x8xf32>
    %cst_166 = arith.constant dense<0.000000e+00> : vector<16x32xf32>
    %451 = tpu.matmul %449, %450, %cst_166 {dimension_numbers = #tpu.dot_dimension_numbers<[1], [1], [0], [0], [0, 0, 1, 0], [], []>} : vector<16x8xf32>, vector<32x8xf32>, vector<16x32xf32> -> vector<16x32xf32>
    %452 = arith.addf %451, %57 : vector<16x32xf32>
    %cst_167 = arith.constant dense<0xFF800000> : vector<16xf32>
    %453 = vector.multi_reduction <maximumf>, %452, %cst_167 [1] : vector<16x32xf32> to vector<16xf32>
    %454 = vector.shape_cast %453 : vector<16xf32> to vector<16x1xf32>
    %455 = vector.broadcast %454 : vector<16x1xf32> to vector<16x32xf32>
    %456 = arith.subf %452, %455 : vector<16x32xf32>
    %457 = math.exp %456 : vector<16x32xf32>
    %cst_168 = arith.constant dense<0.000000e+00> : vector<16xf32>
    %458 = vector.multi_reduction <add>, %457, %cst_168 [1] : vector<16x32xf32> to vector<16xf32>
    %459 = vector.shape_cast %458 : vector<16xf32> to vector<16x1xf32>
    %460 = vector.broadcast %459 : vector<16x1xf32> to vector<16x32xf32>
    %461 = arith.divf %457, %460 : vector<16x32xf32>
    %462 = vector.extract_strided_slice %431 {offsets = [0, 8], sizes = [32, 8], strides = [1, 1]} : vector<32x32xf32> to vector<32x8xf32>
    %cst_169 = arith.constant dense<0.000000e+00> : vector<16x8xf32>
    %463 = tpu.matmul %461, %462, %cst_169 {dimension_numbers = #tpu.dot_dimension_numbers<[1], [0], [0], [1], [0, 0, 1, 1], [], []>} : vector<16x32xf32>, vector<32x8xf32>, vector<16x8xf32> -> vector<16x8xf32>
    %464 = vector.extract_strided_slice %420 {offsets = [0, 16], sizes = [16, 8], strides = [1, 1]} : vector<16x32xf32> to vector<16x8xf32>
    %465 = vector.extract_strided_slice %426 {offsets = [0, 16], sizes = [32, 8], strides = [1, 1]} : vector<32x32xf32> to vector<32x8xf32>
    %cst_170 = arith.constant dense<0.000000e+00> : vector<16x32xf32>
    %466 = tpu.matmul %464, %465, %cst_170 {dimension_numbers = #tpu.dot_dimension_numbers<[1], [1], [0], [0], [0, 0, 1, 0], [], []>} : vector<16x8xf32>, vector<32x8xf32>, vector<16x32xf32> -> vector<16x32xf32>
    %467 = arith.addf %466, %57 : vector<16x32xf32>
    %cst_171 = arith.constant dense<0xFF800000> : vector<16xf32>
    %468 = vector.multi_reduction <maximumf>, %467, %cst_171 [1] : vector<16x32xf32> to vector<16xf32>
    %469 = vector.shape_cast %468 : vector<16xf32> to vector<16x1xf32>
    %470 = vector.broadcast %469 : vector<16x1xf32> to vector<16x32xf32>
    %471 = arith.subf %467, %470 : vector<16x32xf32>
    %472 = math.exp %471 : vector<16x32xf32>
    %cst_172 = arith.constant dense<0.000000e+00> : vector<16xf32>
    %473 = vector.multi_reduction <add>, %472, %cst_172 [1] : vector<16x32xf32> to vector<16xf32>
    %474 = vector.shape_cast %473 : vector<16xf32> to vector<16x1xf32>
    %475 = vector.broadcast %474 : vector<16x1xf32> to vector<16x32xf32>
    %476 = arith.divf %472, %475 : vector<16x32xf32>
    %477 = vector.extract_strided_slice %431 {offsets = [0, 16], sizes = [32, 8], strides = [1, 1]} : vector<32x32xf32> to vector<32x8xf32>
    %cst_173 = arith.constant dense<0.000000e+00> : vector<16x8xf32>
    %478 = tpu.matmul %476, %477, %cst_173 {dimension_numbers = #tpu.dot_dimension_numbers<[1], [0], [0], [1], [0, 0, 1, 1], [], []>} : vector<16x32xf32>, vector<32x8xf32>, vector<16x8xf32> -> vector<16x8xf32>
    %479 = vector.extract_strided_slice %420 {offsets = [0, 24], sizes = [16, 8], strides = [1, 1]} : vector<16x32xf32> to vector<16x8xf32>
    %480 = vector.extract_strided_slice %426 {offsets = [0, 24], sizes = [32, 8], strides = [1, 1]} : vector<32x32xf32> to vector<32x8xf32>
    %cst_174 = arith.constant dense<0.000000e+00> : vector<16x32xf32>
    %481 = tpu.matmul %479, %480, %cst_174 {dimension_numbers = #tpu.dot_dimension_numbers<[1], [1], [0], [0], [0, 0, 1, 0], [], []>} : vector<16x8xf32>, vector<32x8xf32>, vector<16x32xf32> -> vector<16x32xf32>
    %482 = arith.addf %481, %57 : vector<16x32xf32>
    %cst_175 = arith.constant dense<0xFF800000> : vector<16xf32>
    %483 = vector.multi_reduction <maximumf>, %482, %cst_175 [1] : vector<16x32xf32> to vector<16xf32>
    %484 = vector.shape_cast %483 : vector<16xf32> to vector<16x1xf32>
    %485 = vector.broadcast %484 : vector<16x1xf32> to vector<16x32xf32>
    %486 = arith.subf %482, %485 : vector<16x32xf32>
    %487 = math.exp %486 : vector<16x32xf32>
    %cst_176 = arith.constant dense<0.000000e+00> : vector<16xf32>
    %488 = vector.multi_reduction <add>, %487, %cst_176 [1] : vector<16x32xf32> to vector<16xf32>
    %489 = vector.shape_cast %488 : vector<16xf32> to vector<16x1xf32>
    %490 = vector.broadcast %489 : vector<16x1xf32> to vector<16x32xf32>
    %491 = arith.divf %487, %490 : vector<16x32xf32>
    %492 = vector.extract_strided_slice %431 {offsets = [0, 24], sizes = [32, 8], strides = [1, 1]} : vector<32x32xf32> to vector<32x8xf32>
    %cst_177 = arith.constant dense<0.000000e+00> : vector<16x8xf32>
    %493 = tpu.matmul %491, %492, %cst_177 {dimension_numbers = #tpu.dot_dimension_numbers<[1], [0], [0], [1], [0, 0, 1, 1], [], []>} : vector<16x32xf32>, vector<32x8xf32>, vector<16x8xf32> -> vector<16x8xf32>
    %494 = tpu.concatenate %448, %463, %478, %493 in 1 : vector<16x8xf32>, vector<16x8xf32>, vector<16x8xf32>, vector<16x8xf32> -> vector<16x32xf32>
    %cst_178 = arith.constant dense<0.000000e+00> : vector<16x32xf32>
    %495 = tpu.matmul %494, %432, %cst_178 {dimension_numbers = #tpu.dot_dimension_numbers<[1], [0], [0], [1], [0, 0, 1, 1], [], []>} : vector<16x32xf32>, vector<32x32xf32>, vector<16x32xf32> -> vector<16x32xf32>
    %496 = vector.broadcast %433 : vector<1x32xf32> to vector<16x32xf32>
    %497 = arith.addf %495, %496 : vector<16x32xf32>
    %498 = arith.addf %410, %497 : vector<16x32xf32>
    %c27 = arith.constant 27 : index
    %c0_179 = arith.constant 0 : index
    %499 = vector.load %arg5[%c27, %c0_179] : memref<32x64xf32, #tpu.memory_space<vmem>>, vector<1x32xf32>
    %c28 = arith.constant 28 : index
    %c0_180 = arith.constant 0 : index
    %500 = vector.load %arg5[%c28, %c0_180] : memref<32x64xf32, #tpu.memory_space<vmem>>, vector<1x32xf32>
    %cst_181 = arith.constant dense<0.000000e+00> : vector<16xf32>
    %501 = vector.multi_reduction <add>, %498, %cst_181 [1] : vector<16x32xf32> to vector<16xf32>
    %502 = vector.shape_cast %501 : vector<16xf32> to vector<16x1xf32>
    %cst_182 = arith.constant 3.200000e+01 : f32
    %503 = vector.broadcast %cst_182 : f32 to vector<16x1xf32>
    %504 = arith.divf %502, %503 : vector<16x1xf32>
    %505 = vector.broadcast %504 : vector<16x1xf32> to vector<16x32xf32>
    %506 = arith.subf %498, %505 : vector<16x32xf32>
    %507 = arith.mulf %506, %506 : vector<16x32xf32>
    %cst_183 = arith.constant dense<0.000000e+00> : vector<16xf32>
    %508 = vector.multi_reduction <add>, %507, %cst_183 [1] : vector<16x32xf32> to vector<16xf32>
    %509 = vector.shape_cast %508 : vector<16xf32> to vector<16x1xf32>
    %cst_184 = arith.constant 3.200000e+01 : f32
    %510 = vector.broadcast %cst_184 : f32 to vector<16x1xf32>
    %511 = arith.divf %509, %510 : vector<16x1xf32>
    %cst_185 = arith.constant 9.99999974E-6 : f32
    %512 = vector.broadcast %cst_185 : f32 to vector<16x1xf32>
    %513 = arith.addf %511, %512 : vector<16x1xf32>
    %514 = math.rsqrt %513 : vector<16x1xf32>
    %515 = vector.broadcast %514 : vector<16x1xf32> to vector<16x32xf32>
    %516 = arith.mulf %506, %515 : vector<16x32xf32>
    %517 = vector.broadcast %499 : vector<1x32xf32> to vector<16x32xf32>
    %518 = arith.mulf %516, %517 : vector<16x32xf32>
    %519 = vector.broadcast %500 : vector<1x32xf32> to vector<16x32xf32>
    %520 = arith.addf %518, %519 : vector<16x32xf32>
    %c352 = arith.constant 352 : index
    %c0_186 = arith.constant 0 : index
    %521 = vector.load %arg4[%c352, %c0_186] : memref<448x64xf32, #tpu.memory_space<vmem>>, vector<32x64xf32>
    %cst_187 = arith.constant dense<0.000000e+00> : vector<16x64xf32>
    %522 = tpu.matmul %520, %521, %cst_187 {dimension_numbers = #tpu.dot_dimension_numbers<[1], [0], [0], [1], [0, 0, 1, 1], [], []>} : vector<16x32xf32>, vector<32x64xf32>, vector<16x64xf32> -> vector<16x64xf32>
    %c23 = arith.constant 23 : index
    %c0_188 = arith.constant 0 : index
    %523 = vector.load %arg5[%c23, %c0_188] : memref<32x64xf32, #tpu.memory_space<vmem>>, vector<1x64xf32>
    %524 = vector.broadcast %523 : vector<1x64xf32> to vector<16x64xf32>
    %525 = arith.addf %522, %524 : vector<16x64xf32>
    %cst_189 = arith.constant 0.000000e+00 : f32
    %526 = vector.broadcast %cst_189 : f32 to vector<16x64xf32>
    %527 = arith.maximumf %525, %526 : vector<16x64xf32>
    %c384 = arith.constant 384 : index
    %c0_190 = arith.constant 0 : index
    %528 = vector.load %arg4[%c384, %c0_190] : memref<448x64xf32, #tpu.memory_space<vmem>>, vector<64x32xf32>
    %cst_191 = arith.constant dense<0.000000e+00> : vector<16x32xf32>
    %529 = tpu.matmul %527, %528, %cst_191 {dimension_numbers = #tpu.dot_dimension_numbers<[1], [0], [0], [1], [0, 0, 1, 1], [], []>} : vector<16x64xf32>, vector<64x32xf32>, vector<16x32xf32> -> vector<16x32xf32>
    %c24 = arith.constant 24 : index
    %c0_192 = arith.constant 0 : index
    %530 = vector.load %arg5[%c24, %c0_192] : memref<32x64xf32, #tpu.memory_space<vmem>>, vector<1x32xf32>
    %531 = vector.broadcast %530 : vector<1x32xf32> to vector<16x32xf32>
    %532 = arith.addf %529, %531 : vector<16x32xf32>
    %533 = arith.addf %520, %532 : vector<16x32xf32>
    %c29 = arith.constant 29 : index
    %c0_193 = arith.constant 0 : index
    %534 = vector.load %arg5[%c29, %c0_193] : memref<32x64xf32, #tpu.memory_space<vmem>>, vector<1x32xf32>
    %c30 = arith.constant 30 : index
    %c0_194 = arith.constant 0 : index
    %535 = vector.load %arg5[%c30, %c0_194] : memref<32x64xf32, #tpu.memory_space<vmem>>, vector<1x32xf32>
    %cst_195 = arith.constant dense<0.000000e+00> : vector<16xf32>
    %536 = vector.multi_reduction <add>, %533, %cst_195 [1] : vector<16x32xf32> to vector<16xf32>
    %537 = vector.shape_cast %536 : vector<16xf32> to vector<16x1xf32>
    %cst_196 = arith.constant 3.200000e+01 : f32
    %538 = vector.broadcast %cst_196 : f32 to vector<16x1xf32>
    %539 = arith.divf %537, %538 : vector<16x1xf32>
    %540 = vector.broadcast %539 : vector<16x1xf32> to vector<16x32xf32>
    %541 = arith.subf %533, %540 : vector<16x32xf32>
    %542 = arith.mulf %541, %541 : vector<16x32xf32>
    %cst_197 = arith.constant dense<0.000000e+00> : vector<16xf32>
    %543 = vector.multi_reduction <add>, %542, %cst_197 [1] : vector<16x32xf32> to vector<16xf32>
    %544 = vector.shape_cast %543 : vector<16xf32> to vector<16x1xf32>
    %cst_198 = arith.constant 3.200000e+01 : f32
    %545 = vector.broadcast %cst_198 : f32 to vector<16x1xf32>
    %546 = arith.divf %544, %545 : vector<16x1xf32>
    %cst_199 = arith.constant 9.99999974E-6 : f32
    %547 = vector.broadcast %cst_199 : f32 to vector<16x1xf32>
    %548 = arith.addf %546, %547 : vector<16x1xf32>
    %549 = math.rsqrt %548 : vector<16x1xf32>
    %550 = vector.broadcast %549 : vector<16x1xf32> to vector<16x32xf32>
    %551 = arith.mulf %541, %550 : vector<16x32xf32>
    %552 = vector.broadcast %534 : vector<1x32xf32> to vector<16x32xf32>
    %553 = arith.mulf %551, %552 : vector<16x32xf32>
    %554 = vector.broadcast %535 : vector<1x32xf32> to vector<16x32xf32>
    %555 = arith.addf %553, %554 : vector<16x32xf32>
    %c0_200 = arith.constant 0 : index
    %c0_201 = arith.constant 0 : index
    %556 = vector.load %arg6[%c0_200, %c0_201] : memref<16x32xf32, #tpu.memory_space<vmem>>, vector<16x32xf32>
    tpu.vector_store %arg6[%c0_200, %c0_201], %555 {strides = array<i32>} : memref<16x32xf32, #tpu.memory_space<vmem>>, vector<16x32xf32>,
    return
  }
}

</mosaic_0001>

<bundles_post_ra>
// kernel: transformer_decoder_forward.1
= control target key start
LH: loop header
LB: loop body
LE: loop exit
PB: predicated region body
PF: predicated region fallthrough
CT: control target
= control target key end

     0   :  { %vm80_vm0 = vcmask 261120   ;;  %s3876_s22 = smov 88   ;;  %s3877_s23 = smov 96   ;;  %vm154_vm1 = vcmask 64512   ;;  %v30_v36 = vlaneseq  ;;  %v3883_v38 = vmov -1e+30   ;;  %s5184_s4 = inlined_call_operand.vmem [shape: f32[448,64], index: 4, kind: input, shape index: {}]   ;;  %s5185_s0 = inlined_call_operand.vmem [shape: f32[16,32], index: 0, kind: input, shape index: {}]   ;;  %s5186_s1 = inlined_call_operand.vmem [shape: f32[16,32], index: 1, kind: input, shape index: {}]   ;;  %s5187_s5 = inlined_call_operand.vmem [shape: f32[32,64], index: 5, kind: input, shape index: {}]   ;;  %s5188_s2 = inlined_call_operand.vmem [shape: f32[64,32], index: 2, kind: input, shape index: {}]   ;;  %s5189_s3 = inlined_call_operand.vmem [shape: f32[64,32], index: 3, kind: input, shape index: {}]   ;;  %s5190_s6 = inlined_call_operand.vmem [shape: f32[16,32], index: 6, kind: output, shape index: {}]  }
   0x1   :  { %v77_v0 = vld [vmem:[%s5184_s4 + $0x18] sm:$0xff]  ;;  %v76_v1 = vld [vmem:[%s5184_s4 + $0x10] sm:$0xff]  ;;  %v75_v2 = vld [vmem:[%s5184_s4 + $0x8] sm:$0xff]  ;;  %s3878_s26 = smov 80   ;;  %s3879_s27 = smov 120   ;;  %vm188_vm5 = vcmask 130048  }
   0x2   :  { %3520 = vmatpush.msra.mxu1 %v77_v0  ;;  %v3935_v3 = vld [vmem:[%s5185_s0 + $0x8] sm:$0xff]  ;;  %99 = vmatpush.msra.mxu0 %v77_v0  ;;  %v3943_v5 = vld [vmem:[%s5185_s0] sm:$0xff]  ;;  %v3951_v7 = vld [vmem:[%s5184_s4 + $0x38] sm:$0xff]  ;;  %s3880_s28 = smov 72   ;;  %s3881_s29 = smov 112   ;;  %v4023_v37 = vand.u32 127, %v30_v36 }
   0x3   :  { %v26_v4 = vld [vmem:[%s5186_s1 + $0x8] sm:$0xff]  ;;  %v25_v6 = vld [vmem:[%s5186_s1] sm:$0xff]  ;;  %v3956_v8 = vld [vmem:[%s5184_s4 + $0x30] sm:$0xff]  ;;  %s3882_s30 = smov 104   ;;  %s3884_s7 = smov 8  }
   0x4   :  { %3521 = vmatpush.msra.mxu1 %v76_v1  ;;  %100 = vmatpush.msra.mxu0 %v76_v1  ;;  %v3961_v9 = vld [vmem:[%s5184_s4 + $0x28] sm:$0xff]  ;;  %v3966_v10 = vld [vmem:[%s5184_s4 + $0x20] sm:$0xff]  ;;  %v73_v12 = vadd.f32 %v26_v4, %v3935_v3  ;;  %v72_v13 = vadd.f32 %v25_v6, %v3943_v5  ;;  %v3553_v14 = vpack.i.bf16 %v3956_v8, %v3951_v7  ;;  %vm41_vm2 = vcmp.lt.s32.totalorder %v4023_v37, 8  ;;  %s3885_s8 = smov 16   ;;  %s3886_s9 = smov 24  }
   0x5   :  { %v74_v11 = vld [vmem:[%s5184_s4] sm:$0xff]  ;;  %v3558_v15 = vpack.i.bf16 %v3966_v10, %v3961_v9  ;;  %v4027_v39 = vsel %vm41_vm2, 0.0, %v3883_v38  ;;  %vm50_vm3 = vcmp.ge.s32.totalorder %v4023_v37, 8  ;;  %vm53_vm4 = vcmp.lt.s32.totalorder %v4023_v37, 16 }
   0x6   :  { %3522 = vmatpush.msra.mxu1 %v75_v2  ;;  %101 = vmatpush.msra.mxu0 %v75_v2  ;;  %v3688_v16 = vld [vmem:[%s5187_s5] ss:$0 sm:$0xff]  ;;  %v3689_v22 = vld [vmem:[%s5187_s5 + $0x1] ss:$0 sm:$0xff]  ;;  %vm55_vm6 = vmand %vm50_vm3, %vm53_vm4 }
   0x7   :  { %v4042_v45 = vsel %vm55_vm6, 0.0, %v3883_v38 }
   0x8   :  { %3523 = vmatpush.msra.mxu1 %v74_v11  ;;  %102 = vmatpush.msra.mxu0 %v74_v11 }
   0x9   :  { %3365 = vmatmul.msk.f32.vlgmr.msra.gmra.mxu1 %vm80_vm0, %v73_v12  ;;  %3364 = vmatmul.msk.f32.vlgmr.msra.gmra.mxu0 %vm80_vm0, %v72_v13 }
   0xa   :  { %136 = vmatpush.msrb.mxu1 %v3951_v7 }
   0xc   :  { %137 = vmatpush.msrb.mxu1 %v3956_v8 }
   0xe   :  { %138 = vmatpush.msrb.mxu1 %v3961_v9 }
  0x10   :  { %139 = vmatpush.msrb.mxu1 %v3966_v10 }
  0x11   :  { %3366 = vmatmul.msk.f32.vlgmr.msrb.gmra.mxu1 %vm80_vm0, %v3943_v5 }
  0x19   :  { %3367 = vmatmul.msk.f32.gmra.mxu1 %vm80_vm0, %v3935_v3 }
  0x86   :  { %v107_v17 = vpop.f32.mrf.mxu1  ;;  %v104_v19 = vpop.f32.mrf.mxu0 }
  0x87   :  { %v108_v18 = vadd.f32 %v3688_v16, %v107_v17  ;;  %v105_v20 = vadd.f32 %v3688_v16, %v104_v19 }
  0x89   :  { %272 = vrot.lane.b32.xlu2 %v108_v18, %s3876_s22  ;;  %152 = vrot.lane.b32.xlu0 %v108_v18, %s3877_s23  ;;  %v110_v23 = vmul.f32 0.35355338, %v105_v20  ;;  %v111_v27 = vmul.f32 0.35355338, %v108_v18 }
  0x8e   :  { %v141_v21 = vpop.f32.mrf.mxu1 }
  0x8f   :  { %v3999_v25 = vadd.f32 %v3689_v22, %v141_v21 }
  0x91   :  { %270 = vrot.lane.b32.xlu2 %v105_v20, %s3876_s22  ;;  %150 = vrot.lane.b32.xlu0 %v105_v20, %s3877_s23 }
  0x96   :  { %v144_v24 = vpop.f32.mrf.mxu1 }
  0x97   :  { %v4001_v26 = vadd.f32 %v3689_v22, %v144_v24 }
  0x99   :  { %396 = vrot.lane.b32.xlu2 %v108_v18, %s3878_s26  ;;  %266 = vrot.lane.b32.xlu0 %v110_v23, %s3879_s27 }
  0x9a   :  { %3524 = vmatpush.msra.mxu3 %v4001_v26 }
  0x9c   :  { %3525 = vmatpush.msra.mxu3 %v3999_v25 }
  0xa1   :  { %394 = vrot.lane.b32.xlu2 %v105_v20, %s3878_s26  ;;  %518 = vrot.lane.b32.xlu0 %v108_v18, %s3880_s28 }
  0xa9   :  { %390 = vrot.lane.b32.xlu2 %v110_v23, %s3881_s29  ;;  %516 = vrot.lane.b32.xlu0 %v105_v20, %s3880_s28 }
  0xb1   :  { %392 = vrot.lane.b32.xlu2 %v111_v27, %s3881_s29  ;;  %512 = vrot.lane.b32.xlu0 %v110_v23, %s3882_s30 }
  0xe3   :  { %v273_v28 = vpop.permute.xlu2 %272 }
  0xe4   :  { %3374 = vmatpush.xpose.msk.msrb.mxu3 %vm154_vm1, %v273_v28 }
  0xeb   :  { %v271_v29 = vpop.permute.xlu2 %270 }
  0xec   :  { %3375 = vmatpush.xpose.msk.msrb.mxu3 %vm154_vm1, %v271_v29 }
  0xf3   :  { %v397_v30 = vpop.permute.xlu2 %396 }
  0xf4   :  { %3380 = vmatpush.xpose.msk.msra.mxu1 %vm154_vm1, %v397_v30 }
  0xfb   :  { %v153_v31 = vpop.permute.xlu0 %152  ;;  %v395_v32 = vpop.permute.xlu2 %394 }
  0xfc   :  { %3368 = vmatpush.xpose.msk.msra.mxu2 %vm154_vm1, %v153_v31  ;;  %3381 = vmatpush.xpose.msk.msra.mxu1 %vm154_vm1, %v395_v32 }
 0x103   :  { %v151_v33 = vpop.permute.xlu0 %150  ;;  %v391_v34 = vpop.permute.xlu2 %390 }
 0x104   :  { %3369 = vmatpush.xpose.msk.msra.mxu2 %vm154_vm1, %v151_v33  ;;  %3382 = vmatmul.msk.f32.vlgmr.msra.gmra.mxu1 %vm154_vm1, %v391_v34 }
 0x107   :  { %3370 = vmatmul.msk.f32.vlgmr.msra.gmra.mxu2 %vm154_vm1, %v110_v23 }
 0x108   :  { %257 = vmatpush.msrb.mxu2 %v4001_v26 }
 0x10a   :  { %258 = vmatpush.msrb.mxu2 %v3999_v25 }
 0x10b   :  { %v393_v35 = vpop.permute.xlu2 %392  ;;  %v267_v56 = vpop.permute.xlu0 %266 }
 0x10c   :  { %3383 = vmatmul.msk.f32.gmra.mxu1 %vm154_vm1, %v393_v35 }
 0x10f   :  { %3371 = vmatmul.msk.f32.gmra.mxu2 %vm154_vm1, %v111_v27 }
 0x113   :  { %v519_v63 = vpop.permute.xlu0 %518 }
 0x11b   :  { %v517_v11 = vpop.permute.xlu0 %516 }
 0x123   :  { %v513_v13 = vpop.permute.xlu0 %512 }
 0x181   :  { %v423_v43 = vpop.f32.mrf.mxu1 }
 0x182   :  { %v4039_v44 = vadd.f32 %v423_v43, %v4027_v39 }
 0x184   :  { %v429_v49 = vsel %vm188_vm5, %v4039_v44, -inf }
 0x189   :  { %v426_v30 = vpop.f32.mrf.mxu1 }
 0x18a   :  { %v182_v40 = vpop.f32.mrf.mxu2  ;;  %v427_v32 = vadd.f32 %v426_v30, %v4042_v45 }
 0x18b   :  { %v4030_v41 = vadd.f32 %v182_v40, %v4027_v39 }
 0x18c   :  { %v432_v40 = vsel %vm188_vm5, %v427_v32, -inf }
 0x18d   :  { %v189_v42 = vsel %vm188_vm5, %v4030_v41, -inf }
 0x18e   :  { %190 = vmax.xlane.f32.xlu2 %v189_v42 }
 0x192   :  { %v185_v46 = vpop.f32.mrf.mxu2 }
 0x193   :  { %v186_v47 = vadd.f32 %v185_v46, %v4042_v45 }
 0x195   :  { %v192_v48 = vsel %vm188_vm5, %v186_v47, -inf }
 0x196   :  { %193 = vmax.xlane.f32.xlu1 %v192_v48  ;;  %430 = vmax.xlane.f32.xlu2 %v429_v49 }
 0x201   :  { %v191_v18 = vpop.xlane.xlu2 %190 }
 0x209   :  { %v194_v50 = vpop.xlane.xlu1 %193  ;;  %v431_v22 = vpop.xlane.xlu2 %430 }
 0x20a   :  { %v196_v51 = vsub.f32 %v186_v47, %v194_v50  ;;  %v435_v28 = vsub.f32 %v4039_v44, %v431_v22 }
 0x20c   :  { %v199_v52 = vmul.f32 1.442695, %v196_v51  ;;  %v437_v33 = vmul.f32 1.442695, %v435_v28 }
 0x20e   :  { %3718 = vpow2.f32 %v199_v52 }
 0x214   :  { %v3719_v53 = vpop.eup %3718 }
 0x215   :  { %v204_v54 = vsel %vm188_vm5, %v3719_v53, 0.0 }
 0x216   :  { %205 = vadd.xlane.f32.xlu1 %v204_v54 }
 0x22f   :  { %268 = vrot.lane.b32.xlu1 %v111_v27, %s3879_s27 }
 0x237   :  { %514 = vrot.lane.b32.xlu1 %v111_v27, %s3882_s30  ;;  %v195_v27 = vsub.f32 %v4030_v41, %v191_v18 }
 0x239   :  { %v197_v31 = vmul.f32 1.442695, %v195_v27 }
 0x289   :  { %v206_v55 = vpop.xlane.xlu1 %205 }
 0x28a   :  { %3720 = vrcp.f32 %v206_v55  ;;  %v233_v60 = vand.u32 2147483648, %v206_v55  ;;  %v231_v62 = vand.u32 2147483647, %v206_v55  ;;  %vm227_vm8 = vweird.f32 %v206_v55 }
 0x28b   :  { %3722 = vpow2.f32 %v197_v31 }
 0x28c   :  { %v234_v1 = vor.u32 1.1754944e-38, %v233_v60  ;;  %vm232_vm10 = vcmp.eq.f32.partialorder %v231_v62, 8.507059e+37  ;;  %3724 = vpow2.f32 %v437_v33  ;;  %v3538_v33 = vpack.i.bf16 %v3999_v25, %v4001_v26 }
 0x290   :  { %v3721_v57 = vpop.eup %3720 }
 0x291   :  { %v223_v58 = vmul.f32 %v3721_v57, %v206_v55  ;;  %vm228_vm7 = vweird.f32 %v3721_v57  ;;  %v3723_v41 = vpop.eup %3722 }
 0x292   :  { %vm229_vm9 = vmor %vm227_vm8, %vm228_vm7  ;;  %v4070_v43 = vpop.eup %3724  ;;  %v201_v47 = vsel %vm188_vm5, %v3723_v41, 0.0 }
 0x293   :  { %v224_v59 = vsub.f32 1.0, %v223_v58  ;;  %v441_v48 = vsel %vm188_vm5, %v4070_v43, 0.0 }
 0x295   :  { %v225_v61 = vmul.f32 %v3721_v57, %v224_v59 }
 0x297   :  { %v226_v0 = vadd.f32 %v3721_v57, %v225_v61 }
 0x299   :  { %v230_v2 = vsel %vm229_vm9, %v3721_v57, %v226_v0 }
 0x29a   :  { %v235_v4 = vsel %vm232_vm10, %v234_v1, %v230_v2 }
 0x29b   :  { %v236_v6 = vmul.f32 %v3719_v53, %v235_v4 }
 0x29d   :  { %3373 = vmatmul.msk.f32.vlgmr.msra.gmra.mxu3 %vm188_vm5, %v236_v6 }
 0x29e   :  { %3386 = vmatpush.xpose.msk.msra.mxu3 %vm154_vm1, %v519_v63 }
 0x2a1   :  { %v269_v12 = vpop.permute.xlu1 %268 }
 0x2a2   :  { %3387 = vmatpush.xpose.msk.msra.mxu3 %vm154_vm1, %v517_v11 }
 0x2a5   :  { %3376 = vmatmul.msk.f32.vlgmr.msrb.gmra.mxu3 %vm154_vm1, %v267_v56 }
 0x2a9   :  { %v515_v16 = vpop.permute.xlu1 %514 }
 0x2ad   :  { %3377 = vmatmul.msk.f32.gmra.mxu3 %vm154_vm1, %v269_v12 }
 0x2b5   :  { %3388 = vmatmul.msk.f32.vlgmr.msra.gmra.mxu3 %vm154_vm1, %v513_v13 }
 0x2bd   :  { %3389 = vmatmul.msk.f32.gmra.mxu3 %vm154_vm1, %v515_v16 }
 0x320   :  { %v4058_v17 = vpop.f32.mrf.mxu3 }
 0x328   :  { %v299_v19 = vpop.f32.mrf.mxu3 }
 0x329   :  { %v300_v20 = vadd.f32 %v299_v19, %v4027_v39 }
 0x32b   :  { %v305_v21 = vsel %vm188_vm5, %v300_v20, -inf }
 0x32c   :  { %306 = vmax.xlane.f32.xlu0 %v305_v21 }
 0x330   :  { %v302_v23 = vpop.f32.mrf.mxu3 }
 0x331   :  { %v303_v24 = vadd.f32 %v302_v23, %v4042_v45 }
 0x333   :  { %v308_v29 = vsel %vm188_vm5, %v303_v24, -inf }
 0x334   :  { %309 = vmax.xlane.f32.xlu1 %v308_v29 }
 0x338   :  { %v545_v34 = vpop.f32.mrf.mxu3 }
 0x339   :  { %v546_v35 = vadd.f32 %v545_v34, %v4027_v39 }
 0x33b   :  { %v551_v36 = vsel %vm188_vm5, %v546_v35, -inf }
 0x33c   :  { %552 = vmax.xlane.f32.xlu0 %v551_v36  ;;  %433 = vmax.xlane.f32.xlu1 %v432_v40 }
 0x340   :  { %v548_v42 = vpop.f32.mrf.mxu3 }
 0x341   :  { %v549_v44 = vadd.f32 %v548_v42, %v4042_v45 }
 0x343   :  { %v554_v46 = vsel %vm188_vm5, %v549_v44, -inf }
 0x344   :  { %555 = vmax.xlane.f32.xlu2 %v554_v46  ;;  %202 = vadd.xlane.f32.xlu1 %v201_v47 }
 0x345   :  { %442 = vadd.xlane.f32.xlu0 %v441_v48 }
 0x39f   :  { %v307_v49 = vpop.xlane.xlu0 %306 }
 0x3a0   :  { %v311_v50 = vsub.f32 %v300_v20, %v307_v49 }
 0x3a2   :  { %v313_v51 = vmul.f32 1.442695, %v311_v50 }
 0x3a4   :  { %3726 = vpow2.f32 %v313_v51 }
 0x3a7   :  { %v310_v52 = vpop.xlane.xlu1 %309 }
 0x3a8   :  { %v312_v53 = vsub.f32 %v303_v24, %v310_v52 }
 0x3aa   :  { %v4077_v54 = vpop.eup %3726  ;;  %v315_v55 = vmul.f32 1.442695, %v312_v53 }
 0x3ab   :  { %v317_v56 = vsel %vm188_vm5, %v4077_v54, 0.0 }
 0x3ac   :  { %3728 = vpow2.f32 %v315_v55  ;;  %318 = vadd.xlane.f32.xlu0 %v317_v56 }
 0x3af   :  { %v553_v57 = vpop.xlane.xlu0 %552  ;;  %v434_v58 = vpop.xlane.xlu1 %433 }
 0x3b0   :  { %v557_v59 = vsub.f32 %v546_v35, %v553_v57  ;;  %v436_v60 = vsub.f32 %v427_v32, %v434_v58 }
 0x3b2   :  { %v4081_v61 = vpop.eup %3728  ;;  %v559_v62 = vmul.f32 1.442695, %v557_v59  ;;  %v439_v63 = vmul.f32 1.442695, %v436_v60 }
 0x3b3   :  { %v320_v0 = vsel %vm188_vm5, %v4081_v61, 0.0 }
 0x3b4   :  { %3730 = vpow2.f32 %v559_v62  ;;  %321 = vadd.xlane.f32.xlu2 %v320_v0 }
 0x3b5   :  { %3732 = vpow2.f32 %v439_v63 }
 0x3b7   :  { %v203_v1 = vpop.xlane.xlu1 %202  ;;  %v556_v2 = vpop.xlane.xlu2 %555 }
 0x3b8   :  { %3734 = vrcp.f32 %v203_v1  ;;  %v558_v4 = vsub.f32 %v549_v44, %v556_v2  ;;  %v218_v22 = vand.u32 2147483648, %v203_v1  ;;  %v216_v27 = vand.u32 2147483647, %v203_v1  ;;  %v4111_v34 = vpop.xlane.xlu0 %442 }
 0x3b9   :  { %vm212_vm12 = vweird.f32 %v203_v1 }
 0x3ba   :  { %v4085_v6 = vpop.eup %3730  ;;  %v561_v11 = vmul.f32 1.442695, %v558_v4  ;;  %v219_v29 = vor.u32 1.1754944e-38, %v218_v22  ;;  %vm217_vm14 = vcmp.eq.f32.partialorder %v216_v27, 8.507059e+37  ;;  %v456_v22 = vand.u32 2147483647, %v4111_v34 }
 0x3bb   :  { %v4087_v12 = vpop.eup %3732  ;;  %v563_v13 = vsel %vm188_vm5, %v4085_v6, 0.0 }
 0x3bc   :  { %3736 = vpow2.f32 %v561_v11  ;;  %564 = vadd.xlane.f32.xlu1 %v563_v13  ;;  %v444_v16 = vsel %vm188_vm5, %v4087_v12, 0.0 }
 0x3bd   :  { %445 = vadd.xlane.f32.xlu0 %v444_v16 }
 0x3be   :  { %v3735_v18 = vpop.eup %3734 }
 0x3bf   :  { %v208_v19 = vmul.f32 %v3735_v18, %v203_v1  ;;  %vm213_vm11 = vweird.f32 %v3735_v18 }
 0x3c0   :  { %vm214_vm13 = vmor %vm212_vm12, %vm213_vm11  ;;  %vm452_vm12 = vweird.f32 %v4111_v34 }
 0x3c1   :  { %v209_v20 = vsub.f32 1.0, %v208_v19 }
 0x3c2   :  { %v4093_v21 = vpop.eup %3736 }
 0x3c3   :  { %v210_v23 = vmul.f32 %v3735_v18, %v209_v20  ;;  %v566_v24 = vsel %vm188_vm5, %v4093_v21, 0.0  ;;  %v458_v20 = vand.u32 2147483648, %v4111_v34 }
 0x3c4   :  { %567 = vadd.xlane.f32.xlu1 %v566_v24 }
 0x3c5   :  { %v211_v28 = vadd.f32 %v3735_v18, %v210_v23 }
 0x3c7   :  { %v215_v30 = vsel %vm214_vm13, %v3735_v18, %v211_v28 }
 0x3c8   :  { %v220_v31 = vsel %vm217_vm14, %v219_v29, %v215_v30  ;;  %v459_v29 = vor.u32 1.1754944e-38, %v458_v20  ;;  %vm457_vm14 = vcmp.eq.f32.partialorder %v456_v22, 8.507059e+37 }
 0x3c9   :  { %v221_v32 = vmul.f32 %v3723_v41, %v220_v31 }
 0x3cb   :  { %3372 = vmatmul.msk.f32.vlgmr.msrb.gmra.mxu2 %vm188_vm5, %v221_v32 }
 0x3cc   :  { %3539 = vrot.lane.b32.xlu2 %v3538_v33, %s3879_s27 }
 0x3d1   :  { %3544 = vrot.lane.b32.xlu0 %v3538_v33, %s3881_s29 }
 0x3d4   :  { %3554 = vrot.lane.b32.xlu2 %v3553_v14, %s3877_s23 }
 0x3dc   :  { %3559 = vrot.lane.b32.xlu2 %v3558_v15, %s3877_s23 }
 0x3dd   :  { %3549 = vrot.lane.b32.xlu1 %v3538_v33, %s3882_s30 }
 0x41f   :  { %v319_v25 = vpop.xlane.xlu0 %318 }
 0x420   :  { %3738 = vrcp.f32 %v319_v25  ;;  %v334_v8 = vand.u32 2147483648, %v319_v25  ;;  %vm328_vm2 = vweird.f32 %v319_v25  ;;  %v332_v10 = vand.u32 2147483647, %v319_v25 }
 0x421   :  { %3740 = vrcp.f32 %v4111_v34 }
 0x422   :  { %v335_v48 = vor.u32 1.1754944e-38, %v334_v8  ;;  %vm333_vm6 = vcmp.eq.f32.partialorder %v332_v10, 8.507059e+37 }
 0x426   :  { %v3739_v26 = vpop.eup %3738 }
 0x427   :  { %v324_v35 = vmul.f32 %v3739_v26, %v319_v25  ;;  %v322_v36 = vpop.xlane.xlu2 %321  ;;  %vm329_vm15 = vweird.f32 %v3739_v26  ;;  %v3741_v14 = vpop.eup %3740 }
 0x428   :  { %3742 = vrcp.f32 %v322_v36  ;;  %vm330_vm3 = vmor %vm328_vm2, %vm329_vm15  ;;  %v448_v47 = vmul.f32 %v3741_v14, %v4111_v34  ;;  %v349_v56 = vand.u32 2147483648, %v322_v36  ;;  %v347_v58 = vand.u32 2147483647, %v322_v36 }
 0x429   :  { %v325_v40 = vsub.f32 1.0, %v324_v35  ;;  %vm343_vm8 = vweird.f32 %v322_v36  ;;  %vm453_vm11 = vweird.f32 %v3741_v14 }
 0x42a   :  { %v449_v59 = vsub.f32 1.0, %v448_v47  ;;  %v350_v0 = vor.u32 1.1754944e-38, %v349_v56  ;;  %vm348_vm10 = vcmp.eq.f32.partialorder %v347_v58, 8.507059e+37  ;;  %vm454_vm13 = vmor %vm452_vm12, %vm453_vm11 }
 0x42b   :  { %v326_v7 = vmul.f32 %v3739_v26, %v325_v40 }
 0x42c   :  { %v450_v1 = vmul.f32 %v3741_v14, %v449_v59 }
 0x42d   :  { %v327_v9 = vadd.f32 %v3739_v26, %v326_v7 }
 0x42e   :  { %v3743_v15 = vpop.eup %3742  ;;  %v451_v16 = vadd.f32 %v3741_v14, %v450_v1 }
 0x42f   :  { %v339_v41 = vmul.f32 %v3743_v15, %v322_v36  ;;  %v4114_v42 = vpop.xlane.xlu1 %564  ;;  %v3540_v44 = vpop.permute.xlu2 %3539  ;;  %v331_v46 = vsel %vm330_vm3, %v3739_v26, %v327_v9  ;;  %vm344_vm7 = vweird.f32 %v3743_v15 }
 0x430   :  { %v4117_v49 = vpop.xlane.xlu0 %445  ;;  %v3541_v51 = vunpack.i.l.bf16 %v3540_v44  ;;  %v336_v52 = vsel %vm333_vm6, %v335_v48, %v331_v46  ;;  %v3542_v53 = vunpack.i.h.bf16 %v3540_v44  ;;  %vm345_vm9 = vmor %vm343_vm8, %vm344_vm7  ;;  %v455_v23 = vsel %vm454_vm13, %v3741_v14, %v451_v16 }
 0x431   :  { %v340_v50 = vsub.f32 1.0, %v339_v41  ;;  %3744 = vrcp.f32 %v4117_v49  ;;  %v337_v57 = vmul.f32 %v4077_v54, %v336_v52  ;;  %v460_v31 = vsel %vm457_vm14, %v459_v29, %v455_v23 }
 0x432   :  { %381 = vmatpush.msrb.mxu0 %v3541_v51  ;;  %3746 = vrcp.f32 %v4114_v42  ;;  %v473_v35 = vand.u32 2147483648, %v4117_v49  ;;  %v461_v34 = vmul.f32 %v4070_v43, %v460_v31  ;;  %vm467_vm2 = vweird.f32 %v4117_v49  ;;  %v785_v31 = vld [vmem:[%s5184_s4 + $0x58] sm:$0xff] }
 0x433   :  { %v341_v55 = vmul.f32 %v3743_v15, %v340_v50  ;;  %v471_v36 = vand.u32 2147483647, %v4117_v49  ;;  %v580_v14 = vand.u32 2147483648, %v4114_v42  ;;  %vm574_vm7 = vweird.f32 %v4114_v42 }
 0x434   :  { %382 = vmatpush.msrb.mxu0 %v3542_v53  ;;  %v474_v9 = vor.u32 1.1754944e-38, %v473_v35  ;;  %v578_v10 = vand.u32 2147483647, %v4114_v42 }
 0x435   :  { %v342_v60 = vadd.f32 %v3743_v15, %v341_v55  ;;  %3378 = vmatmul.msk.f32.vlgmr.msrb.gmra.mxu0 %vm188_vm5, %v337_v57  ;;  %vm472_vm8 = vcmp.eq.f32.partialorder %v471_v36, 8.507059e+37  ;;  %v581_v44 = vor.u32 1.1754944e-38, %v580_v14 }
 0x437   :  { %v3745_v62 = vpop.eup %3744  ;;  %v346_v63 = vsel %vm345_vm9, %v3743_v15, %v342_v60  ;;  %v4124_v4 = vpop.xlane.xlu1 %567 }
 0x438   :  { %v463_v2 = vmul.f32 %v3745_v62, %v4117_v49  ;;  %v351_v11 = vsel %vm348_vm10, %v350_v0, %v346_v63  ;;  %v3747_v13 = vpop.eup %3746  ;;  %3748 = vrcp.f32 %v4124_v4  ;;  %vm468_vm15 = vweird.f32 %v3745_v62  ;;  %v3555_v59 = vpop.permute.xlu2 %3554 }
 0x439   :  { %v352_v54 = vmul.f32 %v4081_v61, %v351_v11  ;;  %v570_v18 = vmul.f32 %v3747_v13, %v4114_v42  ;;  %vm469_vm3 = vmor %vm467_vm2, %vm468_vm15  ;;  %vm575_vm6 = vweird.f32 %v3747_v13  ;;  %vm579_vm10 = vcmp.eq.f32.partialorder %v578_v10, 8.507059e+37 }
 0x43a   :  { %v464_v19 = vsub.f32 1.0, %v463_v2  ;;  %vm576_vm9 = vmor %vm574_vm7, %vm575_vm6  ;;  %v595_v42 = vand.u32 2147483648, %v4124_v4  ;;  %vm589_vm12 = vweird.f32 %v4124_v4  ;;  %v593_v53 = vand.u32 2147483647, %v4124_v4 }
 0x43b   :  { %v571_v24 = vsub.f32 1.0, %v570_v18  ;;  %v3557_v60 = vunpack.i.h.bf16 %v3555_v59  ;;  %vm662_vm15 = vcmask 195584   ;;  %v3887_v10 = vmov 32.0  }
 0x43c   :  { %v465_v27 = vmul.f32 %v3745_v62, %v464_v19  ;;  %v596_v55 = vor.u32 1.1754944e-38, %v595_v42  ;;  %vm594_vm14 = vcmp.eq.f32.partialorder %v593_v53, 8.507059e+37  ;;  %3750 = vrcp.f32 %v3887_v10  ;;  %v4200_v42 = vld [vmem:[%s5188_s2 + $0x8] sm:$0xff] }
 0x43d   :  { %3379 = vmatmul.msk.f32.gmra.mxu0 %vm188_vm5, %v352_v54  ;;  %v572_v32 = vmul.f32 %v3747_v13, %v571_v24 }
 0x43e   :  { %v3749_v28 = vpop.eup %3748  ;;  %v466_v25 = vadd.f32 %v3745_v62, %v465_v27 }
 0x43f   :  { %v585_v33 = vmul.f32 %v3749_v28, %v4124_v4  ;;  %v573_v40 = vadd.f32 %v3747_v13, %v572_v32  ;;  %vm590_vm11 = vweird.f32 %v3749_v28 }
 0x440   :  { %v470_v8 = vsel %vm469_vm3, %v3745_v62, %v466_v25  ;;  %vm591_vm13 = vmor %vm589_vm12, %vm590_vm11  ;;  %v3556_v62 = vunpack.i.l.bf16 %v3555_v59  ;;  %v3560_v63 = vpop.permute.xlu2 %3559  ;;  %vm62_vm11 = vcmp.ge.s32.totalorder %v4023_v37, 16  ;;  %vm65_vm12 = vcmp.lt.s32.totalorder %v4023_v37, 32 }
 0x441   :  { %v586_v7 = vsub.f32 1.0, %v585_v33  ;;  %v475_v43 = vsel %vm472_vm8, %v474_v9, %v470_v8  ;;  %v577_v15 = vsel %vm576_vm9, %v3747_v13, %v573_v40  ;;  %v3562_v1 = vunpack.i.h.bf16 %v3560_v63  ;;  %v783_v33 = vld [vmem:[%s5184_s4 + $0x48] sm:$0xff] }
 0x442   :  { %v476_v47 = vmul.f32 %v4087_v12, %v475_v43  ;;  %v582_v49 = vsel %vm579_vm10, %v581_v44, %v577_v15  ;;  %700 = vmatpush.msrb.mxu1 %v3556_v62  ;;  %v3561_v2 = vunpack.i.l.bf16 %v3560_v63  ;;  %v3751_v44 = vpop.eup %3750  ;;  %v4223_v63 = vld [vmem:[%s5188_s2 + $0x18] sm:$0xff] }
 0x443   :  { %v3545_v61 = vpop.permute.xlu0 %3544  ;;  %v587_v41 = vmul.f32 %v3749_v28, %v586_v7  ;;  %v583_v52 = vmul.f32 %v4085_v6, %v582_v49  ;;  %v776_v49 = vld [vmem:[%s5189_s3] sm:$0xff]  ;;  %vm726_vm2 = vweird.f32 %v3751_v44 }
 0x444   :  { %v3546_v30 = vunpack.i.l.bf16 %v3545_v61  ;;  %v3547_v26 = vunpack.i.h.bf16 %v3545_v61  ;;  %701 = vmatpush.msrb.mxu1 %v3557_v60 }
 0x445   :  { %v588_v50 = vadd.f32 %v3749_v28, %v587_v41 }
 0x446   :  { %503 = vmatpush.msra.mxu2 %v3546_v30  ;;  %702 = vmatpush.msrb.mxu1 %v3561_v2  ;;  %v784_v30 = vld [vmem:[%s5184_s4 + $0x50] sm:$0xff] }
 0x447   :  { %v592_v12 = vsel %vm591_vm13, %v3749_v28, %v588_v50  ;;  %v3563_v32 = vpack.i.bf16 %v784_v30, %v785_v31  ;;  %vm67_vm13 = vmand %vm62_vm11, %vm65_vm12 }
 0x448   :  { %504 = vmatpush.msra.mxu2 %v3547_v26  ;;  %v597_v56 = vsel %vm594_vm14, %v596_v55, %v592_v12  ;;  %703 = vmatpush.msrb.mxu1 %v3562_v1  ;;  %v3690_v26 = vld [vmem:[%s5187_s5 + $0x2] ss:$0 sm:$0xff] }
 0x449   :  { %3384 = vmatmul.msk.f32.vlgmr.msra.gmra.mxu2 %vm188_vm5, %v461_v34  ;;  %v598_v57 = vmul.f32 %v4093_v21, %v597_v56  ;;  %v4210_v56 = vld [vmem:[%s5188_s2 + $0x10] sm:$0xff] }
 0x44a   :  { %806 = vmatpush.msrb.mxu2 %v785_v31 }
 0x44c   :  { %807 = vmatpush.msrb.mxu2 %v784_v30 }
 0x44e   :  { %v260_v0 = vpop.f32.mrf.mxu2  ;;  %808 = vmatpush.msrb.mxu2 %v783_v33 }
 0x44f   :  { %v3550_v46 = vpop.permute.xlu1 %3549 }
 0x450   :  { %v3551_v48 = vunpack.i.l.bf16 %v3550_v46  ;;  %v3552_v51 = vunpack.i.h.bf16 %v3550_v46 }
 0x451   :  { %3385 = vmatmul.msk.f32.gmra.mxu2 %vm188_vm5, %v476_v47 }
 0x452   :  { %625 = vmatpush.msra.mxu0 %v3551_v48 }
 0x454   :  { %626 = vmatpush.msra.mxu0 %v3552_v51 }
 0x455   :  { %3390 = vmatmul.msk.f32.vlgmr.msra.gmra.mxu0 %vm188_vm5, %v583_v52  ;;  %v777_v52 = vld [vmem:[%s5189_s3 + $0x8] sm:$0xff] }
 0x456   :  { %v820_v12 = vadd.f32 %v777_v52, %v4200_v42 }
 0x45d   :  { %3391 = vmatmul.msk.f32.gmra.mxu0 %vm188_vm5, %v598_v57  ;;  %v778_v57 = vld [vmem:[%s5189_s3 + $0x10] sm:$0xff] }
 0x4b2   :  { %v384_v58 = vpop.f32.mrf.mxu0 }
 0x4b3   :  { %636 = vrot.lane.b32.xlu0 %v384_v58, %s3884_s7 }
 0x4ba   :  { %v387_v6 = vpop.f32.mrf.mxu0 }
 0x4bb   :  { %638 = vrot.lane.b32.xlu2 %v387_v6, %s3884_s7  ;;  %v821_v6 = vadd.f32 %v778_v57, %v4210_v56 }
 0x4cc   :  { %v506_v21 = vpop.f32.mrf.mxu2 }
 0x4cd   :  { %644 = vrot.lane.b32.xlu1 %v506_v21, %s3885_s8 }
 0x4d2   :  { %v628_v4 = vpop.f32.mrf.mxu0 }
 0x4d3   :  { %652 = vrot.lane.b32.xlu0 %v628_v4, %s3886_s9 }
 0x4d4   :  { %v509_v11 = vpop.f32.mrf.mxu2 }
 0x4d5   :  { %646 = vrot.lane.b32.xlu1 %v509_v11, %s3885_s8 }
 0x4da   :  { %v631_v13 = vpop.f32.mrf.mxu0 }
 0x4db   :  { %654 = vrot.lane.b32.xlu0 %v631_v13, %s3886_s9 }
 0x4e3   :  { %3564 = vrot.lane.b32.xlu0 %v3563_v32, %s3877_s23 }
 0x515   :  { %v639_v23 = vpop.permute.xlu2 %638 }
 0x516   :  { %v659_v27 = vsel %vm154_vm1, %v4058_v17, %v639_v23  ;;  %v782_v17 = vld [vmem:[%s5184_s4 + $0x40] sm:$0xff] }
 0x517   :  { %v3568_v25 = vpack.i.bf16 %v782_v17, %v783_v33  ;;  %809 = vmatpush.msrb.mxu2 %v782_v17 }
 0x519   :  { %3569 = vrot.lane.b32.xlu0 %v3568_v25, %s3877_s23 }
 0x525   :  { %v637_v54 = vpop.permute.xlu0 %636 }
 0x526   :  { %v658_v18 = vsel %vm154_vm1, %v260_v0, %v637_v54  ;;  %v779_v0 = vld [vmem:[%s5189_s3 + $0x18] sm:$0xff] }
 0x527   :  { %v822_v21 = vadd.f32 %v779_v0, %v4223_v63 }
 0x53f   :  { %v645_v16 = vpop.permute.xlu1 %644 }
 0x540   :  { %v660_v19 = vsel %vm188_vm5, %v658_v18, %v645_v16 }
 0x545   :  { %v653_v20 = vpop.permute.xlu0 %652 }
 0x546   :  { %v663_v22 = vsel %vm662_vm15, %v660_v19, %v653_v20 }
 0x547   :  { %3392 = vmatmul.msk.f32.vlgmr.msrb.gmra.mxu1 %vm80_vm0, %v663_v22  ;;  %v647_v24 = vpop.permute.xlu1 %646  ;;  %v3692_v22 = vld [vmem:[%s5187_s5 + $0x4] ss:$0 sm:$0xff] }
 0x548   :  { %v661_v28 = vsel %vm188_vm5, %v659_v27, %v647_v24 }
 0x54d   :  { %v655_v29 = vpop.permute.xlu0 %654 }
 0x54e   :  { %v664_v61 = vsel %vm662_vm15, %v661_v28, %v655_v29 }
 0x54f   :  { %3393 = vmatmul.msk.f32.gmra.mxu1 %vm80_vm0, %v664_v61 }
 0x555   :  { %v3565_v43 = vpop.permute.xlu0 %3564 }
 0x556   :  { %v3567_v15 = vunpack.i.h.bf16 %v3565_v43  ;;  %v3566_v41 = vunpack.i.l.bf16 %v3565_v43  ;;  %v3693_v43 = vld [vmem:[%s5187_s5 + $0xa] ss:$0 sm:$0xff] }
 0x558   :  { %865 = vmatpush.msrb.mxu3 %v3566_v41 }
 0x55a   :  { %866 = vmatpush.msrb.mxu3 %v3567_v15 }
 0x58b   :  { %v3570_v46 = vpop.permute.xlu0 %3569 }
 0x58c   :  { %v3572_v47 = vunpack.i.h.bf16 %v3570_v46  ;;  %v3571_v48 = vunpack.i.l.bf16 %v3570_v46 }
 0x58e   :  { %867 = vmatpush.msrb.mxu3 %v3571_v48  ;;  %v3872_v48 = vld [vmem:[%s5186_s1] sm:$0xff] }
 0x590   :  { %868 = vmatpush.msrb.mxu3 %v3572_v47 }
 0x5c4   :  { %v705_v35 = vpop.f32.mrf.mxu1 }
 0x5c5   :  { %v706_v34 = vadd.f32 %v3690_v26, %v705_v35 }
 0x5c7   :  { %v711_v36 = vadd.f32 %v706_v34, %v3943_v5  ;;  %v722_v5 = vmul.f32 32.0, %v3751_v44 }
 0x5c9   :  { %v715_v40 = vsel %vm80_vm0, %v711_v36, 0.0  ;;  %v723_v51 = vsub.f32 1.0, %v722_v5 }
 0x5ca   :  { %716 = vadd.xlane.f32.xlu2 %v715_v40 }
 0x5cb   :  { %v724_v53 = vmul.f32 %v3751_v44, %v723_v51 }
 0x5cc   :  { %v708_v7 = vpop.f32.mrf.mxu1 }
 0x5cd   :  { %v709_v8 = vadd.f32 %v3690_v26, %v708_v7  ;;  %v725_v55 = vadd.f32 %v3751_v44, %v724_v53 }
 0x5cf   :  { %v712_v14 = vadd.f32 %v709_v8, %v3935_v3  ;;  %v4190_v3 = vld [vmem:[%s5188_s2] sm:$0xff]  ;;  %v4215_v58 = vsel %vm726_vm2, %v3751_v44, %v725_v55  ;;  %v3691_v8 = vld [vmem:[%s5187_s5 + $0x9] ss:$0 sm:$0xff] }
 0x5d0   :  { %v819_v50 = vadd.f32 %v776_v49, %v4190_v3 }
 0x5d1   :  { %v718_v9 = vsel %vm80_vm0, %v712_v14, 0.0 }
 0x5d2   :  { %719 = vadd.xlane.f32.xlu1 %v718_v9  ;;  %3396 = vmatmul.msk.f32.vlgmr.msrb.gmra.mxu3 %vm80_vm0, %v819_v50 }
 0x5da   :  { %3397 = vmatmul.msk.f32.gmra.mxu3 %vm80_vm0, %v820_v12  ;;  %v3873_v12 = vld [vmem:[%s5186_s1 + $0x8] sm:$0xff] }
 0x5e2   :  { %3398 = vmatmul.msk.f32.gmra.mxu3 %vm80_vm0, %v821_v6 }
 0x5ea   :  { %3399 = vmatmul.msk.f32.gmra.mxu3 %vm80_vm0, %v822_v21  ;;  %v3694_v21 = vld [vmem:[%s5187_s5 + $0x3] ss:$0 sm:$0xff] }
 0x63d   :  { %v717_v59 = vpop.xlane.xlu2 %716 }
 0x63e   :  { %v728_v60 = vmul.f32 %v4215_v58, %v717_v59 }
 0x640   :  { %v730_v62 = vsub.f32 %v711_v36, %v728_v60 }
 0x642   :  { %v732_v1 = vmul.f32 %v730_v62, %v730_v62 }
 0x644   :  { %v734_v2 = vsel %vm80_vm0, %v732_v1, 0.0 }
 0x645   :  { %735 = vadd.xlane.f32.xlu0 %v734_v2  ;;  %v720_v4 = vpop.xlane.xlu1 %719 }
 0x646   :  { %v729_v11 = vmul.f32 %v4215_v58, %v720_v4 }
 0x648   :  { %v731_v13 = vsub.f32 %v712_v14, %v729_v11 }
 0x64a   :  { %v733_v54 = vmul.f32 %v731_v13, %v731_v13 }
 0x64c   :  { %v737_v16 = vsel %vm80_vm0, %v733_v54, 0.0 }
 0x64d   :  { %738 = vadd.xlane.f32.xlu2 %v737_v16 }
 0x655   :  { %v870_v18 = vpop.f32.mrf.mxu3 }
 0x656   :  { %v871_v46 = vadd.f32 %v3692_v22, %v870_v18 }
 0x65d   :  { %v873_v24 = vpop.f32.mrf.mxu3 }
 0x65e   :  { %v874_v27 = vadd.f32 %v3692_v22, %v873_v24 }
 0x660   :  { %1054 = vrot.lane.b32.xlu0 %v874_v27, %s3879_s27 }
 0x665   :  { %v876_v31 = vpop.f32.mrf.mxu3 }
 0x666   :  { %v877_v17 = vadd.f32 %v3692_v22, %v876_v31  ;;  %v4316_v31 = vld [vmem:[%s5184_s4 + $0x68] sm:$0xff] }
 0x668   :  { %1196 = vrot.lane.b32.xlu0 %v877_v17, %s3881_s29  ;;  %1056 = vrot.lane.b32.xlu2 %v877_v17, %s3879_s27 }
 0x66d   :  { %v879_v34 = vpop.f32.mrf.mxu3 }
 0x66e   :  { %v880_v7 = vadd.f32 %v3692_v22, %v879_v34 }
 0x670   :  { %1058 = vrot.lane.b32.xlu1 %v880_v7, %s3879_s27  ;;  %1194 = vrot.lane.b32.xlu0 %v874_v27, %s3881_s29 }
 0x671   :  { %3404 = vmatpush.xpose.msk.msra.mxu1 %vm154_vm1, %v880_v7  ;;  %1334 = vrot.lane.b32.xlu2 %v880_v7, %s3882_s30 }
 0x675   :  { %3405 = vmatpush.xpose.msk.msra.mxu1 %vm154_vm1, %v877_v17 }
 0x678   :  { %1052 = vrot.lane.b32.xlu1 %v871_v46, %s3879_s27  ;;  %1328 = vrot.lane.b32.xlu0 %v871_v46, %s3882_s30 }
 0x679   :  { %3406 = vmatpush.xpose.msk.msra.mxu1 %vm154_vm1, %v874_v27  ;;  %1192 = vrot.lane.b32.xlu2 %v871_v46, %s3881_s29 }
 0x67d   :  { %3407 = vmatpush.xpose.msk.msra.mxu1 %vm154_vm1, %v871_v46 }
 0x680   :  { %1198 = vrot.lane.b32.xlu1 %v880_v7, %s3881_s29 }
 0x688   :  { %1332 = vrot.lane.b32.xlu1 %v877_v17, %s3882_s30 }
 0x690   :  { %1330 = vrot.lane.b32.xlu1 %v874_v27, %s3882_s30 }
 0x6b8   :  { %v736_v19 = vpop.xlane.xlu0 %735 }
 0x6b9   :  { %v740_v20 = vmul.f32 %v736_v19, %v4215_v58 }
 0x6bb   :  { %v742_v23 = vadd.f32 1e-05, %v740_v20 }
 0x6bd   :  { %3752 = vrsqrt.f32 %v742_v23  ;;  %vm750_vm6 = vweird.f32 %v742_v23 }
 0x6c0   :  { %v739_v28 = vpop.xlane.xlu2 %738 }
 0x6c1   :  { %v741_v29 = vmul.f32 %v739_v28, %v4215_v58 }
 0x6c3   :  { %v3753_v61 = vpop.eup %3752  ;;  %v743_v30 = vadd.f32 1e-05, %v741_v29  ;;  %v4302_v29 = vld [vmem:[%s5184_s4 + $0x78] sm:$0xff] }
 0x6c4   :  { %v745_v32 = vmul.f32 %v3753_v61, %v742_v23  ;;  %vm751_vm3 = vweird.f32 %v3753_v61  ;;  %912 = vmatpush.msrb.mxu0 %v4302_v29 }
 0x6c5   :  { %3754 = vrsqrt.f32 %v743_v30  ;;  %vm752_vm7 = vmor %vm750_vm6, %vm751_vm3  ;;  %vm760_vm9 = vweird.f32 %v743_v30 }
 0x6c6   :  { %v746_v33 = vmul.f32 %v3753_v61, %v745_v32  ;;  %v4321_v32 = vld [vmem:[%s5184_s4 + $0x60] sm:$0xff] }
 0x6c7   :  { %v3608_v17 = vpack.i.bf16 %v4321_v32, %v4316_v31 }
 0x6c8   :  { %v747_v25 = vmul.f32 0.5, %v746_v33  ;;  %v1057_v60 = vpop.permute.xlu2 %1056 }
 0x6ca   :  { %v748_v26 = vsub.f32 1.5, %v747_v25 }
 0x6cb   :  { %v3755_v35 = vpop.eup %3754 }
 0x6cc   :  { %v749_v36 = vmul.f32 %v3753_v61, %v748_v26  ;;  %v755_v40 = vmul.f32 %v3755_v35, %v743_v30  ;;  %vm761_vm8 = vweird.f32 %v3755_v35 }
 0x6cd   :  { %vm762_vm10 = vmor %vm760_vm9, %vm761_vm8 }
 0x6ce   :  { %v753_v14 = vsel %vm752_vm7, %v3753_v61, %v749_v36  ;;  %v756_v9 = vmul.f32 %v3755_v35, %v755_v40  ;;  %v4307_v61 = vld [vmem:[%s5184_s4 + $0x70] sm:$0xff] }
 0x6cf   :  { %v764_v10 = vmul.f32 %v753_v14, %v730_v62  ;;  %v3603_v30 = vpack.i.bf16 %v4307_v61, %v4302_v29  ;;  %913 = vmatpush.msrb.mxu0 %v4307_v61 }
 0x6d0   :  { %v757_v15 = vmul.f32 0.5, %v756_v9  ;;  %v1335_v1 = vpop.permute.xlu2 %1334 }
 0x6d1   :  { %v767_v41 = vmul.f32 %v3691_v8, %v764_v10  ;;  %914 = vmatpush.msrb.mxu0 %v4316_v31 }
 0x6d2   :  { %v758_v44 = vsub.f32 1.5, %v757_v15  ;;  %v1055_v6 = vpop.permute.xlu0 %1054 }
 0x6d3   :  { %v4251_v5 = vadd.f32 %v3693_v43, %v767_v41  ;;  %915 = vmatpush.msrb.mxu0 %v4321_v32 }
 0x6d4   :  { %v759_v47 = vmul.f32 %v3755_v35, %v758_v44  ;;  %3400 = vmatmul.msk.f32.vlgmr.msrb.gmra.mxu0 %vm80_vm0, %v4190_v3 }
 0x6d5   :  { %v780_v49 = vadd.f32 %v3872_v48, %v4251_v5 }
 0x6d6   :  { %v763_v50 = vsel %vm762_vm10, %v3755_v35, %v759_v47  ;;  %v4338_v35 = vsel %vm53_vm4, 0.0, %v3883_v38 }
 0x6d7   :  { %3394 = vmatmul.msk.f32.vlgmr.msrb.gmra.mxu2 %vm80_vm0, %v780_v49  ;;  %v765_v51 = vmul.f32 %v763_v50, %v731_v13 }
 0x6d8   :  { %v1193_v11 = vpop.permute.xlu2 %1192 }
 0x6d9   :  { %v768_v52 = vmul.f32 %v3691_v8, %v765_v51 }
 0x6da   :  { %v1197_v62 = vpop.permute.xlu0 %1196 }
 0x6db   :  { %v4263_v53 = vadd.f32 %v3693_v43, %v768_v52 }
 0x6dc   :  { %3401 = vmatmul.msk.f32.gmra.mxu0 %vm80_vm0, %v4200_v42  ;;  %v4347_v42 = vsel %vm67_vm13, 0.0, %v3883_v38 }
 0x6dd   :  { %v781_v55 = vadd.f32 %v3873_v12, %v4263_v53 }
 0x6df   :  { %3395 = vmatmul.msk.f32.gmra.mxu2 %vm80_vm0, %v781_v55 }
 0x6e2   :  { %v1059_v57 = vpop.permute.xlu1 %1058  ;;  %v1195_v2 = vpop.permute.xlu0 %1194 }
 0x6e3   :  { %3412 = vmatpush.xpose.msk.msrb.mxu1 %vm154_vm1, %v1059_v57 }
 0x6e4   :  { %3402 = vmatmul.msk.f32.gmra.mxu0 %vm80_vm0, %v4210_v56 }
 0x6e7   :  { %3413 = vmatpush.xpose.msk.msrb.mxu1 %vm154_vm1, %v1057_v60 }
 0x6ea   :  { %v1053_v59 = vpop.permute.xlu1 %1052  ;;  %v1329_v23 = vpop.permute.xlu0 %1328 }
 0x6eb   :  { %3414 = vmatpush.xpose.msk.msrb.mxu1 %vm154_vm1, %v1055_v6 }
 0x6ec   :  { %3403 = vmatmul.msk.f32.gmra.mxu0 %vm80_vm0, %v4223_v63 }
 0x6ef   :  { %3415 = vmatpush.xpose.msk.msrb.mxu1 %vm154_vm1, %v1053_v59 }
 0x6f2   :  { %v1199_v0 = vpop.permute.xlu1 %1198 }
 0x6f3   :  { %3420 = vmatpush.xpose.msk.msra.mxu3 %vm154_vm1, %v1199_v0 }
 0x6f7   :  { %3421 = vmatpush.xpose.msk.msra.mxu3 %vm154_vm1, %v1197_v62 }
 0x6fa   :  { %v1333_v54 = vpop.permute.xlu1 %1332 }
 0x6fb   :  { %3422 = vmatpush.xpose.msk.msra.mxu3 %vm154_vm1, %v1195_v2 }
 0x6ff   :  { %3423 = vmatpush.xpose.msk.msra.mxu3 %vm154_vm1, %v1193_v11 }
 0x702   :  { %v1331_v22 = vpop.permute.xlu1 %1330 }
 0x751   :  { %v917_v59 = vpop.f32.mrf.mxu0 }
 0x75a   :  { %v811_v4 = vpop.f32.mrf.mxu2 }
 0x75b   :  { %v812_v13 = vadd.f32 %v3694_v21, %v811_v4  ;;  %v920_v4 = vpop.f32.mrf.mxu0 }
 0x75d   :  { %v817_v16 = vmul.f32 0.35355338, %v812_v13 }
 0x75f   :  { %1048 = vrot.lane.b32.xlu2 %v817_v16, %s3879_s27  ;;  %1188 = vrot.lane.b32.xlu1 %v817_v16, %s3881_s29 }
 0x760   :  { %3408 = vmatmul.msk.f32.vlgmr.msra.gmra.mxu1 %vm154_vm1, %v817_v16 }
 0x761   :  { %3428 = vmatpush.xpose.msk.msra.mxu1 %vm154_vm1, %v1335_v1 }
 0x762   :  { %v814_v18 = vpop.f32.mrf.mxu2 }
 0x763   :  { %v815_v19 = vadd.f32 %v3694_v21, %v814_v18  ;;  %v3695_v21 = vld [vmem:[%s5187_s5 + $0x5] ss:$0 sm:$0xff]  ;;  %v923_v18 = vpop.f32.mrf.mxu0 }
 0x764   :  { %v918_v13 = vadd.f32 %v3695_v21, %v917_v59 }
 0x765   :  { %v818_v20 = vmul.f32 0.35355338, %v815_v19  ;;  %3429 = vmatpush.xpose.msk.msra.mxu1 %vm154_vm1, %v1333_v54  ;;  %v921_v54 = vadd.f32 %v3695_v21, %v920_v4 }
 0x767   :  { %1190 = vrot.lane.b32.xlu0 %v818_v20, %s3881_s29  ;;  %1050 = vrot.lane.b32.xlu2 %v818_v20, %s3879_s27 }
 0x768   :  { %1326 = vrot.lane.b32.xlu1 %v818_v20, %s3882_s30  ;;  %3409 = vmatmul.msk.f32.gmra.mxu1 %vm154_vm1, %v818_v20 }
 0x769   :  { %3430 = vmatpush.xpose.msk.msra.mxu1 %vm154_vm1, %v1331_v22  ;;  %v924_v22 = vadd.f32 %v3695_v21, %v923_v18 }
 0x76b   :  { %v926_v19 = vpop.f32.mrf.mxu0 }
 0x76c   :  { %v927_v20 = vadd.f32 %v3695_v21, %v926_v19 }
 0x76d   :  { %3431 = vmatpush.xpose.msk.msra.mxu1 %vm154_vm1, %v1329_v23 }
 0x76e   :  { %1037 = vmatpush.msra.mxu2 %v927_v20  ;;  %v4386_v23 = vpack.i.bf16 %v924_v22, %v927_v20 }
 0x76f   :  { %1324 = vrot.lane.b32.xlu2 %v817_v16, %s3882_s30  ;;  %v4382_v16 = vpack.i.bf16 %v918_v13, %v921_v54 }
 0x770   :  { %1038 = vmatpush.msra.mxu2 %v924_v22 }
 0x772   :  { %1039 = vmatpush.msra.mxu2 %v921_v54 }
 0x774   :  { %1040 = vmatpush.msra.mxu2 %v918_v13 }
 0x7b9   :  { %v1049_v24 = vpop.permute.xlu2 %1048 }
 0x7ba   :  { %3416 = vmatmul.msk.f32.vlgmr.msrb.gmra.mxu1 %vm154_vm1, %v1049_v24 }
 0x7c1   :  { %v1051_v27 = vpop.permute.xlu2 %1050 }
 0x7c2   :  { %3417 = vmatmul.msk.f32.gmra.mxu1 %vm154_vm1, %v1051_v27 }
 0x7c9   :  { %v1325_v28 = vpop.permute.xlu2 %1324 }
 0x7ca   :  { %3432 = vmatmul.msk.f32.vlgmr.msra.gmra.mxu1 %vm154_vm1, %v1325_v28 }
 0x7d1   :  { %v1189_v33 = vpop.permute.xlu1 %1188 }
 0x7d2   :  { %3424 = vmatmul.msk.f32.vlgmr.msra.gmra.mxu3 %vm154_vm1, %v1189_v33 }
 0x7d9   :  { %v1191_v25 = vpop.permute.xlu0 %1190 }
 0x7da   :  { %v1327_v26 = vpop.permute.xlu1 %1326  ;;  %3425 = vmatmul.msk.f32.gmra.mxu3 %vm154_vm1, %v1191_v25 }
 0x7db   :  { %3433 = vmatmul.msk.f32.gmra.mxu1 %vm154_vm1, %v1327_v26 }
 0x7dd   :  { %v965_v34 = vpop.f32.mrf.mxu1 }
 0x7de   :  { %v966_v3 = vadd.f32 %v965_v34, %v4338_v35 }
 0x7e0   :  { %v971_v36 = vsel %vm80_vm0, %v966_v3, -inf }
 0x7e1   :  { %972 = vmax.xlane.f32.xlu2 %v971_v36 }
 0x7e5   :  { %v968_v40 = vpop.f32.mrf.mxu1 }
 0x7e6   :  { %v969_v7 = vadd.f32 %v968_v40, %v4347_v42 }
 0x7e8   :  { %v974_v8 = vsel %vm80_vm0, %v969_v7, -inf }
 0x7e9   :  { %975 = vmax.xlane.f32.xlu0 %v974_v8 }
 0x837   :  { %v1089_v37 = vpop.f32.mrf.mxu1 }
 0x838   :  { %v1090_v14 = vadd.f32 %v1089_v37, %v4338_v35 }
 0x83a   :  { %v1095_v9 = vsel %vm80_vm0, %v1090_v14, -inf }
 0x83b   :  { %1096 = vmax.xlane.f32.xlu1 %v1095_v9 }
 0x83f   :  { %v1092_v10 = vpop.f32.mrf.mxu1 }
 0x840   :  { %v1093_v56 = vadd.f32 %v1092_v10, %v4347_v42 }
 0x842   :  { %v1098_v38 = vsel %vm80_vm0, %v1093_v56, -inf }
 0x843   :  { %1099 = vmax.xlane.f32.xlu2 %v1098_v38 }
 0x847   :  { %v1365_v57 = vpop.f32.mrf.mxu1 }
 0x848   :  { %v4366_v6 = vadd.f32 %v1365_v57, %v4338_v35 }
 0x84a   :  { %v1371_v0 = vsel %vm80_vm0, %v4366_v6, -inf }
 0x854   :  { %v973_v43 = vpop.xlane.xlu2 %972 }
 0x855   :  { %v977_v15 = vsub.f32 %v966_v3, %v973_v43  ;;  %v1229_v41 = vpop.f32.mrf.mxu3 }
 0x856   :  { %v1230_v44 = vadd.f32 %v1229_v41, %v4338_v35 }
 0x857   :  { %v979_v46 = vmul.f32 1.442695, %v977_v15 }
 0x858   :  { %v1235_v63 = vsel %vm80_vm0, %v1230_v44, -inf  ;;  %v1368_v1 = vpop.f32.mrf.mxu1 }
 0x859   :  { %3756 = vpow2.f32 %v979_v46  ;;  %1236 = vmax.xlane.f32.xlu1 %v1235_v63  ;;  %v4375_v2 = vadd.f32 %v1368_v1, %v4347_v42 }
 0x85b   :  { %v1374_v11 = vsel %vm80_vm0, %v4375_v2, -inf }
 0x85c   :  { %v976_v47 = vpop.xlane.xlu0 %975 }
 0x85d   :  { %v978_v48 = vsub.f32 %v969_v7, %v976_v47  ;;  %v1232_v49 = vpop.f32.mrf.mxu3 }
 0x85e   :  { %v1233_v50 = vadd.f32 %v1232_v49, %v4347_v42 }
 0x85f   :  { %v4360_v51 = vpop.eup %3756  ;;  %v981_v52 = vmul.f32 1.442695, %v978_v48 }
 0x860   :  { %v1238_v12 = vsel %vm80_vm0, %v1233_v50, -inf  ;;  %v983_v55 = vsel %vm80_vm0, %v4360_v51, 0.0 }
 0x861   :  { %3758 = vpow2.f32 %v981_v52  ;;  %1239 = vmax.xlane.f32.xlu0 %v1238_v12  ;;  %984 = vadd.xlane.f32.xlu1 %v983_v55 }
 0x867   :  { %v4368_v60 = vpop.eup %3758 }
 0x868   :  { %v986_v62 = vsel %vm80_vm0, %v4368_v60, 0.0 }
 0x869   :  { %987 = vadd.xlane.f32.xlu2 %v986_v62  ;;  %1372 = vmax.xlane.f32.xlu0 %v1371_v0 }
 0x871   :  { %1375 = vmax.xlane.f32.xlu2 %v1374_v11 }
 0x87a   :  { %3579 = vrot.lane.b32.xlu1 %v4382_v16, %s3879_s27 }
 0x889   :  { %3574 = vrot.lane.b32.xlu2 %v4386_v23, %s3879_s27 }
 0x8ae   :  { %v1097_v24 = vpop.xlane.xlu1 %1096 }
 0x8af   :  { %v1101_v27 = vsub.f32 %v1090_v14, %v1097_v24 }
 0x8b1   :  { %v1103_v28 = vmul.f32 1.442695, %v1101_v27 }
 0x8b3   :  { %3760 = vpow2.f32 %v1103_v28 }
 0x8b6   :  { %v1100_v33 = vpop.xlane.xlu2 %1099 }
 0x8b7   :  { %v1102_v25 = vsub.f32 %v1093_v56, %v1100_v33 }
 0x8b9   :  { %v4390_v26 = vpop.eup %3760  ;;  %v1105_v34 = vmul.f32 1.442695, %v1102_v25 }
 0x8ba   :  { %v1107_v3 = vsel %vm80_vm0, %v4390_v26, 0.0 }
 0x8bb   :  { %3762 = vpow2.f32 %v1105_v34  ;;  %1108 = vadd.xlane.f32.xlu0 %v1107_v3 }
 0x8c1   :  { %v4394_v36 = vpop.eup %3762 }
 0x8c2   :  { %v1110_v40 = vsel %vm80_vm0, %v4394_v36, 0.0 }
 0x8c3   :  { %1111 = vadd.xlane.f32.xlu1 %v1110_v40 }
 0x8cc   :  { %v1237_v7 = vpop.xlane.xlu1 %1236 }
 0x8cd   :  { %v1241_v8 = vsub.f32 %v1230_v44, %v1237_v7 }
 0x8cf   :  { %v1243_v37 = vmul.f32 1.442695, %v1241_v8 }
 0x8d1   :  { %3764 = vpow2.f32 %v1243_v37 }
 0x8d4   :  { %v1240_v14 = vpop.xlane.xlu0 %1239  ;;  %v985_v9 = vpop.xlane.xlu1 %984 }
 0x8d5   :  { %v1242_v10 = vsub.f32 %v1233_v50, %v1240_v14  ;;  %3766 = vrcp.f32 %v985_v9  ;;  %v1000_v47 = vand.u32 2147483648, %v985_v9  ;;  %v998_v49 = vand.u32 2147483647, %v985_v9 }
 0x8d6   :  { %vm994_vm14 = vweird.f32 %v985_v9 }
 0x8d7   :  { %v4398_v56 = vpop.eup %3764  ;;  %v1245_v38 = vmul.f32 1.442695, %v1242_v10  ;;  %v1001_v55 = vor.u32 1.1754944e-38, %v1000_v47  ;;  %vm999_vm3 = vcmp.eq.f32.partialorder %v998_v49, 8.507059e+37 }
 0x8d8   :  { %v1247_v43 = vsel %vm80_vm0, %v4398_v56, 0.0 }
 0x8d9   :  { %3768 = vpow2.f32 %v1245_v38  ;;  %1248 = vadd.xlane.f32.xlu0 %v1247_v43 }
 0x8db   :  { %v3767_v15 = vpop.eup %3766 }
 0x8dc   :  { %v990_v41 = vmul.f32 %v3767_v15, %v985_v9  ;;  %v988_v46 = vpop.xlane.xlu2 %987  ;;  %3589 = vrot.lane.b32.xlu1 %v4382_v16, %s3882_s30  ;;  %vm995_vm4 = vweird.f32 %v3767_v15  ;;  %v1373_v20 = vpop.xlane.xlu0 %1372 }
 0x8dd   :  { %3770 = vrcp.f32 %v988_v46  ;;  %vm996_vm2 = vmor %vm994_vm14, %vm995_vm4  ;;  %v1015_v21 = vand.u32 2147483648, %v988_v46  ;;  %v1013_v11 = vand.u32 2147483647, %v988_v46  ;;  %vm1009_vm7 = vweird.f32 %v988_v46 }
 0x8de   :  { %v991_v44 = vsub.f32 1.0, %v990_v41  ;;  %v1377_v22 = vsub.f32 %v4366_v6, %v1373_v20 }
 0x8df   :  { %v4404_v63 = vpop.eup %3768  ;;  %v1016_v54 = vor.u32 1.1754944e-38, %v1015_v21  ;;  %vm1014_vm9 = vcmp.eq.f32.partialorder %v1013_v11, 8.507059e+37 }
 0x8e0   :  { %v992_v48 = vmul.f32 %v3767_v15, %v991_v44  ;;  %v1250_v50 = vsel %vm80_vm0, %v4404_v63, 0.0  ;;  %v1379_v24 = vmul.f32 1.442695, %v1377_v22 }
 0x8e1   :  { %1251 = vadd.xlane.f32.xlu2 %v1250_v50 }
 0x8e2   :  { %v993_v52 = vadd.f32 %v3767_v15, %v992_v48  ;;  %3772 = vpow2.f32 %v1379_v24 }
 0x8e3   :  { %v3771_v12 = vpop.eup %3770 }
 0x8e4   :  { %v997_v57 = vsel %vm996_vm2, %v3767_v15, %v993_v52  ;;  %v1005_v59 = vmul.f32 %v3771_v12, %v988_v46  ;;  %3594 = vrot.lane.b32.xlu1 %v4386_v23, %s3881_s29  ;;  %vm1010_vm6 = vweird.f32 %v3771_v12  ;;  %v1376_v27 = vpop.xlane.xlu2 %1375 }
 0x8e5   :  { %v1002_v62 = vsel %vm999_vm3, %v1001_v55, %v997_v57  ;;  %vm1011_vm8 = vmor %vm1009_vm7, %vm1010_vm6  ;;  %v1378_v29 = vsub.f32 %v4375_v2, %v1376_v27 }
 0x8e6   :  { %v1006_v0 = vsub.f32 1.0, %v1005_v59  ;;  %v1003_v1 = vmul.f32 %v4360_v51, %v1002_v62 }
 0x8e7   :  { %v1381_v61 = vmul.f32 1.442695, %v1378_v29 }
 0x8e8   :  { %v1007_v4 = vmul.f32 %v3771_v12, %v1006_v0  ;;  %3410 = vmatmul.msk.f32.vlgmr.msra.gmra.mxu2 %vm80_vm0, %v1003_v1 }
 0x8e9   :  { %3774 = vpow2.f32 %v1381_v61 }
 0x8ea   :  { %v1008_v13 = vadd.f32 %v3771_v12, %v1007_v4 }
 0x8ec   :  { %v1012_v18 = vsel %vm1011_vm8, %v3771_v12, %v1008_v13  ;;  %3604 = vrot.lane.b32.xlu1 %v3603_v30, %s3877_s23  ;;  %v4426_v30 = vpop.eup %3772  ;;  %v3575_v31 = vpop.permute.xlu2 %3574 }
 0x8ed   :  { %3584 = vrot.lane.b32.xlu0 %v4386_v23, %s3882_s30  ;;  %v1017_v51 = vsel %vm1014_vm9, %v1016_v54, %v1012_v18  ;;  %v3576_v32 = vunpack.i.l.bf16 %v3575_v31  ;;  %v3577_v33 = vunpack.i.h.bf16 %v3575_v31 }
 0x8ee   :  { %v1018_v19 = vmul.f32 %v4368_v60, %v1017_v51  ;;  %v1383_v60 = vsel %vm80_vm0, %v4426_v30, 0.0 }
 0x8ef   :  { %v4430_v23 = vpop.eup %3774  ;;  %1177 = vmatpush.msrb.mxu2 %v3576_v32 }
 0x8f0   :  { %3411 = vmatmul.msk.f32.gmra.mxu2 %vm80_vm0, %v1018_v19  ;;  %v1386_v6 = vsel %vm80_vm0, %v4430_v23, 0.0 }
 0x8f1   :  { %1178 = vmatpush.msrb.mxu2 %v3577_v33 }
 0x8f4   :  { %3609 = vrot.lane.b32.xlu1 %v3608_v17, %s3877_s23  ;;  %v3580_v17 = vpop.permute.xlu1 %3579 }
 0x8f5   :  { %v3581_v28 = vunpack.i.l.bf16 %v3580_v17  ;;  %v3582_v2 = vunpack.i.h.bf16 %v3580_v17 }
 0x8f7   :  { %1179 = vmatpush.msrb.mxu2 %v3581_v28 }
 0x8f9   :  { %1180 = vmatpush.msrb.mxu2 %v3582_v2 }
 0x917   :  { %1384 = vadd.xlane.f32.xlu0 %v1383_v60 }
 0x91f   :  { %1387 = vadd.xlane.f32.xlu0 %v1386_v6 }
 0x92e   :  { %v1109_v25 = vpop.xlane.xlu0 %1108 }
 0x92f   :  { %3776 = vrcp.f32 %v1109_v25  ;;  %v1124_v8 = vand.u32 2147483648, %v1109_v25  ;;  %v1122_v14 = vand.u32 2147483647, %v1109_v25  ;;  %vm1118_vm11 = vweird.f32 %v1109_v25 }
 0x931   :  { %v1125_v38 = vor.u32 1.1754944e-38, %v1124_v8  ;;  %vm1123_vm13 = vcmp.eq.f32.partialorder %v1122_v14, 8.507059e+37 }
 0x933   :  { %3599 = vrot.lane.b32.xlu0 %v4382_v16, %s3881_s29 }
 0x935   :  { %v3777_v34 = vpop.eup %3776 }
 0x936   :  { %v1114_v3 = vmul.f32 %v3777_v34, %v1109_v25  ;;  %v1112_v40 = vpop.xlane.xlu1 %1111  ;;  %vm1119_vm10 = vweird.f32 %v3777_v34 }
 0x937   :  { %3778 = vrcp.f32 %v1112_v40  ;;  %vm1120_vm12 = vmor %vm1118_vm11, %vm1119_vm10  ;;  %v1139_v44 = vand.u32 2147483648, %v1112_v40  ;;  %v1137_v48 = vand.u32 2147483647, %v1112_v40  ;;  %vm1133_vm14 = vweird.f32 %v1112_v40 }
 0x938   :  { %v1115_v7 = vsub.f32 1.0, %v1114_v3 }
 0x939   :  { %v1140_v50 = vor.u32 1.1754944e-38, %v1139_v44  ;;  %vm1138_vm3 = vcmp.eq.f32.partialorder %v1137_v48, 8.507059e+37 }
 0x93a   :  { %v1116_v37 = vmul.f32 %v3777_v34, %v1115_v7 }
 0x93c   :  { %v1117_v9 = vadd.f32 %v3777_v34, %v1116_v37 }
 0x93d   :  { %v3779_v10 = vpop.eup %3778 }
 0x93e   :  { %v1121_v43 = vsel %vm1120_vm12, %v3777_v34, %v1117_v9  ;;  %v1129_v15 = vmul.f32 %v3779_v10, %v1112_v40  ;;  %vm1134_vm4 = vweird.f32 %v3779_v10 }
 0x93f   :  { %v1126_v41 = vsel %vm1123_vm13, %v1125_v38, %v1121_v43  ;;  %vm1135_vm2 = vmor %vm1133_vm14, %vm1134_vm4 }
 0x940   :  { %v1130_v46 = vsub.f32 1.0, %v1129_v15  ;;  %v1127_v16 = vmul.f32 %v4390_v26, %v1126_v41 }
 0x942   :  { %v1131_v47 = vmul.f32 %v3779_v10, %v1130_v46  ;;  %3418 = vmatmul.msk.f32.vlgmr.msrb.gmra.mxu2 %vm80_vm0, %v1127_v16 }
 0x944   :  { %v1132_v49 = vadd.f32 %v3779_v10, %v1131_v47 }
 0x946   :  { %v1136_v52 = vsel %vm1135_vm2, %v3779_v10, %v1132_v49 }
 0x947   :  { %v1141_v12 = vsel %vm1138_vm3, %v1140_v50, %v1136_v52 }
 0x948   :  { %v1142_v55 = vmul.f32 %v4394_v36, %v1141_v12 }
 0x94a   :  { %3419 = vmatmul.msk.f32.gmra.mxu2 %vm80_vm0, %v1142_v55 }
 0x94c   :  { %v4440_v26 = vpop.xlane.xlu0 %1248 }
 0x94d   :  { %3780 = vrcp.f32 %v4440_v26  ;;  %v1264_v10 = vand.u32 2147483648, %v4440_v26  ;;  %vm1258_vm13 = vweird.f32 %v4440_v26  ;;  %v1262_v43 = vand.u32 2147483647, %v4440_v26 }
 0x94e   :  { %v3590_v57 = vpop.permute.xlu1 %3589 }
 0x94f   :  { %v3591_v11 = vunpack.i.l.bf16 %v3590_v57  ;;  %v3592_v13 = vunpack.i.h.bf16 %v3590_v57  ;;  %v1265_v44 = vor.u32 1.1754944e-38, %v1264_v10  ;;  %vm1263_vm3 = vcmp.eq.f32.partialorder %v1262_v43, 8.507059e+37 }
 0x953   :  { %v3781_v18 = vpop.eup %3780 }
 0x954   :  { %v4443_v54 = vpop.xlane.xlu2 %1251  ;;  %v1254_v22 = vmul.f32 %v3781_v18, %v4440_v26  ;;  %vm1259_vm11 = vweird.f32 %v3781_v18 }
 0x955   :  { %vm1260_vm14 = vmor %vm1258_vm13, %vm1259_vm11  ;;  %v1279_v12 = vand.u32 2147483648, %v4443_v54 }
 0x956   :  { %v3595_v59 = vpop.permute.xlu1 %3594  ;;  %v1255_v60 = vsub.f32 1.0, %v1254_v22 }
 0x957   :  { %v3597_v62 = vunpack.i.h.bf16 %v3595_v59  ;;  %v3596_v0 = vunpack.i.l.bf16 %v3595_v59  ;;  %v1277_v59 = vand.u32 2147483647, %v4443_v54  ;;  %v1280_v26 = vor.u32 1.1754944e-38, %v1279_v12 }
 0x958   :  { %v1256_v2 = vmul.f32 %v3781_v18, %v1255_v60 }
 0x959   :  { %1313 = vmatpush.msra.mxu0 %v3596_v0 }
 0x95a   :  { %v1257_v14 = vadd.f32 %v3781_v18, %v1256_v2 }
 0x95b   :  { %1314 = vmatpush.msra.mxu0 %v3597_v62 }
 0x95c   :  { %v1261_v41 = vsel %vm1260_vm14, %v3781_v18, %v1257_v14 }
 0x95d   :  { %v1266_v49 = vsel %vm1263_vm3, %v1265_v44, %v1261_v41 }
 0x95e   :  { %v1267_v57 = vmul.f32 %v4398_v56, %v1266_v49  ;;  %v1590_v49 = vld [vmem:[%s5184_s4 + $0x80] sm:$0xff] }
 0x95f   :  { %v3585_v1 = vpop.permute.xlu0 %3584 }
 0x960   :  { %v3586_v21 = vunpack.i.l.bf16 %v3585_v1  ;;  %v3587_v4 = vunpack.i.h.bf16 %v3585_v1 }
 0x962   :  { %1449 = vmatpush.msra.mxu2 %v3586_v21 }
 0x964   :  { %1450 = vmatpush.msra.mxu2 %v3587_v4 }
 0x966   :  { %1451 = vmatpush.msra.mxu2 %v3591_v11  ;;  %v3605_v11 = vpop.permute.xlu1 %3604 }
 0x968   :  { %1452 = vmatpush.msra.mxu2 %v3592_v13  ;;  %v3607_v13 = vunpack.i.h.bf16 %v3605_v11 }
 0x96b   :  { %v1042_v1 = vpop.f32.mrf.mxu2 }
 0x96e   :  { %v3610_v18 = vpop.permute.xlu1 %3609 }
 0x973   :  { %v1045_v21 = vpop.f32.mrf.mxu2 }
 0x98a   :  { %v1385_v36 = vpop.xlane.xlu0 %1384 }
 0x98b   :  { %3782 = vrcp.f32 %v1385_v36  ;;  %v1400_v27 = vand.u32 2147483648, %v1385_v36  ;;  %v1398_v61 = vand.u32 2147483647, %v1385_v36  ;;  %vm1394_vm7 = vweird.f32 %v1385_v36 }
 0x98c   :  { %3784 = vrcp.f32 %v4443_v54 }
 0x98d   :  { %v1401_v6 = vor.u32 1.1754944e-38, %v1400_v27  ;;  %vm1399_vm9 = vcmp.eq.f32.partialorder %v1398_v61, 8.507059e+37 }
 0x991   :  { %v3783_v51 = vpop.eup %3782 }
 0x992   :  { %v1390_v19 = vmul.f32 %v3783_v51, %v1385_v36  ;;  %v1388_v20 = vpop.xlane.xlu0 %1387  ;;  %vm1395_vm6 = vweird.f32 %v3783_v51  ;;  %v3785_v31 = vpop.eup %3784  ;;  %v3606_v36 = vunpack.i.l.bf16 %v3605_v11 }
 0x993   :  { %3786 = vrcp.f32 %v1388_v20  ;;  %vm1396_vm8 = vmor %vm1394_vm7, %vm1395_vm6  ;;  %v1269_v25 = vmul.f32 %v3785_v31, %v4443_v54  ;;  %v1415_v7 = vand.u32 2147483648, %v1388_v20  ;;  %v1413_v37 = vand.u32 2147483647, %v1388_v20 }
 0x994   :  { %v1391_v24 = vsub.f32 1.0, %v1390_v19  ;;  %vm1409_vm12 = vweird.f32 %v1388_v20  ;;  %vm1274_vm6 = vweird.f32 %v3785_v31  ;;  %vm1273_vm7 = vweird.f32 %v4443_v54  ;;  %1525 = vmatpush.msrb.mxu3 %v3606_v36 }
 0x995   :  { %v1270_v9 = vsub.f32 1.0, %v1269_v25  ;;  %v1416_v15 = vor.u32 1.1754944e-38, %v1415_v7  ;;  %vm1414_vm2 = vcmp.eq.f32.partialorder %v1413_v37, 8.507059e+37  ;;  %v3696_v25 = vld [vmem:[%s5187_s5 + $0x6] ss:$0 sm:$0xff] }
 0x996   :  { %v1392_v29 = vmul.f32 %v3783_v51, %v1391_v24  ;;  %1526 = vmatpush.msrb.mxu3 %v3607_v13 }
 0x997   :  { %v1271_v46 = vmul.f32 %v3785_v31, %v1270_v9 }
 0x998   :  { %v1393_v32 = vadd.f32 %v3783_v51, %v1392_v29 }
 0x999   :  { %v3787_v17 = vpop.eup %3786  ;;  %v1272_v52 = vadd.f32 %v3785_v31, %v1271_v46 }
 0x99a   :  { %v1397_v28 = vsel %vm1396_vm8, %v3783_v51, %v1393_v32  ;;  %v1405_v33 = vmul.f32 %v3787_v17, %v1388_v20  ;;  %vm1410_vm10 = vweird.f32 %v3787_v17  ;;  %vm1275_vm8 = vmor %vm1273_vm7, %vm1274_vm6  ;;  %v3611_v51 = vunpack.i.l.bf16 %v3610_v18 }
 0x99b   :  { %v1402_v34 = vsel %vm1399_vm9, %v1401_v6, %v1397_v28  ;;  %vm1411_vm4 = vmor %vm1409_vm12, %vm1410_vm10  ;;  %vm1278_vm9 = vcmp.eq.f32.partialorder %v1277_v59, 8.507059e+37  ;;  %v1632_v59 = vld [vmem:[%s5184_s4 + $0xc8] sm:$0xff] }
 0x99c   :  { %v1406_v3 = vsub.f32 1.0, %v1405_v33  ;;  %v1403_v40 = vmul.f32 %v4426_v30, %v1402_v34  ;;  %1527 = vmatpush.msrb.mxu3 %v3611_v51 }
 0x99e   :  { %v1407_v8 = vmul.f32 %v3787_v17, %v1406_v3  ;;  %3434 = vmatmul.msk.f32.vlgmr.msra.gmra.mxu2 %vm80_vm0, %v1403_v40 }
 0x9a0   :  { %v1408_v38 = vadd.f32 %v3787_v17, %v1407_v8 }
 0x9a2   :  { %v1412_v30 = vsel %vm1411_vm4, %v3787_v17, %v1408_v38 }
 0x9a3   :  { %v1417_v16 = vsel %vm1414_vm2, %v1416_v15, %v1412_v30  ;;  %vm1637_vm2 = vcmask 523264  }
 0x9a4   :  { %v1418_v47 = vmul.f32 %v4430_v23, %v1417_v16  ;;  %v1276_v23 = vsel %vm1275_vm8, %v3785_v31, %v1272_v52 }
 0x9a5   :  { %v3600_v48 = vpop.permute.xlu0 %3599  ;;  %v1281_v62 = vsel %vm1278_vm9, %v1280_v26, %v1276_v23 }
 0x9a6   :  { %v3601_v50 = vunpack.i.l.bf16 %v3600_v48  ;;  %3435 = vmatmul.msk.f32.gmra.mxu2 %vm80_vm0, %v1418_v47  ;;  %v3602_v55 = vunpack.i.h.bf16 %v3600_v48  ;;  %v1282_v0 = vmul.f32 %v4404_v63, %v1281_v62  ;;  %v3612_v63 = vunpack.i.h.bf16 %v3610_v18  ;;  %v1592_v47 = vld [vmem:[%s5184_s4 + $0x90] sm:$0xff]  ;;  %v1591_v48 = vld [vmem:[%s5184_s4 + $0x88] sm:$0xff]  ;;  %v1631_v62 = vld [vmem:[%s5184_s4 + $0xc0] sm:$0xff] }
 0x9a8   :  { %1315 = vmatpush.msra.mxu0 %v3601_v50  ;;  %1528 = vmatpush.msrb.mxu3 %v3612_v63  ;;  %v3697_v63 = vld [vmem:[%s5187_s5 + $0xb] ss:$0 sm:$0xff] }
 0x9aa   :  { %1316 = vmatpush.msra.mxu0 %v3602_v55  ;;  %v1634_v55 = vld [vmem:[%s5184_s4 + $0xd8] sm:$0xff] }
 0x9ab   :  { %3426 = vmatmul.msk.f32.vlgmr.msra.gmra.mxu0 %vm80_vm0, %v1267_v57  ;;  %v1633_v57 = vld [vmem:[%s5184_s4 + $0xd0] sm:$0xff]  ;;  %1652 = vmatpush.msrb.mxu1 %v1634_v55  ;;  %v4550_v55 = vld [vmem:[%s5184_s4 + $0x118] sm:$0xff] }
 0x9ac   :  { %1784 = vmatpush.msra.mxu3 %v4550_v55 }
 0x9ad   :  { %1653 = vmatpush.msrb.mxu1 %v1633_v57  ;;  %v1726_v57 = vld [vmem:[%s5184_s4 + $0xf8] sm:$0xff] }
 0x9ae   :  { %1747 = vmatpush.msrb.mxu2 %v1726_v57 }
 0x9af   :  { %1654 = vmatpush.msrb.mxu1 %v1632_v59  ;;  %v4559_v59 = vld [vmem:[%s5184_s4 + $0x110] sm:$0xff] }
 0x9b0   :  { %1785 = vmatpush.msra.mxu3 %v4559_v59 }
 0x9b1   :  { %1655 = vmatpush.msrb.mxu1 %v1631_v62  ;;  %v3628_v62 = vpack.i.bf16 %v4559_v59, %v4550_v55 }
 0x9b3   :  { %3427 = vmatmul.msk.f32.gmra.mxu0 %vm80_vm0, %v1282_v0 }
 0x9c5   :  { %v1182_v4 = vpop.f32.mrf.mxu2 }
 0x9c6   :  { %1462 = vrot.lane.b32.xlu0 %v1182_v4, %s3884_s7 }
 0x9cd   :  { %v1185_v56 = vpop.f32.mrf.mxu2 }
 0x9ce   :  { %1464 = vrot.lane.b32.xlu2 %v1185_v56, %s3884_s7 }
 0xa21   :  { %v1454_v54 = vpop.f32.mrf.mxu2 }
 0xa22   :  { %1478 = vrot.lane.b32.xlu1 %v1454_v54, %s3886_s9 }
 0xa28   :  { %v1318_v19 = vpop.f32.mrf.mxu0  ;;  %v1465_v32 = vpop.permute.xlu2 %1464 }
 0xa29   :  { %1470 = vrot.lane.b32.xlu0 %v1318_v19, %s3885_s8  ;;  %v1457_v20 = vpop.f32.mrf.mxu2  ;;  %v1485_v17 = vsel %vm154_vm1, %v1045_v21, %v1465_v32  ;;  %v1630_v21 = vld [vmem:[%s5184_s4 + $0xb8] sm:$0xff] }
 0xa2a   :  { %1480 = vrot.lane.b32.xlu1 %v1457_v20, %s3886_s9  ;;  %1656 = vmatpush.msrb.mxu1 %v1630_v21  ;;  %v1723_v21 = vld [vmem:[%s5184_s4 + $0xe0] sm:$0xff] }
 0xa30   :  { %v1321_v22 = vpop.f32.mrf.mxu0 }
 0xa31   :  { %1472 = vrot.lane.b32.xlu0 %v1321_v22, %s3885_s8  ;;  %v3698_v22 = vld [vmem:[%s5187_s5 + $0xc] ss:$0 sm:$0xff] }
 0xa38   :  { %v1463_v24 = vpop.permute.xlu0 %1462 }
 0xa39   :  { %v1484_v29 = vsel %vm154_vm1, %v1042_v1, %v1463_v24 }
 0xa94   :  { %v1479_v27 = vpop.permute.xlu1 %1478 }
 0xa9b   :  { %v1471_v61 = vpop.permute.xlu0 %1470 }
 0xa9c   :  { %v1486_v60 = vsel %vm188_vm5, %v1484_v29, %v1471_v61  ;;  %v1481_v28 = vpop.permute.xlu1 %1480 }
 0xa9d   :  { %v1488_v31 = vsel %vm662_vm15, %v1486_v60, %v1479_v27 }
 0xa9e   :  { %3436 = vmatmul.msk.f32.vlgmr.msrb.gmra.mxu3 %vm80_vm0, %v1488_v31 }
 0xaa3   :  { %v1473_v6 = vpop.permute.xlu0 %1472 }
 0xaa4   :  { %v1487_v33 = vsel %vm188_vm5, %v1485_v17, %v1473_v6 }
 0xaa5   :  { %v1489_v2 = vsel %vm662_vm15, %v1487_v33, %v1481_v28  ;;  %v1629_v28 = vld [vmem:[%s5184_s4 + $0xb0] sm:$0xff]  ;;  %v1628_v33 = vld [vmem:[%s5184_s4 + $0xa8] sm:$0xff] }
 0xaa6   :  { %3437 = vmatmul.msk.f32.gmra.mxu3 %vm80_vm0, %v1489_v2  ;;  %1657 = vmatpush.msrb.mxu1 %v1629_v28  ;;  %v1627_v2 = vld [vmem:[%s5184_s4 + $0xa0] sm:$0xff] }
 0xaa8   :  { %1658 = vmatpush.msrb.mxu1 %v1628_v33 }
 0xaaa   :  { %1659 = vmatpush.msrb.mxu1 %v1627_v2 }
 0xb21   :  { %v1530_v34 = vpop.f32.mrf.mxu3 }
 0xb22   :  { %v1531_v3 = vadd.f32 %v3696_v25, %v1530_v34 }
 0xb24   :  { %v1536_v40 = vadd.f32 %v1531_v3, %v4251_v5 }
 0xb26   :  { %v1540_v7 = vsel %vm80_vm0, %v1536_v40, 0.0 }
 0xb27   :  { %1541 = vadd.xlane.f32.xlu0 %v1540_v7 }
 0xb29   :  { %v1533_v8 = vpop.f32.mrf.mxu3 }
 0xb2a   :  { %v1534_v37 = vadd.f32 %v3696_v25, %v1533_v8  ;;  %v3699_v25 = vld [vmem:[%s5187_s5 + $0x7] ss:$0 sm:$0xff] }
 0xb2c   :  { %v1537_v14 = vadd.f32 %v1534_v37, %v4263_v53  ;;  %v1593_v53 = vld [vmem:[%s5184_s4 + $0x98] sm:$0xff] }
 0xb2d   :  { %1614 = vmatpush.msrb.mxu0 %v1593_v53 }
 0xb2e   :  { %v1543_v9 = vsel %vm80_vm0, %v1537_v14, 0.0 }
 0xb2f   :  { %1544 = vadd.xlane.f32.xlu1 %v1543_v9  ;;  %1615 = vmatpush.msrb.mxu0 %v1592_v47 }
 0xb31   :  { %1616 = vmatpush.msrb.mxu0 %v1591_v48 }
 0xb33   :  { %1617 = vmatpush.msrb.mxu0 %v1590_v49 }
 0xb9a   :  { %v1542_v10 = vpop.xlane.xlu0 %1541 }
 0xb9b   :  { %v1546_v38 = vmul.f32 %v1542_v10, %v4215_v58 }
 0xb9d   :  { %v1548_v43 = vsub.f32 %v1536_v40, %v1546_v38 }
 0xb9f   :  { %v1550_v15 = vmul.f32 %v1548_v43, %v1548_v43 }
 0xba1   :  { %v1552_v30 = vsel %vm80_vm0, %v1550_v15, 0.0 }
 0xba2   :  { %1553 = vadd.xlane.f32.xlu2 %v1552_v30  ;;  %v1545_v41 = vpop.xlane.xlu1 %1544 }
 0xba3   :  { %v1547_v5 = vmul.f32 %v1545_v41, %v4215_v58 }
 0xba5   :  { %v1549_v46 = vsub.f32 %v1537_v14, %v1547_v5  ;;  %v3700_v14 = vld [vmem:[%s5187_s5 + $0x8] ss:$0 sm:$0xff] }
 0xba7   :  { %v1551_v16 = vmul.f32 %v1549_v46, %v1549_v46 }
 0xba9   :  { %v1555_v44 = vsel %vm80_vm0, %v1551_v16, 0.0 }
 0xbaa   :  { %1556 = vadd.xlane.f32.xlu0 %v1555_v44 }
 0xc15   :  { %v1554_v50 = vpop.xlane.xlu2 %1553 }
 0xc16   :  { %v1558_v52 = vmul.f32 %v1554_v50, %v4215_v58 }
 0xc18   :  { %v1560_v12 = vadd.f32 1e-05, %v1558_v52 }
 0xc1a   :  { %3788 = vrsqrt.f32 %v1560_v12  ;;  %vm1568_vm11 = vweird.f32 %v1560_v12 }
 0xc1d   :  { %v1557_v23 = vpop.xlane.xlu0 %1556 }
 0xc1e   :  { %v1559_v26 = vmul.f32 %v1557_v23, %v4215_v58  ;;  %v1725_v23 = vld [vmem:[%s5184_s4 + $0xf0] sm:$0xff] }
 0xc1f   :  { %1748 = vmatpush.msrb.mxu2 %v1725_v23 }
 0xc20   :  { %v3789_v0 = vpop.eup %3788  ;;  %v1561_v1 = vadd.f32 1e-05, %v1559_v26  ;;  %v4568_v26 = vld [vmem:[%s5184_s4 + $0x108] sm:$0xff] }
 0xc21   :  { %v1563_v4 = vmul.f32 %v3789_v0, %v1560_v12  ;;  %vm1569_vm10 = vweird.f32 %v3789_v0  ;;  %1786 = vmatpush.msra.mxu3 %v4568_v26 }
 0xc22   :  { %3790 = vrsqrt.f32 %v1561_v1  ;;  %vm1570_vm12 = vmor %vm1568_vm11, %vm1569_vm10  ;;  %vm1578_vm4 = vweird.f32 %v1561_v1 }
 0xc23   :  { %v1564_v56 = vmul.f32 %v3789_v0, %v1563_v4 }
 0xc25   :  { %v1565_v11 = vmul.f32 0.5, %v1564_v56 }
 0xc27   :  { %v1566_v13 = vsub.f32 1.5, %v1565_v11 }
 0xc28   :  { %v3791_v36 = vpop.eup %3790 }
 0xc29   :  { %v1567_v54 = vmul.f32 %v3789_v0, %v1566_v13  ;;  %v1573_v18 = vmul.f32 %v3791_v36, %v1561_v1  ;;  %vm1579_vm13 = vweird.f32 %v3791_v36  ;;  %v4579_v1 = vld [vmem:[%s5184_s4 + $0x100] sm:$0xff] }
 0xc2a   :  { %vm1580_vm14 = vmor %vm1578_vm4, %vm1579_vm13  ;;  %v3633_v4 = vpack.i.bf16 %v4579_v1, %v4568_v26  ;;  %1787 = vmatpush.msra.mxu3 %v4579_v1 }
 0xc2b   :  { %v1571_v51 = vsel %vm1570_vm12, %v3789_v0, %v1567_v54  ;;  %v1574_v19 = vmul.f32 %v3791_v36, %v1573_v18  ;;  %v1724_v0 = vld [vmem:[%s5184_s4 + $0xe8] sm:$0xff] }
 0xc2c   :  { %v1582_v20 = vmul.f32 %v1571_v51, %v1548_v43  ;;  %1749 = vmatpush.msrb.mxu2 %v1724_v0 }
 0xc2d   :  { %v1575_v24 = vmul.f32 0.5, %v1574_v19 }
 0xc2e   :  { %v1585_v27 = vmul.f32 %v3697_v63, %v1582_v20  ;;  %1750 = vmatpush.msrb.mxu2 %v1723_v21 }
 0xc2f   :  { %v1576_v29 = vsub.f32 1.5, %v1575_v24 }
 0xc30   :  { %v1588_v61 = vadd.f32 %v3698_v22, %v1585_v27 }
 0xc31   :  { %v1577_v60 = vmul.f32 %v3791_v36, %v1576_v29 }
 0xc32   :  { %3438 = vmatmul.msk.f32.vlgmr.msrb.gmra.mxu0 %vm80_vm0, %v1588_v61 }
 0xc33   :  { %v1581_v31 = vsel %vm1580_vm14, %v3791_v36, %v1577_v60 }
 0xc34   :  { %v1583_v32 = vmul.f32 %v1581_v31, %v1549_v46 }
 0xc36   :  { %v1586_v17 = vmul.f32 %v3697_v63, %v1583_v32 }
 0xc38   :  { %v1589_v6 = vadd.f32 %v3698_v22, %v1586_v17  ;;  %v3702_v17 = vld [vmem:[%s5187_s5 + $0xe] ss:$0 sm:$0xff] }
 0xc3a   :  { %3439 = vmatmul.msk.f32.gmra.mxu0 %vm80_vm0, %v1589_v6 }
 0xcaf   :  { %v1619_v34 = vpop.f32.mrf.mxu0 }
 0xcb0   :  { %v1620_v3 = vadd.f32 %v3699_v25, %v1619_v34  ;;  %v4602_v34 = vld [vmem:[%s5186_s1] sm:$0xff] }
 0xcb2   :  { %v1625_v40 = vmax.f32 %v1620_v3, 0.0 }
 0xcb4   :  { %3440 = vmatmul.msk.f32.vlgmr.msrb.gmra.mxu1 %vm1637_vm2, %v1625_v40 }
 0xcb7   :  { %v1622_v7 = vpop.f32.mrf.mxu0 }
 0xcb8   :  { %v1623_v8 = vadd.f32 %v3699_v25, %v1622_v7 }
 0xcba   :  { %v1626_v37 = vmax.f32 %v1623_v8, 0.0 }
 0xcbc   :  { %3441 = vmatmul.msk.f32.gmra.mxu1 %vm1637_vm2, %v1626_v37 }
 0xd31   :  { %v1661_v9 = vpop.f32.mrf.mxu1 }
 0xd32   :  { %v1662_v10 = vadd.f32 %v3700_v14, %v1661_v9 }
 0xd34   :  { %v1667_v38 = vadd.f32 %v1662_v10, %v1588_v61  ;;  %v3701_v61 = vld [vmem:[%s5187_s5 + $0xd] ss:$0 sm:$0xff]  ;;  %v3704_v10 = vld [vmem:[%s5187_s5 + $0x10] ss:$0 sm:$0xff] }
 0xd36   :  { %v1671_v43 = vsel %vm80_vm0, %v1667_v38, 0.0 }
 0xd37   :  { %1672 = vadd.xlane.f32.xlu1 %v1671_v43 }
 0xd39   :  { %v1664_v15 = vpop.f32.mrf.mxu1 }
 0xd3a   :  { %v1665_v30 = vadd.f32 %v3700_v14, %v1664_v15  ;;  %v4614_v14 = vld [vmem:[%s5186_s1 + $0x8] sm:$0xff] }
 0xd3c   :  { %v1668_v41 = vadd.f32 %v1665_v30, %v1589_v6  ;;  %v3703_v30 = vld [vmem:[%s5187_s5 + $0x11] ss:$0 sm:$0xff] }
 0xd3e   :  { %v1674_v5 = vsel %vm80_vm0, %v1668_v41, 0.0 }
 0xd3f   :  { %1675 = vadd.xlane.f32.xlu0 %v1674_v5 }
 0xdaa   :  { %v1673_v46 = vpop.xlane.xlu1 %1672 }
 0xdab   :  { %v1677_v16 = vmul.f32 %v1673_v46, %v4215_v58 }
 0xdad   :  { %v1679_v44 = vsub.f32 %v1667_v38, %v1677_v16 }
 0xdaf   :  { %v1681_v53 = vmul.f32 %v1679_v44, %v1679_v44 }
 0xdb1   :  { %v1683_v47 = vsel %vm80_vm0, %v1681_v53, 0.0 }
 0xdb2   :  { %v1676_v48 = vpop.xlane.xlu0 %1675  ;;  %1684 = vadd.xlane.f32.xlu1 %v1683_v47 }
 0xdb3   :  { %v1678_v49 = vmul.f32 %v1676_v48, %v4215_v58 }
 0xdb5   :  { %v1680_v50 = vsub.f32 %v1668_v41, %v1678_v49 }
 0xdb7   :  { %v1682_v52 = vmul.f32 %v1680_v50, %v1680_v50 }
 0xdb9   :  { %v1686_v12 = vsel %vm80_vm0, %v1682_v52, 0.0 }
 0xdba   :  { %1687 = vadd.xlane.f32.xlu2 %v1686_v12 }
 0xe25   :  { %v1685_v56 = vpop.xlane.xlu1 %1684 }
 0xe26   :  { %v1689_v11 = vmul.f32 %v1685_v56, %v4215_v58 }
 0xe28   :  { %v1691_v13 = vadd.f32 1e-05, %v1689_v11 }
 0xe2a   :  { %3792 = vrsqrt.f32 %v1691_v13  ;;  %vm1699_vm6 = vweird.f32 %v1691_v13 }
 0xe2d   :  { %v1688_v36 = vpop.xlane.xlu2 %1687 }
 0xe2e   :  { %v1690_v54 = vmul.f32 %v1688_v36, %v4215_v58 }
 0xe30   :  { %v3793_v18 = vpop.eup %3792  ;;  %v1692_v63 = vadd.f32 1e-05, %v1690_v54 }
 0xe31   :  { %v1694_v51 = vmul.f32 %v3793_v18, %v1691_v13  ;;  %vm1700_vm3 = vweird.f32 %v3793_v18 }
 0xe32   :  { %3794 = vrsqrt.f32 %v1692_v63  ;;  %vm1701_vm7 = vmor %vm1699_vm6, %vm1700_vm3  ;;  %vm1709_vm9 = vweird.f32 %v1692_v63 }
 0xe33   :  { %v1695_v19 = vmul.f32 %v3793_v18, %v1694_v51 }
 0xe35   :  { %v1696_v20 = vmul.f32 0.5, %v1695_v19 }
 0xe37   :  { %v1697_v22 = vsub.f32 1.5, %v1696_v20 }
 0xe38   :  { %v3795_v24 = vpop.eup %3794 }
 0xe39   :  { %v1698_v27 = vmul.f32 %v3793_v18, %v1697_v22  ;;  %v1704_v29 = vmul.f32 %v3795_v24, %v1692_v63  ;;  %vm1710_vm8 = vweird.f32 %v3795_v24 }
 0xe3a   :  { %vm1711_vm10 = vmor %vm1709_vm9, %vm1710_vm8 }
 0xe3b   :  { %v1702_v60 = vsel %vm1701_vm7, %v3793_v18, %v1698_v27  ;;  %v1705_v31 = vmul.f32 %v3795_v24, %v1704_v29 }
 0xe3c   :  { %v1713_v32 = vmul.f32 %v1702_v60, %v1679_v44 }
 0xe3d   :  { %v1706_v6 = vmul.f32 0.5, %v1705_v31 }
 0xe3e   :  { %v1716_v28 = vmul.f32 %v3701_v61, %v1713_v32 }
 0xe3f   :  { %v1707_v33 = vsub.f32 1.5, %v1706_v6 }
 0xe40   :  { %v4595_v2 = vadd.f32 %v3702_v17, %v1716_v28 }
 0xe41   :  { %v1708_v25 = vmul.f32 %v3795_v24, %v1707_v33 }
 0xe42   :  { %3444 = vmatmul.msk.f32.vlgmr.msra.gmra.mxu3 %vm80_vm0, %v4595_v2  ;;  %v1721_v3 = vadd.f32 %v4602_v34, %v4595_v2 }
 0xe43   :  { %v1712_v40 = vsel %vm1711_vm10, %v3795_v24, %v1708_v25 }
 0xe44   :  { %3442 = vmatmul.msk.f32.vlgmr.msrb.gmra.mxu2 %vm80_vm0, %v1721_v3  ;;  %v1714_v7 = vmul.f32 %v1712_v40, %v1680_v50 }
 0xe46   :  { %v1717_v8 = vmul.f32 %v3701_v61, %v1714_v7 }
 0xe48   :  { %v4607_v37 = vadd.f32 %v3702_v17, %v1717_v8 }
 0xe4a   :  { %3445 = vmatmul.msk.f32.gmra.mxu3 %vm80_vm0, %v4607_v37  ;;  %v1722_v9 = vadd.f32 %v4614_v14, %v4607_v37 }
 0xe4c   :  { %3443 = vmatmul.msk.f32.gmra.mxu2 %vm80_vm0, %v1722_v9 }
 0xec5   :  { %v1789_v38 = vpop.f32.mrf.mxu3 }
 0xec6   :  { %v1790_v46 = vadd.f32 %v3703_v30, %v1789_v38 }
 0xec7   :  { %v1752_v43 = vpop.f32.mrf.mxu2 }
 0xec8   :  { %v1753_v15 = vadd.f32 %v3704_v10, %v1752_v43 }
 0xeca   :  { %1916 = vrot.lane.b32.xlu1 %v1753_v15, %s3876_s22  ;;  %v1758_v41 = vmul.f32 0.35355338, %v1753_v15 }
 0xecc   :  { %1912 = vrot.lane.b32.xlu2 %v1758_v41, %s3879_s27 }
 0xecd   :  { %v1792_v5 = vpop.f32.mrf.mxu3 }
 0xece   :  { %v1793_v16 = vadd.f32 %v3703_v30, %v1792_v5 }
 0xecf   :  { %v1755_v44 = vpop.f32.mrf.mxu2 }
 0xed0   :  { %v1756_v53 = vadd.f32 %v3704_v10, %v1755_v44  ;;  %1903 = vmatpush.msra.mxu1 %v1793_v16  ;;  %v4627_v47 = vpack.i.bf16 %v1790_v46, %v1793_v16 }
 0xed2   :  { %1904 = vmatpush.msra.mxu1 %v1790_v46  ;;  %1918 = vrot.lane.b32.xlu0 %v1756_v53, %s3876_s22  ;;  %v1759_v48 = vmul.f32 0.35355338, %v1756_v53 }
 0xed3   :  { %1798 = vrot.lane.b32.xlu1 %v1753_v15, %s3877_s23 }
 0xed4   :  { %1914 = vrot.lane.b32.xlu2 %v1759_v48, %s3879_s27 }
 0xeda   :  { %1800 = vrot.lane.b32.xlu0 %v1756_v53, %s3877_s23 }
 0xedb   :  { %2162 = vrot.lane.b32.xlu1 %v1753_v15, %s3880_s28 }
 0xedc   :  { %2158 = vrot.lane.b32.xlu2 %v1758_v41, %s3882_s30 }
 0xee2   :  { %2164 = vrot.lane.b32.xlu0 %v1756_v53, %s3880_s28 }
 0xee3   :  { %2040 = vrot.lane.b32.xlu1 %v1753_v15, %s3878_s26 }
 0xee4   :  { %2160 = vrot.lane.b32.xlu2 %v1759_v48, %s3882_s30 }
 0xeea   :  { %2042 = vrot.lane.b32.xlu0 %v1756_v53, %s3878_s26 }
 0xeeb   :  { %2038 = vrot.lane.b32.xlu1 %v1759_v48, %s3881_s29 }
 0xef2   :  { %2036 = vrot.lane.b32.xlu0 %v1758_v41, %s3881_s29 }
 0xf26   :  { %v1913_v52 = vpop.permute.xlu2 %1912 }
 0xf2e   :  { %v1915_v23 = vpop.permute.xlu2 %1914 }
 0xf36   :  { %v2159_v56 = vpop.permute.xlu2 %2158 }
 0xf3c   :  { %v1917_v49 = vpop.permute.xlu1 %1916 }
 0xf3e   :  { %v2161_v36 = vpop.permute.xlu2 %2160 }
 0xf44   :  { %v1919_v50 = vpop.permute.xlu0 %1918 }
 0xf45   :  { %3452 = vmatpush.xpose.msk.msra.mxu2 %vm154_vm1, %v1919_v50  ;;  %v1799_v12 = vpop.permute.xlu1 %1798 }
 0xf49   :  { %3453 = vmatpush.xpose.msk.msra.mxu2 %vm154_vm1, %v1917_v49 }
 0xf4c   :  { %v1801_v57 = vpop.permute.xlu0 %1800  ;;  %3454 = vmatmul.msk.f32.vlgmr.msra.gmra.mxu2 %vm154_vm1, %v1913_v52 }
 0xf4d   :  { %3446 = vmatpush.xpose.msk.msra.mxu0 %vm154_vm1, %v1801_v57  ;;  %v2163_v21 = vpop.permute.xlu1 %2162 }
 0xf51   :  { %3447 = vmatpush.xpose.msk.msra.mxu0 %vm154_vm1, %v1799_v12 }
 0xf54   :  { %v2165_v0 = vpop.permute.xlu0 %2164  ;;  %3448 = vmatmul.msk.f32.vlgmr.msra.gmra.mxu0 %vm154_vm1, %v1758_v41  ;;  %3455 = vmatmul.msk.f32.gmra.mxu2 %vm154_vm1, %v1915_v23 }
 0xf55   :  { %3464 = vmatpush.xpose.msk.msrb.mxu2 %vm154_vm1, %v2165_v0  ;;  %v2041_v13 = vpop.permute.xlu1 %2040 }
 0xf59   :  { %3465 = vmatpush.xpose.msk.msrb.mxu2 %vm154_vm1, %v2163_v21 }
 0xf5c   :  { %v2043_v11 = vpop.permute.xlu0 %2042  ;;  %3449 = vmatmul.msk.f32.gmra.mxu0 %vm154_vm1, %v1759_v48  ;;  %3466 = vmatmul.msk.f32.vlgmr.msrb.gmra.mxu2 %vm154_vm1, %v2159_v56 }
 0xf5d   :  { %3458 = vmatpush.xpose.msk.msrb.mxu0 %vm154_vm1, %v2043_v11  ;;  %v2039_v18 = vpop.permute.xlu1 %2038 }
 0xf61   :  { %3459 = vmatpush.xpose.msk.msrb.mxu0 %vm154_vm1, %v2041_v13 }
 0xf64   :  { %v2037_v54 = vpop.permute.xlu0 %2036  ;;  %3467 = vmatmul.msk.f32.gmra.mxu2 %vm154_vm1, %v2161_v36 }
 0xf65   :  { %3460 = vmatmul.msk.f32.vlgmr.msrb.gmra.mxu0 %vm154_vm1, %v2037_v54 }
 0xf6d   :  { %3461 = vmatmul.msk.f32.gmra.mxu0 %vm154_vm1, %v2039_v18 }
 0xfcf   :  { %v1945_v63 = vpop.f32.mrf.mxu2 }
 0xfd0   :  { %v1946_v51 = vadd.f32 %v1945_v63, %v4027_v39 }
 0xfd1   :  { %v1829_v19 = vpop.f32.mrf.mxu0 }
 0xfd2   :  { %v1830_v20 = vadd.f32 %v1829_v19, %v4027_v39  ;;  %v1951_v22 = vsel %vm188_vm5, %v1946_v51, -inf }
 0xfd3   :  { %1952 = vmax.xlane.f32.xlu2 %v1951_v22 }
 0xfd4   :  { %v1835_v24 = vsel %vm188_vm5, %v1830_v20, -inf }
 0xfd5   :  { %1836 = vmax.xlane.f32.xlu0 %v1835_v24 }
 0xfd7   :  { %v1948_v27 = vpop.f32.mrf.mxu2 }
 0xfd8   :  { %v1949_v29 = vadd.f32 %v1948_v27, %v4042_v45 }
 0xfd9   :  { %v1832_v61 = vpop.f32.mrf.mxu0 }
 0xfda   :  { %v1833_v60 = vadd.f32 %v1832_v61, %v4042_v45  ;;  %v1954_v31 = vsel %vm188_vm5, %v1949_v29, -inf }
 0xfdb   :  { %1955 = vmax.xlane.f32.xlu1 %v1954_v31 }
 0xfdc   :  { %v1838_v32 = vsel %vm188_vm5, %v1833_v60, -inf }
 0xfdd   :  { %1839 = vmax.xlane.f32.xlu2 %v1838_v32 }
 0xfdf   :  { %v2191_v17 = vpop.f32.mrf.mxu2 }
 0xfe0   :  { %v2192_v6 = vadd.f32 %v2191_v17, %v4027_v39 }
 0xfe2   :  { %v2069_v28 = vpop.f32.mrf.mxu0  ;;  %v2197_v33 = vsel %vm188_vm5, %v2192_v6, -inf }
 0xfe3   :  { %v2070_v25 = vadd.f32 %v2069_v28, %v4027_v39  ;;  %2198 = vmax.xlane.f32.xlu0 %v2197_v33 }
 0xfe5   :  { %v2075_v3 = vsel %vm188_vm5, %v2070_v25, -inf }
 0xfe6   :  { %2076 = vmax.xlane.f32.xlu2 %v2075_v3 }
 0xfe7   :  { %v2194_v40 = vpop.f32.mrf.mxu2 }
 0xfe8   :  { %v2195_v7 = vadd.f32 %v2194_v40, %v4042_v45 }
 0xfea   :  { %v2072_v8 = vpop.f32.mrf.mxu0  ;;  %v2200_v9 = vsel %vm188_vm5, %v2195_v7, -inf }
 0xfeb   :  { %v2073_v10 = vadd.f32 %v2072_v8, %v4042_v45  ;;  %2201 = vmax.xlane.f32.xlu1 %v2200_v9 }
 0xfed   :  { %v2078_v38 = vsel %vm188_vm5, %v2073_v10, -inf }
 0xfee   :  { %2079 = vmax.xlane.f32.xlu0 %v2078_v38 }
0x1002   :  { %3614 = vrot.lane.b32.xlu0 %v4627_v47, %s3879_s27 }
0x1046   :  { %v1953_v39 = vpop.xlane.xlu2 %1952 }
0x1047   :  { %v1957_v43 = vsub.f32 %v1946_v51, %v1953_v39 }
0x1048   :  { %v1837_v15 = vpop.xlane.xlu0 %1836 }
0x1049   :  { %v1959_v30 = vmul.f32 1.442695, %v1957_v43  ;;  %v1841_v41 = vsub.f32 %v1830_v20, %v1837_v15 }
0x104b   :  { %3796 = vpow2.f32 %v1959_v30  ;;  %v1843_v5 = vmul.f32 1.442695, %v1841_v41 }
0x104d   :  { %3798 = vpow2.f32 %v1843_v5 }
0x104e   :  { %v1956_v46 = vpop.xlane.xlu1 %1955 }
0x104f   :  { %v1958_v16 = vsub.f32 %v1949_v29, %v1956_v46 }
0x1050   :  { %v1840_v44 = vpop.xlane.xlu2 %1839 }
0x1051   :  { %v4675_v53 = vpop.eup %3796  ;;  %v1961_v45 = vmul.f32 1.442695, %v1958_v16  ;;  %v1842_v48 = vsub.f32 %v1833_v60, %v1840_v44 }
0x1052   :  { %v1963_v49 = vsel %vm188_vm5, %v4675_v53, 0.0 }
0x1053   :  { %v4679_v50 = vpop.eup %3798  ;;  %3800 = vpow2.f32 %v1961_v45  ;;  %v1845_v52 = vmul.f32 1.442695, %v1842_v48  ;;  %1964 = vadd.xlane.f32.xlu2 %v1963_v49 }
0x1054   :  { %v1847_v12 = vsel %vm188_vm5, %v4679_v50, 0.0 }
0x1055   :  { %3802 = vpow2.f32 %v1845_v52  ;;  %1848 = vadd.xlane.f32.xlu1 %v1847_v12 }
0x1056   :  { %v2199_v57 = vpop.xlane.xlu0 %2198 }
0x1057   :  { %v2203_v23 = vsub.f32 %v2192_v6, %v2199_v57 }
0x1059   :  { %v4683_v0 = vpop.eup %3800  ;;  %v2205_v21 = vmul.f32 1.442695, %v2203_v23  ;;  %v2077_v56 = vpop.xlane.xlu2 %2076 }
0x105a   :  { %v2081_v11 = vsub.f32 %v2070_v25, %v2077_v56  ;;  %v1966_v13 = vsel %vm188_vm5, %v4683_v0, 0.0 }
0x105b   :  { %v4687_v36 = vpop.eup %3802  ;;  %3804 = vpow2.f32 %v2205_v21  ;;  %1967 = vadd.xlane.f32.xlu0 %v1966_v13 }
0x105c   :  { %v2083_v54 = vmul.f32 1.442695, %v2081_v11  ;;  %v1850_v18 = vsel %vm188_vm5, %v4687_v36, 0.0 }
0x105d   :  { %1851 = vadd.xlane.f32.xlu2 %v1850_v18 }
0x105e   :  { %3806 = vpow2.f32 %v2083_v54  ;;  %v2202_v63 = vpop.xlane.xlu1 %2201 }
0x105f   :  { %v2204_v51 = vsub.f32 %v2195_v7, %v2202_v63 }
0x1061   :  { %v4691_v19 = vpop.eup %3804  ;;  %v2207_v20 = vmul.f32 1.442695, %v2204_v51  ;;  %v2080_v22 = vpop.xlane.xlu0 %2079 }
0x1062   :  { %v2082_v24 = vsub.f32 %v2073_v10, %v2080_v22  ;;  %v2209_v27 = vsel %vm188_vm5, %v4691_v19, 0.0 }
0x1063   :  { %3808 = vpow2.f32 %v2207_v20  ;;  %2210 = vadd.xlane.f32.xlu1 %v2209_v27 }
0x1064   :  { %v4695_v29 = vpop.eup %3806  ;;  %v2085_v61 = vmul.f32 1.442695, %v2082_v24 }
0x1065   :  { %v2087_v60 = vsel %vm188_vm5, %v4695_v29, 0.0 }
0x1066   :  { %3810 = vpow2.f32 %v2085_v61  ;;  %2088 = vadd.xlane.f32.xlu2 %v2087_v60 }
0x1069   :  { %v4699_v31 = vpop.eup %3808 }
0x106a   :  { %v2212_v32 = vsel %vm188_vm5, %v4699_v31, 0.0 }
0x106b   :  { %2213 = vadd.xlane.f32.xlu1 %v2212_v32 }
0x106c   :  { %v4703_v17 = vpop.eup %3810 }
0x106d   :  { %v2090_v6 = vsel %vm188_vm5, %v4703_v17, 0.0 }
0x106e   :  { %2091 = vadd.xlane.f32.xlu2 %v2090_v6 }
0x106f   :  { %3624 = vrot.lane.b32.xlu0 %v4627_v47, %s3881_s29 }
0x1074   :  { %v3615_v28 = vpop.permute.xlu0 %3614 }
0x1075   :  { %v3616_v33 = vunpack.i.l.bf16 %v3615_v28  ;;  %v3617_v25 = vunpack.i.h.bf16 %v3615_v28 }
0x1077   :  { %2027 = vmatpush.msrb.mxu3 %v3616_v33  ;;  %3634 = vrot.lane.b32.xlu0 %v3633_v4, %s3877_s23 }
0x1079   :  { %2028 = vmatpush.msrb.mxu3 %v3617_v25 }
0x1084   :  { %3619 = vrot.lane.b32.xlu1 %v4627_v47, %s3882_s30 }
0x1086   :  { %3629 = vrot.lane.b32.xlu2 %v3628_v62, %s3877_s23 }
0x10c6   :  { %v1965_v3 = vpop.xlane.xlu2 %1964 }
0x10c7   :  { %3812 = vrcp.f32 %v1965_v3  ;;  %v1978_v38 = vand.u32 2147483647, %v1965_v3  ;;  %v1980_v47 = vand.u32 2147483648, %v1965_v3  ;;  %vm1974_vm12 = vweird.f32 %v1965_v3 }
0x10c8   :  { %v1849_v40 = vpop.xlane.xlu1 %1848 }
0x10c9   :  { %3814 = vrcp.f32 %v1849_v40  ;;  %v1864_v59 = vand.u32 2147483648, %v1849_v40  ;;  %v1862_v15 = vand.u32 2147483647, %v1849_v40  ;;  %vm1979_vm14 = vcmp.eq.f32.partialorder %v1978_v38, 8.507059e+37 }
0x10ca   :  { %v1981_v41 = vor.u32 1.1754944e-38, %v1980_v47  ;;  %vm1858_vm3 = vweird.f32 %v1849_v40 }
0x10cb   :  { %v1865_v49 = vor.u32 1.1754944e-38, %v1864_v59  ;;  %vm1863_vm7 = vcmp.eq.f32.partialorder %v1862_v15, 8.507059e+37 }
0x10cd   :  { %v3813_v7 = vpop.eup %3812 }
0x10ce   :  { %v1970_v8 = vmul.f32 %v3813_v7, %v1965_v3  ;;  %v1968_v9 = vpop.xlane.xlu0 %1967  ;;  %vm1975_vm11 = vweird.f32 %v3813_v7 }
0x10cf   :  { %v3815_v10 = vpop.eup %3814  ;;  %3816 = vrcp.f32 %v1968_v9  ;;  %vm1976_vm4 = vmor %vm1974_vm12, %vm1975_vm11  ;;  %v1995_v21 = vand.u32 2147483648, %v1968_v9  ;;  %v1993_v13 = vand.u32 2147483647, %v1968_v9  ;;  %vm1989_vm9 = vweird.f32 %v1968_v9 }
0x10d0   :  { %v1971_v26 = vsub.f32 1.0, %v1970_v8  ;;  %v1854_v1 = vmul.f32 %v3815_v10, %v1849_v40  ;;  %v4719_v4 = vpop.xlane.xlu2 %1851  ;;  %vm1859_vm13 = vweird.f32 %v3815_v10 }
0x10d1   :  { %3818 = vrcp.f32 %v4719_v4  ;;  %vm1860_vm6 = vmor %vm1858_vm3, %vm1859_vm13  ;;  %v1879_v63 = vand.u32 2147483648, %v4719_v4  ;;  %v1877_v24 = vand.u32 2147483647, %v4719_v4  ;;  %vm1873_vm12 = vweird.f32 %v4719_v4 }
0x10d2   :  { %v1972_v39 = vmul.f32 %v3813_v7, %v1971_v26  ;;  %v1855_v55 = vsub.f32 1.0, %v1854_v1  ;;  %vm1994_vm13 = vcmp.eq.f32.partialorder %v1993_v13, 8.507059e+37 }
0x10d3   :  { %v1880_v60 = vor.u32 1.1754944e-38, %v1879_v63 }
0x10d4   :  { %v1973_v62 = vadd.f32 %v3813_v7, %v1972_v39  ;;  %v1856_v43 = vmul.f32 %v3815_v10, %v1855_v55 }
0x10d5   :  { %v3817_v30 = vpop.eup %3816 }
0x10d6   :  { %v1977_v5 = vsel %vm1976_vm4, %v3813_v7, %v1973_v62  ;;  %v1857_v46 = vadd.f32 %v3815_v10, %v1856_v43  ;;  %v1985_v16 = vmul.f32 %v3817_v30, %v1968_v9  ;;  %v4722_v44 = vpop.xlane.xlu1 %2210  ;;  %vm1990_vm8 = vweird.f32 %v3817_v30 }
0x10d7   :  { %v3819_v45 = vpop.eup %3818  ;;  %v1982_v48 = vsel %vm1979_vm14, %v1981_v41, %v1977_v5  ;;  %vm1991_vm11 = vmor %vm1989_vm9, %vm1990_vm8  ;;  %vm1878_vm14 = vcmp.eq.f32.partialorder %v1877_v24, 8.507059e+37 }
0x10d8   :  { %v1861_v52 = vsel %vm1860_vm6, %v3815_v10, %v1857_v46  ;;  %v1986_v12 = vsub.f32 1.0, %v1985_v16  ;;  %v1869_v57 = vmul.f32 %v3819_v45, %v4719_v4  ;;  %v1983_v11 = vmul.f32 %v4675_v53, %v1982_v48 }
0x10d9   :  { %v1866_v23 = vsel %vm1863_vm7, %v1865_v49, %v1861_v52  ;;  %v2089_v56 = vpop.xlane.xlu2 %2088  ;;  %vm1874_vm10 = vweird.f32 %v3819_v45  ;;  %v1996_v53 = vor.u32 1.1754944e-38, %v1995_v21 }
0x10da   :  { %v1987_v54 = vmul.f32 %v3817_v30, %v1986_v12  ;;  %v1870_v18 = vsub.f32 1.0, %v1869_v57  ;;  %3820 = vrcp.f32 %v2089_v56  ;;  %3456 = vmatmul.msk.f32.vlgmr.msrb.gmra.mxu3 %vm188_vm5, %v1983_v11  ;;  %v1867_v51 = vmul.f32 %v4679_v50, %v1866_v23  ;;  %vm1875_vm4 = vmor %vm1873_vm12, %vm1874_vm10 }
0x10db   :  { %3822 = vrcp.f32 %v4722_v44  ;;  %v2104_v1 = vand.u32 2147483648, %v2089_v56  ;;  %v2102_v38 = vand.u32 2147483647, %v2089_v56  ;;  %vm2098_vm6 = vweird.f32 %v2089_v56 }
0x10dc   :  { %v1871_v20 = vmul.f32 %v3819_v45, %v1870_v18  ;;  %v1988_v22 = vadd.f32 %v3817_v30, %v1987_v54  ;;  %3450 = vmatmul.msk.f32.vlgmr.msra.gmra.mxu1 %vm188_vm5, %v1867_v51 }
0x10dd   :  { %v2105_v62 = vor.u32 1.1754944e-38, %v2104_v1  ;;  %vm2103_vm8 = vcmp.eq.f32.partialorder %v2102_v38, 8.507059e+37 }
0x10de   :  { %v1992_v27 = vsel %vm1991_vm11, %v3817_v30, %v1988_v22  ;;  %v1872_v61 = vadd.f32 %v3819_v45, %v1871_v20  ;;  %v4733_v28 = vpop.xlane.xlu1 %2213 }
0x10df   :  { %v1997_v32 = vsel %vm1994_vm13, %v1996_v53, %v1992_v27  ;;  %v2241_v53 = vand.u32 2147483648, %v4733_v28 }
0x10e0   :  { %v3821_v6 = vpop.eup %3820  ;;  %v1998_v50 = vmul.f32 %v4683_v0, %v1997_v32  ;;  %v1876_v33 = vsel %vm1875_vm4, %v3819_v45, %v1872_v61  ;;  %vm2220_vm4 = vweird.f32 %v4722_v44 }
0x10e1   :  { %v4736_v25 = vpop.eup %3822  ;;  %v2094_v3 = vmul.f32 %v3821_v6, %v2089_v56  ;;  %v2092_v40 = vpop.xlane.xlu2 %2091  ;;  %v1881_v8 = vsel %vm1878_vm14, %v1880_v60, %v1876_v33  ;;  %vm2099_vm3 = vweird.f32 %v3821_v6  ;;  %v2224_v56 = vand.u32 2147483647, %v4722_v44 }
0x10e2   :  { %v3625_v7 = vpop.permute.xlu0 %3624  ;;  %3824 = vrcp.f32 %v2092_v40  ;;  %3457 = vmatmul.msk.f32.gmra.mxu3 %vm188_vm5, %v1998_v50  ;;  %v1882_v26 = vmul.f32 %v4687_v36, %v1881_v8  ;;  %v2216_v0 = vmul.f32 %v4736_v25, %v4722_v44  ;;  %vm2100_vm7 = vmor %vm2098_vm6, %vm2099_vm3  ;;  %v2119_v45 = vand.u32 2147483648, %v2092_v40 }
0x10e3   :  { %v2095_v9 = vsub.f32 1.0, %v2094_v3  ;;  %3826 = vrcp.f32 %v4733_v28  ;;  %v3626_v10 = vunpack.i.l.bf16 %v3625_v7  ;;  %v3627_v47 = vunpack.i.h.bf16 %v3625_v7 }
0x10e4   :  { %3451 = vmatmul.msk.f32.gmra.mxu1 %vm188_vm5, %v1882_v26  ;;  %v2217_v59 = vsub.f32 1.0, %v2216_v0  ;;  %v2117_v49 = vand.u32 2147483647, %v2092_v40  ;;  %vm2113_vm10 = vweird.f32 %v2092_v40  ;;  %vm2221_vm11 = vweird.f32 %v4736_v25 }
0x10e5   :  { %v2096_v4 = vmul.f32 %v3821_v6, %v2095_v9  ;;  %2149 = vmatpush.msrb.mxu1 %v3626_v10  ;;  %v2120_v23 = vor.u32 1.1754944e-38, %v2119_v45  ;;  %vm2222_vm14 = vmor %vm2220_vm4, %vm2221_vm11  ;;  %vm2225_vm3 = vcmp.eq.f32.partialorder %v2224_v56, 8.507059e+37  ;;  %v2242_v60 = vor.u32 1.1754944e-38, %v2241_v53  ;;  %v2421_v45 = vld [vmem:[%s5184_s4 + $0x128] sm:$0xff] }
0x10e6   :  { %v2218_v46 = vmul.f32 %v4736_v25, %v2217_v59  ;;  %vm2118_vm13 = vcmp.eq.f32.partialorder %v2117_v49, 8.507059e+37  ;;  %v3705_v49 = vld [vmem:[%s5187_s5 + $0x12] ss:$0 sm:$0xff]  ;;  %v2415_v53 = vld [vmem:[%s5189_s3 + $0x28] sm:$0xff] }
0x10e7   :  { %v2097_v39 = vadd.f32 %v3821_v6, %v2096_v4  ;;  %2150 = vmatpush.msrb.mxu1 %v3627_v47 }
0x10e8   :  { %v3825_v55 = vpop.eup %3824  ;;  %v2219_v12 = vadd.f32 %v4736_v25, %v2218_v46 }
0x10e9   :  { %v3827_v43 = vpop.eup %3826  ;;  %v2101_v36 = vsel %vm2100_vm7, %v3821_v6, %v2097_v39  ;;  %v2109_v15 = vmul.f32 %v3825_v55, %v2092_v40  ;;  %vm2114_vm9 = vweird.f32 %v3825_v55  ;;  %vm2235_vm7 = vweird.f32 %v4733_v28 }
0x10ea   :  { %v2106_v30 = vsel %vm2103_vm8, %v2105_v62, %v2101_v36  ;;  %v2231_v16 = vmul.f32 %v3827_v43, %v4733_v28  ;;  %vm2115_vm12 = vmor %vm2113_vm10, %vm2114_vm9  ;;  %v2223_v54 = vsel %vm2222_vm14, %v4736_v25, %v2219_v12  ;;  %vm2236_vm6 = vweird.f32 %v3827_v43  ;;  %v3635_v10 = vpop.permute.xlu0 %3634 }
0x10eb   :  { %v2110_v41 = vsub.f32 1.0, %v2109_v15  ;;  %v2107_v5 = vmul.f32 %v4695_v29, %v2106_v30  ;;  %v2226_v29 = vand.u32 2147483648, %v4722_v44  ;;  %v2239_v44 = vand.u32 2147483647, %v4733_v28  ;;  %vm2237_vm8 = vmor %vm2235_vm7, %vm2236_vm6  ;;  %v3630_v28 = vpop.permute.xlu2 %3629 }
0x10ec   :  { %v2232_v57 = vsub.f32 1.0, %v2231_v16  ;;  %v3632_v3 = vunpack.i.h.bf16 %v3630_v28  ;;  %v3631_v40 = vunpack.i.l.bf16 %v3630_v28  ;;  %v3637_v26 = vunpack.i.h.bf16 %v3635_v10  ;;  %v2420_v16 = vld [vmem:[%s5184_s4 + $0x120] sm:$0xff] }
0x10ed   :  { %v2111_v48 = vmul.f32 %v3825_v55, %v2110_v41  ;;  %3462 = vmatmul.msk.f32.vlgmr.msrb.gmra.mxu1 %vm188_vm5, %v2107_v5  ;;  %v2227_v63 = vor.u32 1.1754944e-38, %v2226_v29  ;;  %vm2240_vm9 = vcmp.eq.f32.partialorder %v2239_v44, 8.507059e+37  ;;  %v3636_v0 = vunpack.i.l.bf16 %v3635_v10  ;;  %v2422_v41 = vld [vmem:[%s5184_s4 + $0x130] sm:$0xff]  ;;  %v2423_v5 = vld [vmem:[%s5184_s4 + $0x138] sm:$0xff] }
0x10ee   :  { %v2233_v18 = vmul.f32 %v3827_v43, %v2232_v57  ;;  %2345 = vmatpush.msra.mxu0 %v3631_v40  ;;  %v3638_v46 = vpack.i.bf16 %v2422_v41, %v2423_v5  ;;  %2444 = vmatpush.msra.mxu1 %v2423_v5 }
0x10ef   :  { %v2112_v52 = vadd.f32 %v3825_v55, %v2111_v48  ;;  %v2228_v20 = vsel %vm2225_vm3, %v2227_v63, %v2223_v54  ;;  %v3643_v48 = vpack.i.bf16 %v2420_v16, %v2421_v45  ;;  %v4801_v63 = vld [vmem:[%s5188_s2 + $0x20] sm:$0xff] }
0x10f0   :  { %v2234_v24 = vadd.f32 %v3827_v43, %v2233_v18  ;;  %2346 = vmatpush.msra.mxu0 %v3632_v3  ;;  %2445 = vmatpush.msra.mxu1 %v2422_v41  ;;  %v3706_v41 = vld [vmem:[%s5187_s5 + $0x19] ss:$0 sm:$0xff] }
0x10f1   :  { %v2116_v21 = vsel %vm2115_vm12, %v3825_v55, %v2112_v52 }
0x10f2   :  { %v2121_v11 = vsel %vm2118_vm13, %v2120_v23, %v2116_v21  ;;  %v2238_v61 = vsel %vm2237_vm8, %v3827_v43, %v2234_v24  ;;  %2347 = vmatpush.msra.mxu0 %v3636_v0  ;;  %2446 = vmatpush.msra.mxu1 %v2421_v45  ;;  %v4811_v24 = vld [vmem:[%s5188_s2 + $0x28] sm:$0xff]  ;;  %v3707_v45 = vld [vmem:[%s5187_s5 + $0x1a] ss:$0 sm:$0xff] }
0x10f3   :  { %v2122_v13 = vmul.f32 %v4703_v17, %v2121_v11  ;;  %v2229_v17 = vmul.f32 %v4691_v19, %v2228_v20  ;;  %v2243_v32 = vsel %vm2240_vm9, %v2242_v60, %v2238_v61  ;;  %v2458_v44 = vadd.f32 %v2415_v53, %v4811_v24 }
0x10f4   :  { %v2244_v6 = vmul.f32 %v4699_v31, %v2243_v32  ;;  %2348 = vmatpush.msra.mxu0 %v3637_v26  ;;  %2447 = vmatpush.msra.mxu1 %v2420_v16  ;;  %v3708_v16 = vld [vmem:[%s5187_s5 + $0x14] ss:$0 sm:$0xff] }
0x10f5   :  { %3463 = vmatmul.msk.f32.gmra.mxu1 %vm188_vm5, %v2122_v13 }
0x10f6   :  { %v3620_v51 = vpop.permute.xlu1 %3619 }
0x10f7   :  { %v3621_v22 = vunpack.i.l.bf16 %v3620_v51  ;;  %v3622_v27 = vunpack.i.h.bf16 %v3620_v51 }
0x10f9   :  { %2271 = vmatpush.msra.mxu3 %v3621_v22 }
0x10fb   :  { %2272 = vmatpush.msra.mxu3 %v3622_v27 }
0x10fc   :  { %3468 = vmatmul.msk.f32.vlgmr.msra.gmra.mxu3 %vm188_vm5, %v2229_v17 }
0x1104   :  { %3469 = vmatmul.msk.f32.gmra.mxu3 %vm188_vm5, %v2244_v6  ;;  %v4823_v6 = vld [vmem:[%s5188_s2 + $0x30] sm:$0xff] }
0x1159   :  { %v1906_v50 = vpop.f32.mrf.mxu1 }
0x115d   :  { %v2030_v33 = vpop.f32.mrf.mxu3 }
0x115e   :  { %2282 = vrot.lane.b32.xlu0 %v2030_v33, %s3884_s7 }
0x1161   :  { %v1909_v25 = vpop.f32.mrf.mxu1 }
0x1165   :  { %v2033_v19 = vpop.f32.mrf.mxu3 }
0x1166   :  { %2284 = vrot.lane.b32.xlu2 %v2033_v19, %s3884_s7 }
0x116a   :  { %v2152_v7 = vpop.f32.mrf.mxu1 }
0x116b   :  { %2290 = vrot.lane.b32.xlu1 %v2152_v7, %s3885_s8  ;;  %v4835_v7 = vld [vmem:[%s5188_s2 + $0x38] sm:$0xff] }
0x1172   :  { %v2155_v8 = vpop.f32.mrf.mxu1 }
0x1173   :  { %2292 = vrot.lane.b32.xlu1 %v2155_v8, %s3885_s8  ;;  %v2417_v8 = vld [vmem:[%s5189_s3 + $0x38] sm:$0xff] }
0x117f   :  { %v2274_v31 = vpop.f32.mrf.mxu3 }
0x1180   :  { %2298 = vrot.lane.b32.xlu0 %v2274_v31, %s3886_s9  ;;  %v2460_v31 = vadd.f32 %v2417_v8, %v4835_v7 }
0x1187   :  { %v2277_v9 = vpop.f32.mrf.mxu3 }
0x1188   :  { %2300 = vrot.lane.b32.xlu0 %v2277_v9, %s3886_s9 }
0x1190   :  { %3639 = vrot.lane.b32.xlu0 %v3638_v46, %s3877_s23 }
0x1198   :  { %3644 = vrot.lane.b32.xlu0 %v3643_v48, %s3877_s23 }
0x11c0   :  { %v2285_v59 = vpop.permute.xlu2 %2284 }
0x11c1   :  { %v2305_v43 = vsel %vm154_vm1, %v1909_v25, %v2285_v59 }
0x11d0   :  { %v2283_v1 = vpop.permute.xlu0 %2282 }
0x11d1   :  { %v2304_v38 = vsel %vm154_vm1, %v1906_v50, %v2283_v1  ;;  %v2416_v50 = vld [vmem:[%s5189_s3 + $0x30] sm:$0xff] }
0x11d2   :  { %v2459_v19 = vadd.f32 %v2416_v50, %v4823_v6 }
0x11dd   :  { %v2291_v4 = vpop.permute.xlu1 %2290 }
0x11de   :  { %v2306_v47 = vsel %vm188_vm5, %v2304_v38, %v2291_v4 }
0x11e5   :  { %v2293_v62 = vpop.permute.xlu1 %2292 }
0x11e6   :  { %v2307_v36 = vsel %vm188_vm5, %v2305_v43, %v2293_v62 }
0x11f2   :  { %v2299_v39 = vpop.permute.xlu0 %2298 }
0x11f3   :  { %v2308_v55 = vsel %vm662_vm15, %v2306_v47, %v2299_v39 }
0x11f4   :  { %3470 = vmatmul.msk.f32.vlgmr.msra.gmra.mxu0 %vm80_vm0, %v2308_v55 }
0x11fa   :  { %v2301_v15 = vpop.permute.xlu0 %2300 }
0x11fb   :  { %v2309_v30 = vsel %vm662_vm15, %v2307_v36, %v2301_v15 }
0x11fc   :  { %3471 = vmatmul.msk.f32.gmra.mxu0 %vm80_vm0, %v2309_v30 }
0x1202   :  { %v3640_v13 = vpop.permute.xlu0 %3639 }
0x1203   :  { %v3642_v54 = vunpack.i.h.bf16 %v3640_v13  ;;  %v3641_v18 = vunpack.i.l.bf16 %v3640_v13 }
0x1205   :  { %2503 = vmatpush.msra.mxu2 %v3641_v18 }
0x1207   :  { %2504 = vmatpush.msra.mxu2 %v3642_v54 }
0x120a   :  { %v3645_v51 = vpop.permute.xlu0 %3644 }
0x120b   :  { %v3647_v20 = vunpack.i.h.bf16 %v3645_v51 }
0x1271   :  { %v2350_v52 = vpop.f32.mrf.mxu0 }
0x1272   :  { %v2351_v12 = vadd.f32 %v3705_v49, %v2350_v52 }
0x1274   :  { %v2356_v57 = vadd.f32 %v2351_v12, %v4595_v2  ;;  %v2414_v2 = vld [vmem:[%s5189_s3 + $0x20] sm:$0xff] }
0x1275   :  { %v2457_v22 = vadd.f32 %v2414_v2, %v4801_v63 }
0x1276   :  { %v2360_v23 = vsel %vm80_vm0, %v2356_v57, 0.0 }
0x1277   :  { %2361 = vadd.xlane.f32.xlu2 %v2360_v23 }
0x1279   :  { %v2353_v29 = vpop.f32.mrf.mxu0 }
0x127a   :  { %v2354_v21 = vadd.f32 %v3705_v49, %v2353_v29 }
0x127c   :  { %v2357_v56 = vadd.f32 %v2354_v21, %v4607_v37  ;;  %v3646_v37 = vunpack.i.l.bf16 %v3645_v51 }
0x127e   :  { %v2363_v11 = vsel %vm80_vm0, %v2357_v56, 0.0  ;;  %2505 = vmatpush.msra.mxu2 %v3646_v37 }
0x127f   :  { %2364 = vadd.xlane.f32.xlu1 %v2363_v11 }
0x1280   :  { %2506 = vmatpush.msra.mxu2 %v3647_v20 }
0x1281   :  { %3474 = vmatmul.msk.f32.vlgmr.msra.gmra.mxu2 %vm80_vm0, %v2457_v22 }
0x1289   :  { %3475 = vmatmul.msk.f32.gmra.mxu2 %vm80_vm0, %v2458_v44 }
0x1291   :  { %3476 = vmatmul.msk.f32.gmra.mxu2 %vm80_vm0, %v2459_v19 }
0x1299   :  { %3477 = vmatmul.msk.f32.gmra.mxu2 %vm80_vm0, %v2460_v31 }
0x12ea   :  { %v2362_v27 = vpop.xlane.xlu2 %2361 }
0x12eb   :  { %v2366_v17 = vmul.f32 %v2362_v27, %v4215_v58 }
0x12ed   :  { %v2368_v61 = vsub.f32 %v2356_v57, %v2366_v17 }
0x12ef   :  { %v2370_v60 = vmul.f32 %v2368_v61, %v2368_v61 }
0x12f1   :  { %v2372_v32 = vsel %vm80_vm0, %v2370_v60, 0.0 }
0x12f2   :  { %2373 = vadd.xlane.f32.xlu0 %v2372_v32  ;;  %v2365_v33 = vpop.xlane.xlu1 %2364 }
0x12f3   :  { %v2367_v25 = vmul.f32 %v2365_v33, %v4215_v58 }
0x12f5   :  { %v2369_v28 = vsub.f32 %v2357_v56, %v2367_v25 }
0x12f7   :  { %v2371_v3 = vmul.f32 %v2369_v28, %v2369_v28 }
0x12f9   :  { %v2375_v40 = vsel %vm80_vm0, %v2371_v3, 0.0 }
0x12fa   :  { %2376 = vadd.xlane.f32.xlu2 %v2375_v40 }
0x1304   :  { %v2508_v0 = vpop.f32.mrf.mxu2 }
0x1305   :  { %v2509_v54 = vadd.f32 %v3708_v16, %v2508_v0  ;;  %v4917_v0 = vld [vmem:[%s5184_s4 + $0x148] sm:$0xff] }
0x130c   :  { %v2511_v59 = vpop.f32.mrf.mxu2 }
0x130d   :  { %v2512_v37 = vadd.f32 %v3708_v16, %v2511_v59 }
0x1314   :  { %v2514_v49 = vpop.f32.mrf.mxu2 }
0x1315   :  { %v2515_v12 = vadd.f32 %v3708_v16, %v2514_v49 }
0x1317   :  { %2694 = vrot.lane.b32.xlu0 %v2515_v12, %s3879_s27 }
0x131c   :  { %v2517_v18 = vpop.f32.mrf.mxu2 }
0x131d   :  { %v2518_v2 = vadd.f32 %v3708_v16, %v2517_v18 }
0x131f   :  { %2696 = vrot.lane.b32.xlu1 %v2518_v2, %s3879_s27  ;;  %2836 = vrot.lane.b32.xlu2 %v2518_v2, %s3881_s29 }
0x1320   :  { %3482 = vmatpush.xpose.msk.msrb.mxu0 %vm154_vm1, %v2518_v2  ;;  %2830 = vrot.lane.b32.xlu0 %v2509_v54, %s3881_s29 }
0x1324   :  { %3483 = vmatpush.xpose.msk.msrb.mxu0 %vm154_vm1, %v2515_v12 }
0x1327   :  { %2834 = vrot.lane.b32.xlu1 %v2515_v12, %s3881_s29  ;;  %2692 = vrot.lane.b32.xlu2 %v2512_v37, %s3879_s27 }
0x1328   :  { %3484 = vmatpush.xpose.msk.msrb.mxu0 %vm154_vm1, %v2512_v37  ;;  %2970 = vrot.lane.b32.xlu0 %v2515_v12, %s3882_s30 }
0x132c   :  { %3485 = vmatpush.xpose.msk.msrb.mxu0 %vm154_vm1, %v2509_v54 }
0x132f   :  { %2832 = vrot.lane.b32.xlu1 %v2512_v37, %s3881_s29  ;;  %2690 = vrot.lane.b32.xlu2 %v2509_v54, %s3879_s27 }
0x1337   :  { %2972 = vrot.lane.b32.xlu2 %v2518_v2, %s3882_s30 }
0x1365   :  { %v2374_v9 = vpop.xlane.xlu0 %2373 }
0x1366   :  { %v2378_v10 = vmul.f32 %v2374_v9, %v4215_v58  ;;  %v4904_v9 = vld [vmem:[%s5184_s4 + $0x158] sm:$0xff] }
0x1367   :  { %2550 = vmatpush.msrb.mxu3 %v4904_v9 }
0x1368   :  { %v2380_v26 = vadd.f32 1e-05, %v2378_v10  ;;  %v4909_v10 = vld [vmem:[%s5184_s4 + $0x150] sm:$0xff] }
0x1369   :  { %2551 = vmatpush.msrb.mxu3 %v4909_v10 }
0x136a   :  { %3828 = vrsqrt.f32 %v2380_v26  ;;  %vm2388_vm11 = vweird.f32 %v2380_v26 }
0x136b   :  { %2552 = vmatpush.msrb.mxu3 %v4917_v0 }
0x136d   :  { %v2377_v1 = vpop.xlane.xlu2 %2376 }
0x136e   :  { %v2379_v4 = vmul.f32 %v2377_v1, %v4215_v58  ;;  %v4922_v1 = vld [vmem:[%s5184_s4 + $0x140] sm:$0xff] }
0x136f   :  { %2553 = vmatpush.msrb.mxu3 %v4922_v1 }
0x1370   :  { %v3829_v38 = vpop.eup %3828  ;;  %v2381_v47 = vadd.f32 1e-05, %v2379_v4  ;;  %v3683_v4 = vpack.i.bf16 %v4922_v1, %v4917_v0  ;;  %3478 = vmatmul.msk.f32.vlgmr.msrb.gmra.mxu3 %vm80_vm0, %v4801_v63 }
0x1371   :  { %v2383_v39 = vmul.f32 %v3829_v38, %v2380_v26  ;;  %vm2389_vm10 = vweird.f32 %v3829_v38  ;;  %v3678_v26 = vpack.i.bf16 %v4909_v10, %v4904_v9 }
0x1372   :  { %3830 = vrsqrt.f32 %v2381_v47  ;;  %vm2390_vm12 = vmor %vm2388_vm11, %vm2389_vm10  ;;  %vm2398_vm4 = vweird.f32 %v2381_v47 }
0x1373   :  { %v2384_v55 = vmul.f32 %v3829_v38, %v2383_v39 }
0x1375   :  { %v2385_v62 = vmul.f32 0.5, %v2384_v55 }
0x1377   :  { %v2386_v43 = vsub.f32 1.5, %v2385_v62 }
0x1378   :  { %v3831_v36 = vpop.eup %3830  ;;  %3479 = vmatmul.msk.f32.gmra.mxu3 %vm80_vm0, %v4811_v24 }
0x1379   :  { %v2387_v15 = vmul.f32 %v3829_v38, %v2386_v43  ;;  %v2393_v30 = vmul.f32 %v3831_v36, %v2381_v47  ;;  %vm2399_vm13 = vweird.f32 %v3831_v36  ;;  %v2837_v22 = vpop.permute.xlu2 %2836 }
0x137a   :  { %vm2400_vm14 = vmor %vm2398_vm4, %vm2399_vm13  ;;  %3498 = vmatpush.xpose.msk.msrb.mxu2 %vm154_vm1, %v2837_v22 }
0x137b   :  { %v2391_v5 = vsel %vm2390_vm12, %v3829_v38, %v2387_v15  ;;  %v2394_v46 = vmul.f32 %v3831_v36, %v2393_v30 }
0x137c   :  { %v2402_v48 = vmul.f32 %v2391_v5, %v2368_v61 }
0x137d   :  { %v2395_v52 = vmul.f32 0.5, %v2394_v46 }
0x137e   :  { %v2405_v57 = vmul.f32 %v3706_v41, %v2402_v48 }
0x137f   :  { %v2396_v23 = vsub.f32 1.5, %v2395_v52 }
0x1380   :  { %v4854_v29 = vadd.f32 %v3707_v45, %v2405_v57  ;;  %3480 = vmatmul.msk.f32.gmra.mxu3 %vm80_vm0, %v4823_v6 }
0x1381   :  { %v2397_v21 = vmul.f32 %v3831_v36, %v2396_v23  ;;  %v2693_v60 = vpop.permute.xlu2 %2692 }
0x1382   :  { %v2418_v56 = vadd.f32 %v4602_v34, %v4854_v29 }
0x1383   :  { %v2401_v11 = vsel %vm2400_vm14, %v3831_v36, %v2397_v21 }
0x1384   :  { %v2403_v13 = vmul.f32 %v2401_v11, %v2369_v28  ;;  %3472 = vmatmul.msk.f32.vlgmr.msra.gmra.mxu1 %vm80_vm0, %v2418_v56 }
0x1386   :  { %v2406_v51 = vmul.f32 %v3706_v41, %v2403_v13 }
0x1388   :  { %v4861_v20 = vadd.f32 %v3707_v45, %v2406_v51  ;;  %3481 = vmatmul.msk.f32.gmra.mxu3 %vm80_vm0, %v4835_v7 }
0x1389   :  { %v2695_v27 = vpop.permute.xlu0 %2694  ;;  %v2691_v19 = vpop.permute.xlu2 %2690 }
0x138a   :  { %v2419_v34 = vadd.f32 %v4614_v14, %v4861_v20  ;;  %v3709_v14 = vld [vmem:[%s5187_s5 + $0x13] ss:$0 sm:$0xff] }
0x138c   :  { %3473 = vmatmul.msk.f32.gmra.mxu1 %vm80_vm0, %v2419_v34 }
0x1391   :  { %v2697_v53 = vpop.permute.xlu1 %2696  ;;  %v2973_v40 = vpop.permute.xlu2 %2972 }
0x1392   :  { %3490 = vmatpush.xpose.msk.msra.mxu0 %vm154_vm1, %v2697_v53  ;;  %v2831_v3 = vpop.permute.xlu0 %2830 }
0x1396   :  { %3491 = vmatpush.xpose.msk.msra.mxu0 %vm154_vm1, %v2695_v27 }
0x1399   :  { %v2835_v32 = vpop.permute.xlu1 %2834 }
0x139a   :  { %3492 = vmatpush.xpose.msk.msra.mxu0 %vm154_vm1, %v2693_v60  ;;  %3499 = vmatpush.xpose.msk.msrb.mxu2 %vm154_vm1, %v2835_v32  ;;  %v2971_v8 = vpop.permute.xlu0 %2970  ;;  %v3710_v32 = vld [vmem:[%s5187_s5 + $0x15] ss:$0 sm:$0xff] }
0x139e   :  { %3493 = vmatpush.xpose.msk.msra.mxu0 %vm154_vm1, %v2691_v19 }
0x13a1   :  { %v2833_v28 = vpop.permute.xlu1 %2832 }
0x13a2   :  { %3500 = vmatpush.xpose.msk.msrb.mxu2 %vm154_vm1, %v2833_v28 }
0x13a6   :  { %3501 = vmatpush.xpose.msk.msrb.mxu2 %vm154_vm1, %v2831_v3 }
0x13f3   :  { %v2555_v56 = vpop.f32.mrf.mxu3 }
0x13f4   :  { %v2556_v28 = vadd.f32 %v3710_v32, %v2555_v56 }
0x13fb   :  { %v2558_v34 = vpop.f32.mrf.mxu3 }
0x13fc   :  { %v2559_v19 = vadd.f32 %v3710_v32, %v2558_v34 }
0x13fe   :  { %v4981_v3 = vpack.i.bf16 %v2556_v28, %v2559_v19 }
0x1401   :  { %v2449_v17 = vpop.f32.mrf.mxu1 }
0x1402   :  { %v2450_v44 = vadd.f32 %v3709_v14, %v2449_v17 }
0x1403   :  { %v2561_v17 = vpop.f32.mrf.mxu3 }
0x1404   :  { %v2455_v61 = vmul.f32 0.35355338, %v2450_v44 }
0x1406   :  { %2686 = vrot.lane.b32.xlu1 %v2455_v61, %s3879_s27  ;;  %3486 = vmatmul.msk.f32.vlgmr.msrb.gmra.mxu0 %vm154_vm1, %v2455_v61 }
0x1407   :  { %3506 = vmatpush.xpose.msk.msrb.mxu0 %vm154_vm1, %v2973_v40 }
0x1409   :  { %v2452_v50 = vpop.f32.mrf.mxu1 }
0x140a   :  { %v2453_v33 = vadd.f32 %v3709_v14, %v2452_v50 }
0x140b   :  { %3507 = vmatpush.xpose.msk.msrb.mxu0 %vm154_vm1, %v2971_v8  ;;  %v2564_v50 = vpop.f32.mrf.mxu3 }
0x140c   :  { %v2456_v25 = vmul.f32 0.35355338, %v2453_v33  ;;  %v2562_v33 = vadd.f32 %v3710_v32, %v2561_v17 }
0x140e   :  { %2826 = vrot.lane.b32.xlu1 %v2455_v61, %s3881_s29  ;;  %2828 = vrot.lane.b32.xlu0 %v2456_v25, %s3881_s29 }
0x140f   :  { %2688 = vrot.lane.b32.xlu2 %v2456_v25, %s3879_s27  ;;  %3487 = vmatmul.msk.f32.gmra.mxu0 %vm154_vm1, %v2456_v25 }
0x1416   :  { %2968 = vrot.lane.b32.xlu1 %v2512_v37, %s3882_s30  ;;  %2964 = vrot.lane.b32.xlu0 %v2456_v25, %s3882_s30  ;;  %v2565_v25 = vadd.f32 %v3710_v32, %v2564_v50 }
0x1417   :  { %2966 = vrot.lane.b32.xlu2 %v2509_v54, %s3882_s30 }
0x1418   :  { %2675 = vmatpush.msrb.mxu1 %v2565_v25 }
0x141a   :  { %2676 = vmatpush.msrb.mxu1 %v2562_v33 }
0x141c   :  { %2677 = vmatpush.msrb.mxu1 %v2559_v19 }
0x141e   :  { %2962 = vrot.lane.b32.xlu1 %v2455_v61, %s3882_s30  ;;  %2678 = vmatpush.msrb.mxu1 %v2556_v28 }
0x1469   :  { %v2689_v38 = vpop.permute.xlu2 %2688 }
0x1471   :  { %v2967_v36 = vpop.permute.xlu2 %2966 }
0x1478   :  { %v2687_v31 = vpop.permute.xlu1 %2686 }
0x1479   :  { %3494 = vmatmul.msk.f32.vlgmr.msra.gmra.mxu0 %vm154_vm1, %v2687_v31 }
0x1480   :  { %v2827_v47 = vpop.permute.xlu1 %2826  ;;  %v2829_v62 = vpop.permute.xlu0 %2828 }
0x1481   :  { %3495 = vmatmul.msk.f32.gmra.mxu0 %vm154_vm1, %v2689_v38  ;;  %3502 = vmatmul.msk.f32.vlgmr.msrb.gmra.mxu2 %vm154_vm1, %v2827_v47 }
0x1483   :  { %v2603_v39 = vpop.f32.mrf.mxu0 }
0x1484   :  { %v2604_v55 = vadd.f32 %v2603_v39, %v4338_v35 }
0x1486   :  { %v2609_v59 = vsel %vm80_vm0, %v2604_v55, -inf }
0x1487   :  { %2610 = vmax.xlane.f32.xlu2 %v2609_v59 }
0x1488   :  { %v2969_v43 = vpop.permute.xlu1 %2968  ;;  %v2965_v5 = vpop.permute.xlu0 %2964 }
0x1489   :  { %3503 = vmatmul.msk.f32.gmra.mxu2 %vm154_vm1, %v2829_v62  ;;  %3508 = vmatpush.xpose.msk.msrb.mxu0 %vm154_vm1, %v2969_v43 }
0x148c   :  { %v2606_v15 = vpop.f32.mrf.mxu0 }
0x148d   :  { %v2607_v30 = vadd.f32 %v2606_v15, %v4347_v42  ;;  %3509 = vmatpush.xpose.msk.msrb.mxu0 %vm154_vm1, %v2967_v36 }
0x148f   :  { %v2612_v63 = vsel %vm80_vm0, %v2607_v30, -inf }
0x1490   :  { %2613 = vmax.xlane.f32.xlu1 %v2612_v63  ;;  %v2963_v41 = vpop.permute.xlu1 %2962 }
0x1491   :  { %3510 = vmatmul.msk.f32.vlgmr.msrb.gmra.mxu0 %vm154_vm1, %v2963_v41 }
0x1499   :  { %3511 = vmatmul.msk.f32.gmra.mxu0 %vm154_vm1, %v2965_v5 }
0x14f6   :  { %v2727_v24 = vpop.f32.mrf.mxu0 }
0x14f7   :  { %v2728_v46 = vadd.f32 %v2727_v24, %v4338_v35 }
0x14f9   :  { %v2733_v16 = vsel %vm80_vm0, %v2728_v46, -inf }
0x14fa   :  { %2734 = vmax.xlane.f32.xlu0 %v2733_v16  ;;  %v2611_v45 = vpop.xlane.xlu2 %2610 }
0x14fb   :  { %v2615_v48 = vsub.f32 %v2604_v55, %v2611_v45 }
0x14fd   :  { %v2617_v49 = vmul.f32 1.442695, %v2615_v48 }
0x14fe   :  { %v2730_v52 = vpop.f32.mrf.mxu0 }
0x14ff   :  { %3832 = vpow2.f32 %v2617_v49  ;;  %v2731_v12 = vadd.f32 %v2730_v52, %v4347_v42 }
0x1501   :  { %v2736_v6 = vsel %vm80_vm0, %v2731_v12, -inf }
0x1502   :  { %2737 = vmax.xlane.f32.xlu2 %v2736_v6 }
0x1503   :  { %v2614_v57 = vpop.xlane.xlu1 %2613 }
0x1504   :  { %v2867_v23 = vpop.f32.mrf.mxu2  ;;  %v2616_v11 = vsub.f32 %v2607_v30, %v2614_v57 }
0x1505   :  { %v4952_v21 = vpop.eup %3832  ;;  %v2868_v7 = vadd.f32 %v2867_v23, %v4338_v35 }
0x1506   :  { %v2621_v13 = vsel %vm80_vm0, %v4952_v21, 0.0  ;;  %v2619_v18 = vmul.f32 1.442695, %v2616_v11 }
0x1507   :  { %2622 = vadd.xlane.f32.xlu0 %v2621_v13  ;;  %v2873_v54 = vsel %vm80_vm0, %v2868_v7, -inf }
0x1508   :  { %2874 = vmax.xlane.f32.xlu1 %v2873_v54  ;;  %3834 = vpow2.f32 %v2619_v18 }
0x150c   :  { %v2870_v2 = vpop.f32.mrf.mxu2 }
0x150d   :  { %v2871_v51 = vadd.f32 %v2870_v2, %v4347_v42 }
0x150e   :  { %v3003_v37 = vpop.f32.mrf.mxu0  ;;  %v4965_v27 = vpop.eup %3834 }
0x150f   :  { %v4960_v14 = vadd.f32 %v3003_v37, %v4338_v35  ;;  %v2876_v22 = vsel %vm80_vm0, %v2871_v51, -inf  ;;  %v2624_v60 = vsel %vm80_vm0, %v4965_v27, 0.0 }
0x1510   :  { %2877 = vmax.xlane.f32.xlu2 %v2876_v22 }
0x1511   :  { %v3009_v53 = vsel %vm80_vm0, %v4960_v14, -inf }
0x1512   :  { %3010 = vmax.xlane.f32.xlu0 %v3009_v53 }
0x1516   :  { %v3006_v44 = vpop.f32.mrf.mxu0 }
0x1517   :  { %v4968_v61 = vadd.f32 %v3006_v44, %v4347_v42  ;;  %v4977_v42 = vpack.i.bf16 %v2562_v33, %v2565_v25 }
0x1518   :  { %2625 = vadd.xlane.f32.xlu2 %v2624_v60 }
0x1519   :  { %v3012_v35 = vsel %vm80_vm0, %v4968_v61, -inf }
0x151a   :  { %3013 = vmax.xlane.f32.xlu1 %v3012_v35 }
0x1526   :  { %3659 = vrot.lane.b32.xlu0 %v4977_v42, %s3881_s29 }
0x1530   :  { %3654 = vrot.lane.b32.xlu2 %v4981_v3, %s3879_s27 }
0x156d   :  { %v2735_v40 = vpop.xlane.xlu0 %2734 }
0x156e   :  { %v2739_v8 = vsub.f32 %v2728_v46, %v2735_v40 }
0x1570   :  { %v2741_v31 = vmul.f32 1.442695, %v2739_v8 }
0x1572   :  { %3836 = vpow2.f32 %v2741_v31 }
0x1575   :  { %v2738_v38 = vpop.xlane.xlu2 %2737 }
0x1576   :  { %v2740_v47 = vsub.f32 %v2731_v12, %v2738_v38 }
0x1578   :  { %v4985_v39 = vpop.eup %3836  ;;  %v2743_v55 = vmul.f32 1.442695, %v2740_v47 }
0x1579   :  { %v2745_v59 = vsel %vm80_vm0, %v4985_v39, 0.0 }
0x157a   :  { %3838 = vpow2.f32 %v2743_v55  ;;  %2746 = vadd.xlane.f32.xlu1 %v2745_v59  ;;  %v2623_v62 = vpop.xlane.xlu0 %2622 }
0x157b   :  { %3840 = vrcp.f32 %v2623_v62  ;;  %v2875_v43 = vpop.xlane.xlu1 %2874  ;;  %v2636_v45 = vand.u32 2147483647, %v2623_v62  ;;  %v2638_v48 = vand.u32 2147483648, %v2623_v62  ;;  %vm2632_vm6 = vweird.f32 %v2623_v62 }
0x157c   :  { %v2879_v36 = vsub.f32 %v2868_v7, %v2875_v43 }
0x157d   :  { %v2639_v56 = vor.u32 1.1754944e-38, %v2638_v48  ;;  %vm2637_vm8 = vcmp.eq.f32.partialorder %v2636_v45, 8.507059e+37 }
0x157e   :  { %v2881_v15 = vmul.f32 1.442695, %v2879_v36 }
0x1580   :  { %v4989_v30 = vpop.eup %3838  ;;  %3842 = vpow2.f32 %v2881_v15 }
0x1581   :  { %v3841_v63 = vpop.eup %3840  ;;  %v2748_v41 = vsel %vm80_vm0, %v4989_v30, 0.0 }
0x1582   :  { %v2628_v5 = vmul.f32 %v3841_v63, %v2623_v62  ;;  %2749 = vadd.xlane.f32.xlu0 %v2748_v41  ;;  %vm2633_vm3 = vweird.f32 %v3841_v63 }
0x1583   :  { %v2878_v24 = vpop.xlane.xlu2 %2877  ;;  %vm2634_vm7 = vmor %vm2632_vm6, %vm2633_vm3 }
0x1584   :  { %v2629_v46 = vsub.f32 1.0, %v2628_v5  ;;  %v2880_v16 = vsub.f32 %v2871_v51, %v2878_v24 }
0x1585   :  { %v3011_v49 = vpop.xlane.xlu0 %3010 }
0x1586   :  { %v4993_v52 = vpop.eup %3842  ;;  %v2630_v12 = vmul.f32 %v3841_v63, %v2629_v46  ;;  %v2883_v6 = vmul.f32 1.442695, %v2880_v16  ;;  %v3015_v57 = vsub.f32 %v4960_v14, %v3011_v49 }
0x1587   :  { %v2885_v23 = vsel %vm80_vm0, %v4993_v52, 0.0 }
0x1588   :  { %v2631_v7 = vadd.f32 %v3841_v63, %v2630_v12  ;;  %3844 = vpow2.f32 %v2883_v6  ;;  %2886 = vadd.xlane.f32.xlu2 %v2885_v23  ;;  %v3017_v13 = vmul.f32 1.442695, %v3015_v57 }
0x158a   :  { %v2635_v11 = vsel %vm2634_vm7, %v3841_v63, %v2631_v7 }
0x158b   :  { %v2640_v54 = vsel %vm2637_vm8, %v2639_v56, %v2635_v11  ;;  %v2626_v18 = vpop.xlane.xlu2 %2625 }
0x158c   :  { %3846 = vrcp.f32 %v2626_v18  ;;  %v2641_v2 = vmul.f32 %v4952_v21, %v2640_v54  ;;  %v2653_v17 = vand.u32 2147483648, %v2626_v18  ;;  %v2651_v60 = vand.u32 2147483647, %v2626_v18 }
0x158d   :  { %3848 = vpow2.f32 %v3017_v13  ;;  %vm2647_vm10 = vweird.f32 %v2626_v18  ;;  %v3014_v8 = vpop.xlane.xlu1 %3013 }
0x158e   :  { %v4999_v51 = vpop.eup %3844  ;;  %3488 = vmatmul.msk.f32.vlgmr.msrb.gmra.mxu1 %vm80_vm0, %v2641_v2  ;;  %v2654_v32 = vor.u32 1.1754944e-38, %v2653_v17  ;;  %vm2652_vm12 = vcmp.eq.f32.partialorder %v2651_v60, 8.507059e+37  ;;  %v3016_v31 = vsub.f32 %v4968_v61, %v3014_v8 }
0x158f   :  { %v2888_v34 = vsel %vm80_vm0, %v4999_v51, 0.0 }
0x1590   :  { %2889 = vadd.xlane.f32.xlu0 %v2888_v34 }
0x1592   :  { %v3847_v37 = vpop.eup %3846 }
0x1593   :  { %v2643_v14 = vmul.f32 %v3847_v37, %v2626_v18  ;;  %3649 = vrot.lane.b32.xlu1 %v4977_v42, %s3879_s27  ;;  %v5006_v22 = vpop.eup %3848  ;;  %vm2648_vm9 = vweird.f32 %v3847_v37 }
0x1594   :  { %v3021_v21 = vsel %vm80_vm0, %v5006_v22, 0.0  ;;  %vm2649_vm11 = vmor %vm2647_vm10, %vm2648_vm9 }
0x1595   :  { %v2644_v53 = vsub.f32 1.0, %v2643_v14 }
0x1597   :  { %v2645_v44 = vmul.f32 %v3847_v37, %v2644_v53 }
0x1598   :  { %3022 = vadd.xlane.f32.xlu0 %v3021_v21  ;;  %v3660_v19 = vpop.permute.xlu0 %3659 }
0x1599   :  { %v2646_v35 = vadd.f32 %v3847_v37, %v2645_v44  ;;  %v3662_v28 = vunpack.i.h.bf16 %v3660_v19  ;;  %v3661_v40 = vunpack.i.l.bf16 %v3660_v19 }
0x159b   :  { %v2650_v50 = vsel %vm2649_vm11, %v3847_v37, %v2646_v35  ;;  %2951 = vmatpush.msra.mxu3 %v3661_v40 }
0x159c   :  { %v2655_v33 = vsel %vm2652_vm12, %v2654_v32, %v2650_v50 }
0x159d   :  { %v2656_v25 = vmul.f32 %v4965_v27, %v2655_v33  ;;  %2952 = vmatpush.msra.mxu3 %v3662_v28  ;;  %v3019_v27 = vmul.f32 1.442695, %v3016_v31 }
0x159f   :  { %3489 = vmatmul.msk.f32.gmra.mxu1 %vm80_vm0, %v2656_v25  ;;  %3850 = vpow2.f32 %v3019_v27 }
0x15a0   :  { %3664 = vrot.lane.b32.xlu2 %v4981_v3, %s3881_s29 }
0x15a5   :  { %v5027_v38 = vpop.eup %3850 }
0x15a6   :  { %v3024_v61 = vsel %vm80_vm0, %v5027_v38, 0.0 }
0x15a8   :  { %3669 = vrot.lane.b32.xlu2 %v4977_v42, %s3882_s30 }
0x15ac   :  { %3674 = vrot.lane.b32.xlu0 %v4981_v3, %s3882_s30  ;;  %v5031_v3 = vpop.permute.xlu2 %3654 }
0x15ad   :  { %v3657_v13 = vunpack.i.h.bf16 %v5031_v3  ;;  %v3656_v2 = vunpack.i.l.bf16 %v5031_v3 }
0x15b0   :  { %3679 = vrot.lane.b32.xlu2 %v3678_v26, %s3877_s23 }
0x15b8   :  { %3684 = vrot.lane.b32.xlu2 %v3683_v4, %s3877_s23 }
0x15bd   :  { %3025 = vadd.xlane.f32.xlu1 %v3024_v61 }
0x15ed   :  { %v2747_v42 = vpop.xlane.xlu1 %2746 }
0x15ee   :  { %3852 = vrcp.f32 %v2747_v42  ;;  %vm2756_vm4 = vweird.f32 %v2747_v42  ;;  %v2762_v41 = vand.u32 2147483648, %v2747_v42  ;;  %v2760_v24 = vand.u32 2147483647, %v2747_v42 }
0x15f0   :  { %v2763_v56 = vor.u32 1.1754944e-38, %v2762_v41  ;;  %vm2761_vm6 = vcmp.eq.f32.partialorder %v2760_v24, 8.507059e+37 }
0x15f4   :  { %v3853_v47 = vpop.eup %3852 }
0x15f5   :  { %v5033_v55 = vpop.xlane.xlu0 %2749  ;;  %v2752_v9 = vmul.f32 %v3853_v47, %v2747_v42  ;;  %vm2757_vm13 = vweird.f32 %v3853_v47 }
0x15f6   :  { %3854 = vrcp.f32 %v5033_v55  ;;  %vm5043_vm14 = vmor %vm2756_vm4, %vm2757_vm13  ;;  %vm2771_vm11 = vweird.f32 %v5033_v55  ;;  %v2777_v60 = vand.u32 2147483648, %v5033_v55  ;;  %v2775_v32 = vand.u32 2147483647, %v5033_v55 }
0x15f7   :  { %v2753_v10 = vsub.f32 1.0, %v2752_v9 }
0x15f8   :  { %v2778_v27 = vor.u32 1.1754944e-38, %v2777_v60  ;;  %vm2776_vm4 = vcmp.eq.f32.partialorder %v2775_v32, 8.507059e+37 }
0x15f9   :  { %v2754_v1 = vmul.f32 %v3853_v47, %v2753_v10 }
0x15fb   :  { %v2887_v26 = vpop.xlane.xlu2 %2886  ;;  %v2755_v62 = vadd.f32 %v3853_v47, %v2754_v1 }
0x15fc   :  { %v5036_v0 = vpop.eup %3854  ;;  %3856 = vrcp.f32 %v2887_v26  ;;  %v2900_v49 = vand.u32 2147483647, %v2887_v26  ;;  %v2902_v12 = vand.u32 2147483648, %v2887_v26  ;;  %vm2896_vm7 = vweird.f32 %v2887_v26 }
0x15fd   :  { %v2767_v4 = vmul.f32 %v5036_v0, %v5033_v55  ;;  %v2759_v48 = vsel %vm5043_vm14, %v3853_v47, %v2755_v62  ;;  %vm2772_vm8 = vweird.f32 %v5036_v0 }
0x15fe   :  { %v2764_v34 = vsel %vm2761_vm6, %v2763_v56, %v2759_v48  ;;  %v2903_v37 = vor.u32 1.1754944e-38, %v2902_v12  ;;  %vm2901_vm10 = vcmp.eq.f32.partialorder %v2900_v49, 8.507059e+37  ;;  %vm5062_vm12 = vmor %vm2771_vm11, %vm2772_vm8 }
0x15ff   :  { %v2768_v43 = vsub.f32 1.0, %v2767_v4  ;;  %v2765_v25 = vmul.f32 %v4985_v39, %v2764_v34 }
0x1601   :  { %v2769_v57 = vmul.f32 %v5036_v0, %v2768_v43 }
0x1602   :  { %v3857_v59 = vpop.eup %3856 }
0x1603   :  { %v2892_v36 = vmul.f32 %v3857_v59, %v2887_v26  ;;  %v5040_v15 = vpop.xlane.xlu0 %2889  ;;  %v3665_v63 = vpop.permute.xlu2 %3664  ;;  %vm2897_vm3 = vweird.f32 %v3857_v59  ;;  %v2770_v14 = vadd.f32 %v5036_v0, %v2769_v57 }
0x1604   :  { %3858 = vrcp.f32 %v5040_v15  ;;  %v3666_v16 = vunpack.i.l.bf16 %v3665_v63  ;;  %v3667_v7 = vunpack.i.h.bf16 %v3665_v63  ;;  %vm2898_vm9 = vmor %vm2896_vm7, %vm2897_vm3  ;;  %v2917_v28 = vand.u32 2147483648, %v5040_v15 }
0x1605   :  { %v2893_v46 = vsub.f32 1.0, %v2892_v36  ;;  %v3650_v45 = vpop.permute.xlu1 %3649  ;;  %v2915_v31 = vand.u32 2147483647, %v5040_v15  ;;  %v2774_v39 = vsel %vm5062_vm12, %v5036_v0, %v2770_v14  ;;  %vm2911_vm14 = vweird.f32 %v5040_v15 }
0x1606   :  { %v3651_v6 = vunpack.i.l.bf16 %v3650_v45  ;;  %2953 = vmatpush.msra.mxu3 %v3666_v16  ;;  %v3652_v11 = vunpack.i.h.bf16 %v3650_v45  ;;  %v2918_v3 = vor.u32 1.1754944e-38, %v2917_v28  ;;  %v2779_v47 = vsel %vm2776_vm4, %v2778_v27, %v2774_v39  ;;  %v3711_v27 = vld [vmem:[%s5187_s5 + $0x16] ss:$0 sm:$0xff] }
0x1607   :  { %v2894_v23 = vmul.f32 %v3857_v59, %v2893_v46  ;;  %vm2916_vm6 = vcmp.eq.f32.partialorder %v2915_v31, 8.507059e+37  ;;  %v2780_v0 = vmul.f32 %v4989_v30, %v2779_v47 }
0x1608   :  { %2815 = vmatpush.msra.mxu1 %v3651_v6  ;;  %2954 = vmatpush.msra.mxu3 %v3667_v7 }
0x1609   :  { %v2895_v54 = vadd.f32 %v3857_v59, %v2894_v23 }
0x160a   :  { %v3859_v18 = vpop.eup %3858  ;;  %2816 = vmatpush.msra.mxu1 %v3652_v11 }
0x160b   :  { %v2899_v53 = vsel %vm2898_vm9, %v3857_v59, %v2895_v54  ;;  %v2907_v17 = vmul.f32 %v3859_v18, %v5040_v15  ;;  %v3023_v44 = vpop.xlane.xlu0 %3022  ;;  %v3670_v21 = vpop.permute.xlu2 %3669  ;;  %vm2912_vm13 = vweird.f32 %v3859_v18 }
0x160c   :  { %v2904_v35 = vsel %vm2901_vm10, %v2903_v37, %v2899_v53  ;;  %3860 = vrcp.f32 %v3023_v44  ;;  %2817 = vmatpush.msra.mxu1 %v3656_v2  ;;  %v3671_v33 = vunpack.i.l.bf16 %v3670_v21  ;;  %v3672_v61 = vunpack.i.h.bf16 %v3670_v21  ;;  %vm2913_vm3 = vmor %vm2911_vm14, %vm2912_vm13  ;;  %v2680_v56 = vpop.f32.mrf.mxu1 }
0x160d   :  { %v2908_v50 = vsub.f32 1.0, %v2907_v17  ;;  %v2905_v40 = vmul.f32 %v4993_v52, %v2904_v35  ;;  %v3038_v62 = vand.u32 2147483648, %v3023_v44  ;;  %vm3032_vm8 = vweird.f32 %v3023_v44 }
0x160e   :  { %2818 = vmatpush.msra.mxu1 %v3657_v13  ;;  %v3036_v43 = vand.u32 2147483647, %v3023_v44 }
0x160f   :  { %v2909_v8 = vmul.f32 %v3859_v18, %v2908_v50  ;;  %3496 = vmatmul.msk.f32.vlgmr.msra.gmra.mxu1 %vm80_vm0, %v2765_v25  ;;  %3504 = vmatmul.msk.f32.vlgmr.msra.gmra.mxu3 %vm80_vm0, %v2905_v40  ;;  %v3039_v15 = vor.u32 1.1754944e-38, %v3038_v62 }
0x1610   :  { %3087 = vmatpush.msrb.mxu1 %v3671_v33  ;;  %vm3037_vm10 = vcmp.eq.f32.partialorder %v3036_v43, 8.507059e+37 }
0x1611   :  { %v2910_v42 = vadd.f32 %v3859_v18, %v2909_v8 }
0x1612   :  { %v3861_v52 = vpop.eup %3860  ;;  %3088 = vmatpush.msrb.mxu1 %v3672_v61 }
0x1613   :  { %v3028_v55 = vmul.f32 %v3861_v52, %v3023_v44  ;;  %v2914_v9 = vsel %vm2913_vm3, %v3859_v18, %v2910_v42  ;;  %vm3033_vm7 = vweird.f32 %v3861_v52 }
0x1614   :  { %v2919_v10 = vsel %vm2916_vm6, %v2918_v3, %v2914_v9  ;;  %vm3034_vm9 = vmor %vm3032_vm8, %vm3033_vm7 }
0x1615   :  { %v3029_v26 = vsub.f32 1.0, %v3028_v55  ;;  %v2920_v1 = vmul.f32 %v4999_v51, %v2919_v10 }
0x1617   :  { %v3030_v4 = vmul.f32 %v3861_v52, %v3029_v26  ;;  %3497 = vmatmul.msk.f32.gmra.mxu1 %vm80_vm0, %v2780_v0  ;;  %3505 = vmatmul.msk.f32.gmra.mxu3 %vm80_vm0, %v2920_v1 }
0x1619   :  { %v3031_v59 = vadd.f32 %v3861_v52, %v3030_v4 }
0x161b   :  { %v3035_v36 = vsel %vm3034_vm9, %v3861_v52, %v3031_v59 }
0x161c   :  { %v3040_v41 = vsel %vm3037_vm10, %v3039_v15, %v3035_v36  ;;  %v2683_v11 = vpop.f32.mrf.mxu1 }
0x161d   :  { %v3041_v51 = vmul.f32 %v5006_v22, %v3040_v41  ;;  %v3229_v41 = vld [vmem:[%s5184_s4 + $0x168] sm:$0xff] }
0x161e   :  { %v3675_v63 = vpop.permute.xlu0 %3674 }
0x161f   :  { %v3676_v5 = vunpack.i.l.bf16 %v3675_v63  ;;  %v3677_v30 = vunpack.i.h.bf16 %v3675_v63  ;;  %v3230_v63 = vld [vmem:[%s5184_s4 + $0x170] sm:$0xff] }
0x1621   :  { %3089 = vmatpush.msrb.mxu1 %v3676_v5  ;;  %v3228_v5 = vld [vmem:[%s5184_s4 + $0x160] sm:$0xff] }
0x1623   :  { %3090 = vmatpush.msrb.mxu1 %v3677_v30 }
0x1624   :  { %3512 = vmatmul.msk.f32.vlgmr.msrb.gmra.mxu1 %vm80_vm0, %v3041_v51 }
0x1630   :  { %v3026_v24 = vpop.xlane.xlu1 %3025 }
0x1631   :  { %3862 = vrcp.f32 %v3026_v24  ;;  %v3053_v48 = vand.u32 2147483648, %v3026_v24  ;;  %v3051_v12 = vand.u32 2147483647, %v3026_v24  ;;  %vm3047_vm12 = vweird.f32 %v3026_v24 }
0x1633   :  { %v3054_v57 = vor.u32 1.1754944e-38, %v3053_v48  ;;  %vm3052_vm4 = vcmp.eq.f32.partialorder %v3051_v12, 8.507059e+37  ;;  %v3271_v12 = vld [vmem:[%s5184_s4 + $0x1b0] sm:$0xff] }
0x1637   :  { %v3863_v46 = vpop.eup %3862 }
0x1638   :  { %v3043_v16 = vmul.f32 %v3863_v46, %v3026_v24  ;;  %vm3048_vm11 = vweird.f32 %v3863_v46 }
0x1639   :  { %vm3049_vm13 = vmor %vm3047_vm12, %vm3048_vm11 }
0x163a   :  { %v3044_v45 = vsub.f32 1.0, %v3043_v16 }
0x163c   :  { %v3045_v49 = vmul.f32 %v3863_v46, %v3044_v45 }
0x163e   :  { %v3046_v6 = vadd.f32 %v3863_v46, %v3045_v49  ;;  %v3272_v49 = vld [vmem:[%s5184_s4 + $0x1b8] sm:$0xff] }
0x163f   :  { %3289 = vmatpush.msra.mxu0 %v3272_v49 }
0x1640   :  { %v3050_v23 = vsel %vm3049_vm13, %v3863_v46, %v3046_v6 }
0x1641   :  { %v3055_v7 = vsel %vm3052_vm4, %v3054_v57, %v3050_v23  ;;  %v3270_v57 = vld [vmem:[%s5184_s4 + $0x1a8] sm:$0xff]  ;;  %3290 = vmatpush.msra.mxu0 %v3271_v12 }
0x1642   :  { %v3056_v22 = vmul.f32 %v5027_v38, %v3055_v7  ;;  %v3680_v38 = vpop.permute.xlu2 %3679 }
0x1643   :  { %v3682_v37 = vunpack.i.h.bf16 %v3680_v38  ;;  %v3681_v14 = vunpack.i.l.bf16 %v3680_v38  ;;  %3291 = vmatpush.msra.mxu0 %v3270_v57 }
0x1644   :  { %3513 = vmatmul.msk.f32.gmra.mxu1 %vm80_vm0, %v3056_v22  ;;  %v3712_v22 = vld [vmem:[%s5187_s5 + $0x1b] ss:$0 sm:$0xff] }
0x1645   :  { %3163 = vmatpush.msra.mxu2 %v3681_v14 }
0x1647   :  { %3164 = vmatpush.msra.mxu2 %v3682_v37 }
0x164a   :  { %v3685_v53 = vpop.permute.xlu2 %3684 }
0x164b   :  { %v3687_v17 = vunpack.i.h.bf16 %v3685_v53  ;;  %v3686_v44 = vunpack.i.l.bf16 %v3685_v53 }
0x164d   :  { %3165 = vmatpush.msra.mxu2 %v3686_v44 }
0x164f   :  { %3166 = vmatpush.msra.mxu2 %v3687_v17 }
0x168c   :  { %v2820_v13 = vpop.f32.mrf.mxu1 }
0x168d   :  { %3100 = vrot.lane.b32.xlu0 %v2820_v13, %s3884_s7 }
0x1692   :  { %v2956_v54 = vpop.f32.mrf.mxu3 }
0x1694   :  { %v2823_v18 = vpop.f32.mrf.mxu1 }
0x1695   :  { %3108 = vrot.lane.b32.xlu0 %v2956_v54, %s3885_s8  ;;  %v3713_v54 = vld [vmem:[%s5187_s5 + $0x1c] ss:$0 sm:$0xff] }
0x169a   :  { %v2959_v2 = vpop.f32.mrf.mxu3 }
0x169b   :  { %3110 = vrot.lane.b32.xlu1 %v2959_v2, %s3885_s8 }
0x169d   :  { %3102 = vrot.lane.b32.xlu0 %v2823_v18, %s3884_s7 }
0x16a1   :  { %v3092_v34 = vpop.f32.mrf.mxu1 }
0x16a2   :  { %3116 = vrot.lane.b32.xlu2 %v3092_v34, %s3886_s9  ;;  %v3268_v34 = vld [vmem:[%s5184_s4 + $0x198] sm:$0xff] }
0x16c1   :  { %v3095_v21 = vpop.f32.mrf.mxu1 }
0x16c2   :  { %3118 = vrot.lane.b32.xlu2 %v3095_v21, %s3886_s9 }
0x16fc   :  { %v3117_v50 = vpop.permute.xlu2 %3116 }
0x16ff   :  { %v3101_v60 = vpop.permute.xlu0 %3100 }
0x1700   :  { %v3122_v35 = vsel %vm154_vm1, %v2680_v56, %v3101_v60 }
0x1707   :  { %v3109_v32 = vpop.permute.xlu0 %3108 }
0x1708   :  { %v3124_v33 = vsel %vm188_vm5, %v3122_v35, %v3109_v32 }
0x1709   :  { %v3126_v25 = vsel %vm662_vm15, %v3124_v33, %v3117_v50 }
0x170a   :  { %3514 = vmatmul.msk.f32.vlgmr.msra.gmra.mxu2 %vm80_vm0, %v3126_v25  ;;  %v3267_v25 = vld [vmem:[%s5184_s4 + $0x190] sm:$0xff] }
0x170d   :  { %v3111_v40 = vpop.permute.xlu1 %3110 }
0x170f   :  { %v3103_v19 = vpop.permute.xlu0 %3102 }
0x1710   :  { %v3123_v28 = vsel %vm154_vm1, %v2683_v11, %v3103_v19  ;;  %v3269_v11 = vld [vmem:[%s5184_s4 + $0x1a0] sm:$0xff]  ;;  %v3266_v19 = vld [vmem:[%s5184_s4 + $0x188] sm:$0xff] }
0x1711   :  { %v3125_v8 = vsel %vm188_vm5, %v3123_v28, %v3111_v40  ;;  %3292 = vmatpush.msra.mxu0 %v3269_v11  ;;  %v3265_v28 = vld [vmem:[%s5184_s4 + $0x180] sm:$0xff]  ;;  %v3714_v40 = vld [vmem:[%s5187_s5 + $0x17] ss:$0 sm:$0xff] }
0x1713   :  { %3293 = vmatpush.msra.mxu0 %v3268_v34 }
0x1715   :  { %3294 = vmatpush.msra.mxu0 %v3267_v25 }
0x1717   :  { %3295 = vmatpush.msra.mxu0 %v3266_v19 }
0x1719   :  { %3296 = vmatpush.msra.mxu0 %v3265_v28 }
0x171c   :  { %v3119_v31 = vpop.permute.xlu2 %3118 }
0x171d   :  { %v3127_v39 = vsel %vm662_vm15, %v3125_v8, %v3119_v31 }
0x171e   :  { %3515 = vmatmul.msk.f32.gmra.mxu2 %vm80_vm0, %v3127_v39 }
0x178d   :  { %v3168_v61 = vpop.f32.mrf.mxu2 }
0x178e   :  { %v3169_v42 = vadd.f32 %v3711_v27, %v3168_v61 }
0x1790   :  { %v3174_v52 = vadd.f32 %v3169_v42, %v4854_v29 }
0x1792   :  { %v3178_v3 = vsel %vm80_vm0, %v3174_v52, 0.0 }
0x1793   :  { %3179 = vadd.xlane.f32.xlu0 %v3178_v3 }
0x17a1   :  { %v3171_v47 = vpop.f32.mrf.mxu2 }
0x17a2   :  { %v3172_v55 = vadd.f32 %v3711_v27, %v3171_v47 }
0x17a4   :  { %v3175_v9 = vadd.f32 %v3172_v55, %v4861_v20  ;;  %v3231_v20 = vld [vmem:[%s5184_s4 + $0x178] sm:$0xff] }
0x17a5   :  { %3252 = vmatpush.msrb.mxu3 %v3231_v20 }
0x17a6   :  { %v3181_v10 = vsel %vm80_vm0, %v3175_v9, 0.0 }
0x17a7   :  { %3182 = vadd.xlane.f32.xlu2 %v3181_v10  ;;  %3253 = vmatpush.msrb.mxu3 %v3230_v63 }
0x17a9   :  { %3254 = vmatpush.msrb.mxu3 %v3229_v41 }
0x17ab   :  { %3255 = vmatpush.msrb.mxu3 %v3228_v5 }
0x1806   :  { %v3180_v26 = vpop.xlane.xlu0 %3179 }
0x1807   :  { %v3184_v0 = vmul.f32 %v3180_v26, %v4215_v58 }
0x1809   :  { %v3186_v1 = vsub.f32 %v3174_v52, %v3184_v0  ;;  %v3715_v52 = vld [vmem:[%s5187_s5 + $0x18] ss:$0 sm:$0xff] }
0x180b   :  { %v3188_v4 = vmul.f32 %v3186_v1, %v3186_v1 }
0x180d   :  { %v3190_v59 = vsel %vm80_vm0, %v3188_v4, 0.0 }
0x180e   :  { %3191 = vadd.xlane.f32.xlu1 %v3190_v59 }
0x181a   :  { %v3183_v62 = vpop.xlane.xlu2 %3182 }
0x181b   :  { %v3185_v29 = vmul.f32 %v3183_v62, %v4215_v58 }
0x181d   :  { %v3187_v43 = vsub.f32 %v3175_v9, %v3185_v29 }
0x181f   :  { %v3189_v36 = vmul.f32 %v3187_v43, %v3187_v43 }
0x1821   :  { %v3193_v15 = vsel %vm80_vm0, %v3189_v36, 0.0 }
0x1822   :  { %3194 = vadd.xlane.f32.xlu0 %v3193_v15 }
0x1881   :  { %v3192_v30 = vpop.xlane.xlu1 %3191 }
0x1882   :  { %v3196_v51 = vmul.f32 %v3192_v30, %v4215_v58 }
0x1884   :  { %v3198_v24 = vadd.f32 1e-05, %v3196_v51 }
0x1886   :  { %3864 = vrsqrt.f32 %v3198_v24  ;;  %vm3206_vm5 = vweird.f32 %v3198_v24 }
0x188c   :  { %v3865_v46 = vpop.eup %3864 }
0x188d   :  { %v3201_v16 = vmul.f32 %v3865_v46, %v3198_v24  ;;  %vm3207_vm1 = vweird.f32 %v3865_v46 }
0x188e   :  { %vm3208_vm15 = vmor %vm3206_vm5, %vm3207_vm1 }
0x188f   :  { %v3202_v45 = vmul.f32 %v3865_v46, %v3201_v16 }
0x1891   :  { %v3203_v48 = vmul.f32 0.5, %v3202_v45 }
0x1893   :  { %v3204_v6 = vsub.f32 1.5, %v3203_v48 }
0x1895   :  { %v3205_v23 = vmul.f32 %v3865_v46, %v3204_v6  ;;  %v3195_v7 = vpop.xlane.xlu0 %3194  ;;  %v3716_v6 = vld [vmem:[%s5187_s5 + $0x1d] ss:$0 sm:$0xff] }
0x1896   :  { %v3197_v56 = vmul.f32 %v3195_v7, %v4215_v58  ;;  %v3717_v7 = vld [vmem:[%s5187_s5 + $0x1e] ss:$0 sm:$0xff] }
0x1897   :  { %v3209_v13 = vsel %vm3208_vm15, %v3865_v46, %v3205_v23 }
0x1898   :  { %v3220_v18 = vmul.f32 %v3209_v13, %v3186_v1  ;;  %v3199_v2 = vadd.f32 1e-05, %v3197_v56 }
0x189a   :  { %v3223_v38 = vmul.f32 %v3712_v22, %v3220_v18  ;;  %3866 = vrsqrt.f32 %v3199_v2  ;;  %vm3216_vm3 = vweird.f32 %v3199_v2 }
0x189c   :  { %v3226_v37 = vadd.f32 %v3713_v54, %v3223_v38 }
0x189e   :  { %3516 = vmatmul.msk.f32.vlgmr.msrb.gmra.mxu3 %vm80_vm0, %v3226_v37 }
0x18a0   :  { %v3867_v14 = vpop.eup %3866 }
0x18a1   :  { %v3211_v53 = vmul.f32 %v3867_v14, %v3199_v2  ;;  %vm3217_vm14 = vweird.f32 %v3867_v14 }
0x18a2   :  { %vm3218_vm6 = vmor %vm3216_vm3, %vm3217_vm14 }
0x18a3   :  { %v3212_v17 = vmul.f32 %v3867_v14, %v3211_v53 }
0x18a5   :  { %v3213_v44 = vmul.f32 0.5, %v3212_v17 }
0x18a7   :  { %v3214_v21 = vsub.f32 1.5, %v3213_v44 }
0x18a9   :  { %v3215_v60 = vmul.f32 %v3867_v14, %v3214_v21 }
0x18ab   :  { %v3219_v35 = vsel %vm3218_vm6, %v3867_v14, %v3215_v60 }
0x18ac   :  { %v3221_v32 = vmul.f32 %v3219_v35, %v3187_v43 }
0x18ae   :  { %v3224_v50 = vmul.f32 %v3712_v22, %v3221_v32 }
0x18b0   :  { %v3227_v33 = vadd.f32 %v3713_v54, %v3224_v50 }
0x18b2   :  { %3517 = vmatmul.msk.f32.gmra.mxu3 %vm80_vm0, %v3227_v33 }
0x1921   :  { %v3257_v8 = vpop.f32.mrf.mxu3 }
0x1922   :  { %v3258_v31 = vadd.f32 %v3714_v40, %v3257_v8 }
0x1924   :  { %v3263_v39 = vmax.f32 %v3258_v31, 0.0 }
0x1926   :  { %3518 = vmatmul.msk.f32.vlgmr.msra.gmra.mxu0 %vm1637_vm2, %v3263_v39 }
0x1935   :  { %v3260_v27 = vpop.f32.mrf.mxu3 }
0x1936   :  { %v3261_v61 = vadd.f32 %v3714_v40, %v3260_v27 }
0x1938   :  { %v3264_v42 = vmax.f32 %v3261_v61, 0.0 }
0x193a   :  { %3519 = vmatmul.msk.f32.gmra.mxu0 %vm1637_vm2, %v3264_v42 }
0x19a3   :  { %v3298_v3 = vpop.f32.mrf.mxu0 }
0x19a4   :  { %v3299_v47 = vadd.f32 %v3715_v52, %v3298_v3 }
0x19a6   :  { %v3304_v55 = vadd.f32 %v3299_v47, %v3226_v37 }
0x19a8   :  { %v3308_v9 = vsel %vm80_vm0, %v3304_v55, 0.0 }
0x19a9   :  { %3309 = vadd.xlane.f32.xlu2 %v3308_v9 }
0x19b7   :  { %v3301_v10 = vpop.f32.mrf.mxu0 }
0x19b8   :  { %v3302_v26 = vadd.f32 %v3715_v52, %v3301_v10 }
0x19ba   :  { %v3305_v0 = vadd.f32 %v3302_v26, %v3227_v33 }
0x19bc   :  { %v3311_v1 = vsel %vm80_vm0, %v3305_v0, 0.0 }
0x19bd   :  { %3312 = vadd.xlane.f32.xlu0 %v3311_v1 }
0x1a1c   :  { %v3310_v4 = vpop.xlane.xlu2 %3309 }
0x1a1d   :  { %v3314_v59 = vmul.f32 %v3310_v4, %v4215_v58 }
0x1a1f   :  { %v3316_v62 = vsub.f32 %v3304_v55, %v3314_v59 }
0x1a21   :  { %v3318_v29 = vmul.f32 %v3316_v62, %v3316_v62 }
0x1a23   :  { %v3320_v43 = vsel %vm80_vm0, %v3318_v29, 0.0 }
0x1a24   :  { %3321 = vadd.xlane.f32.xlu2 %v3320_v43 }
0x1a30   :  { %v3313_v36 = vpop.xlane.xlu0 %3312 }
0x1a31   :  { %v3315_v15 = vmul.f32 %v3313_v36, %v4215_v58 }
0x1a33   :  { %v3317_v20 = vsub.f32 %v3305_v0, %v3315_v15 }
0x1a35   :  { %v3319_v63 = vmul.f32 %v3317_v20, %v3317_v20 }
0x1a37   :  { %v3323_v41 = vsel %vm80_vm0, %v3319_v63, 0.0 }
0x1a38   :  { %3324 = vadd.xlane.f32.xlu0 %v3323_v41 }
0x1a97   :  { %v3322_v5 = vpop.xlane.xlu2 %3321 }
0x1a98   :  { %v3326_v30 = vmul.f32 %v3322_v5, %v4215_v58 }
0x1a9a   :  { %v3328_v51 = vadd.f32 1e-05, %v3326_v30 }
0x1a9c   :  { %3868 = vrsqrt.f32 %v3328_v51  ;;  %vm3336_vm7 = vweird.f32 %v3328_v51 }
0x1aa2   :  { %v3869_v24 = vpop.eup %3868 }
0x1aa3   :  { %v3331_v46 = vmul.f32 %v3869_v24, %v3328_v51  ;;  %vm3337_vm2 = vweird.f32 %v3869_v24 }
0x1aa4   :  { %vm3338_vm8 = vmor %vm3336_vm7, %vm3337_vm2 }
0x1aa5   :  { %v3332_v16 = vmul.f32 %v3869_v24, %v3331_v46 }
0x1aa7   :  { %v3333_v45 = vmul.f32 0.5, %v3332_v16 }
0x1aa9   :  { %v3334_v48 = vsub.f32 1.5, %v3333_v45 }
0x1aab   :  { %v3335_v49 = vmul.f32 %v3869_v24, %v3334_v48  ;;  %v3325_v12 = vpop.xlane.xlu0 %3324 }
0x1aac   :  { %v3327_v57 = vmul.f32 %v3325_v12, %v4215_v58 }
0x1aad   :  { %v3339_v23 = vsel %vm3338_vm8, %v3869_v24, %v3335_v49 }
0x1aae   :  { %v3350_v22 = vmul.f32 %v3339_v23, %v3316_v62  ;;  %v3329_v56 = vadd.f32 1e-05, %v3327_v57 }
0x1ab0   :  { %v3353_v11 = vmul.f32 %v3716_v6, %v3350_v22  ;;  %3870 = vrsqrt.f32 %v3329_v56  ;;  %vm3346_vm10 = vweird.f32 %v3329_v56 }
0x1ab2   :  { %v3356_v13 = vadd.f32 %v3717_v7, %v3353_v11 }
0x1ab4   :  { %3358 = vst.msk [vmem:[%s5190_s6] sm:$0xff] %vm80_vm0, %v3356_v13 }
0x1ab6   :  { %v3871_v54 = vpop.eup %3870 }
0x1ab7   :  { %v3341_v18 = vmul.f32 %v3871_v54, %v3329_v56  ;;  %vm3347_vm9 = vweird.f32 %v3871_v54 }
0x1ab8   :  { %vm3348_vm11 = vmor %vm3346_vm10, %vm3347_vm9 }
0x1ab9   :  { %v3342_v2 = vmul.f32 %v3871_v54, %v3341_v18 }
0x1abb   :  { %v3343_v34 = vmul.f32 0.5, %v3342_v2 }
0x1abd   :  { %v3344_v58 = vsub.f32 1.5, %v3343_v34 }
0x1abf   :  { %v3345_v38 = vmul.f32 %v3871_v54, %v3344_v58 }
0x1ac1   :  { %v3349_v37 = vsel %vm3348_vm11, %v3871_v54, %v3345_v38 }
0x1ac2   :  { %v3351_v14 = vmul.f32 %v3349_v37, %v3317_v20 }
0x1ac4   :  { %v3354_v53 = vmul.f32 %v3716_v6, %v3351_v14 }
0x1ac6   :  { %v3357_v17 = vadd.f32 %v3717_v7, %v3354_v53 }
0x1ac8   :  { %3359 = vst.msk [vmem:[%s5190_s6 + $0x8] sm:$0xff] %vm80_vm0, %v3357_v17 }

</bundles_post_ra>
